<compile_context>
chip_gen: v7x
topology: tpu7x:2x2x1
jax: 0.10.0
libtpu: 0.0.40
codegen_flags: <defaults>
</compile_context>

<pallas_src>
import functools
import math

import jax
import jax.numpy as jnp
import numpy as np
from jax.experimental import pallas as pl
from jax.experimental.pallas import tpu as pltpu


# ----------------------------------------------------------------------------
# config
# ----------------------------------------------------------------------------
class Cfg:
    n_layer = 2
    n_head = 4
    n_embd = 32
    block_size = 16
    dropout = 0.0
    use_abs_pos_embeddings = True


# ----------------------------------------------------------------------------
# small math helpers (used both inside the kernel and in the JAX reference)
# ----------------------------------------------------------------------------
def _layernorm(x, g, b, eps=1e-5):
    mean = jnp.mean(x, axis=-1, keepdims=True)
    var = jnp.mean((x - mean) ** 2, axis=-1, keepdims=True)
    return (x - mean) * jax.lax.rsqrt(var + eps) * g + b


def _gelu_tanh(x):
    c = math.sqrt(2.0 / math.pi)
    return 0.5 * x * (1.0 + jnp.tanh(c * (x + 0.044715 * x * x * x)))


# ----------------------------------------------------------------------------
# fused Pallas kernel: pos-add + n_layer pre-LN transformer blocks
# ----------------------------------------------------------------------------
def lpe_kernel(x_ref, pos_ref,
               ln1g_ref, ln1b_ref, wqkv_ref, bqkv_ref, wo_ref, bo_ref,
               ln2g_ref, ln2b_ref, wfc_ref, bfc_ref, wpr_ref, bpr_ref,
               o_ref, *, n_layer, n_head):
    Bb, T, D = x_ref.shape            # (sequences per grid step, seq len, n_embd)
    R = Bb * T                        # flattened row count for the dense matmuls
    dh = D // n_head

    pos = pos_ref[...].astype(jnp.float32)                   # (T, D)
    # learned abs-pos add (dropout p=0 == identity); flatten all sequences of this
    # grid step into one (R, D) row block so LN / QKV / MLP matmuls are R rows tall.
    rows = [x_ref[b].astype(jnp.float32) + pos for b in range(Bb)]
    x = rows[0] if Bb == 1 else jnp.concatenate(rows, axis=0)  # (R, D)

    # causal mask: built ONCE, reused by every layer / head / sequence.
    # (-1e30 + row-max subtraction is safe because every causal row keeps its
    #  diagonal unmasked; revisit if padding masks are ever added.)
    row_i = jax.lax.broadcasted_iota(jnp.int32, (T, T), 0)
    col_i = jax.lax.broadcasted_iota(jnp.int32, (T, T), 1)
    causal = row_i >= col_i
    neg_inf = jnp.float32(-1e30)

    for l in range(n_layer):                                  # static unroll over layers
        # per-layer weights (static leading-dim index -> simple VMEM slices)
        ln1_g, ln1_b = ln1g_ref[l], ln1b_ref[l]               # (1, D)
        w_qkv, b_qkv = wqkv_ref[l], bqkv_ref[l]               # (D, 3D), (1, 3D)  (q pre-scaled)
        w_o, b_o = wo_ref[l], bo_ref[l]                       # (D, D), (1, D)
        ln2_g, ln2_b = ln2g_ref[l], ln2b_ref[l]               # (1, D)
        w_fc, b_fc = wfc_ref[l], bfc_ref[l]                   # (D, 4D), (1, 4D)
        w_pr, b_pr = wpr_ref[l], bpr_ref[l]                   # (4D, D), (1, D)

        # ---- attention branch (pre-LN), fused QKV projection over all rows ----
        h = _layernorm(x, ln1_g, ln1_b)
        qkv = jnp.dot(h, w_qkv, preferred_element_type=jnp.float32) + b_qkv   # (R, 3D)

        attn_rows = []
        for b in range(Bb):                                   # per-sequence scores/softmax/PV
            r0 = b * T
            attn_b = jnp.zeros((T, D), jnp.float32)
            for hh in range(n_head):                          # heads fold through W_o (no concat)
                q = qkv[r0:r0 + T, hh * dh:(hh + 1) * dh]              # pre-scaled by 1/sqrt(dh)
                k = qkv[r0:r0 + T, D + hh * dh:D + (hh + 1) * dh]
                v = qkv[r0:r0 + T, 2 * D + hh * dh:2 * D + (hh + 1) * dh]
                # contract on last dims of both -> no materialized k.T (no XLU transpose)
                s = jax.lax.dot_general(q, k, (((1,), (1,)), ((), ())),
                                        preferred_element_type=jnp.float32)   # (T, T)
                s = jnp.where(causal, s, neg_inf)
                s = s - jnp.max(s, axis=-1, keepdims=True)
                p = jnp.exp(s)
                inv = pl.reciprocal(jnp.sum(p, axis=-1, keepdims=True), approx=True)
                # normalize AFTER the PV matmul: (T, dh) multiply instead of (T, T)
                pv = jnp.dot(p, v, preferred_element_type=jnp.float32) * inv  # (T, dh)
                attn_b = attn_b + jnp.dot(pv, w_o[hh * dh:(hh + 1) * dh, :],
                                          preferred_element_type=jnp.float32)  # (T, D)
            attn_rows.append(attn_b)
        attn = attn_rows[0] if Bb == 1 else jnp.concatenate(attn_rows, axis=0)  # (R, D)
        x = x + attn + b_o

        # ---- MLP branch (pre-LN), all rows at once ----
        h2 = _layernorm(x, ln2_g, ln2_b)
        ff = jnp.dot(h2, w_fc, preferred_element_type=jnp.float32) + b_fc
        ff = _gelu_tanh(ff)
        x = x + jnp.dot(ff, w_pr, preferred_element_type=jnp.float32) + b_pr

    xc = x.astype(o_ref.dtype)
    for b in range(Bb):
        o_ref[b] = xc[b * T:(b + 1) * T]


# ----------------------------------------------------------------------------
# one-time weight preparation (hoisted out of the per-call path)
# ----------------------------------------------------------------------------
def prepare_params(params, cfg):
    """Stack per-layer weights, fuse Q/K/V, and fold the 1/sqrt(dh) score scale
    into the q columns.  Call ONCE after loading weights; lpe_forward consumes
    the result, so each forward emits no stack/concatenate ops."""
    D = cfg.n_embd
    dh = D // cfg.n_head
    scale = 1.0 / math.sqrt(dh)
    blocks = params["blocks"]
    g = lambda k: jnp.stack([b[k] for b in blocks])                       # (L, ...) stacks
    w_qkv = jnp.stack([jnp.concatenate([b["wq"] * scale, b["wk"], b["wv"]], axis=1)
                       for b in blocks])                                  # (L, D, 3D)
    b_qkv = jnp.stack([jnp.concatenate([b["bq"] * scale, b["bk"], b["bv"]], axis=1)
                       for b in blocks])                                  # (L, 1, 3D)
    stacked = {
        "ln1_g": g("ln1_g"), "ln1_b": g("ln1_b"),
        "w_qkv": w_qkv, "b_qkv": b_qkv,
        "w_o": g("wo"), "b_o": g("bo"),
        "ln2_g": g("ln2_g"), "ln2_b": g("ln2_b"),
        "w_fc": g("w_fc"), "b_fc": g("b_fc"),
        "w_pr": g("w_pr"), "b_pr": g("b_pr"),
    }
    wpe = params["wpe"] if cfg.use_abs_pos_embeddings else None
    return {"wpe": wpe, "stacked": stacked}


# ----------------------------------------------------------------------------
# wrapper: one pallas_call for the whole module
# ----------------------------------------------------------------------------
def lpe_forward(x, prepared, cfg, *, grid_steps=None):
    """LearnedPositionEmbedding.forward(b, t, x) with dropout=0 (inference)."""
    B, T, D = x.shape
    L, H = cfg.n_layer, cfg.n_head

    if cfg.use_abs_pos_embeddings:
        pos = prepared["wpe"][:T]                       # (T, D)
    else:
        pos = jnp.zeros((T, D), x.dtype)

    if grid_steps is None:
        # Split across v7x's 2 TensorCores only when each half of the batch still
        # gives >=128-row matmuls; otherwise one big step (fewer per-step
        # overheads, taller MXU pushes) wins, and is always best on 1-TC v5e/v6e.
        grid_steps = 2 if (B % 2 == 0 and (B // 2) * T >= 128) else 1
    assert B % grid_steps == 0
    Bb = B // grid_steps

    s = prepared["stacked"]
    order = ("ln1_g", "ln1_b", "w_qkv", "b_qkv", "w_o", "b_o",
             "ln2_g", "ln2_b", "w_fc", "b_fc", "w_pr", "b_pr")
    weights = [s[k] for k in order]

    def full_spec(arr):
        # grid-invariant: constant block index -> fetched once, VMEM-resident.
        nd = arr.ndim
        return pl.BlockSpec(arr.shape, lambda i, _n=nd: (0,) * _n)

    return pl.pallas_call(
        functools.partial(lpe_kernel, n_layer=L, n_head=H),
        out_shape=jax.ShapeDtypeStruct((B, T, D), x.dtype),
        grid=(grid_steps,),
        in_specs=[pl.BlockSpec((Bb, T, D), lambda i: (i, 0, 0)),
                  full_spec(pos)] + [full_spec(w) for w in weights],
        out_specs=pl.BlockSpec((Bb, T, D), lambda i: (i, 0, 0)),
        compiler_params=pltpu.CompilerParams(
            dimension_semantics=("parallel",)),
    )(x, pos, *weights)


# ----------------------------------------------------------------------------
# plain-JAX reference (same math, exact softmax, unfused/unscaled weights)
# ----------------------------------------------------------------------------
def ref_forward(x, params, cfg):
    B, T, D = x.shape
    H, dh = cfg.n_head, D // cfg.n_head
    if cfg.use_abs_pos_embeddings:
        x = x + params["wpe"][:T][None]
    mask = np.tril(np.ones((T, T), dtype=bool))
    for p in params["blocks"]:
        h = _layernorm(x, p["ln1_g"][0], p["ln1_b"][0])
        q = h @ p["wq"] + p["bq"][0]
        k = h @ p["wk"] + p["bk"][0]
        v = h @ p["wv"] + p["bv"][0]
        q = q.reshape(B, T, H, dh).transpose(0, 2, 1, 3)
        k = k.reshape(B, T, H, dh).transpose(0, 2, 1, 3)
        v = v.reshape(B, T, H, dh).transpose(0, 2, 1, 3)
        s = jnp.einsum("bhqd,bhkd->bhqk", q, k) / math.sqrt(dh)
        s = jnp.where(mask[None, None], s, -1e30)
        pmat = jax.nn.softmax(s, axis=-1)
        a = jnp.einsum("bhqk,bhkd->bhqd", pmat, v).transpose(0, 2, 1, 3).reshape(B, T, D)
        x = x + (a @ p["wo"] + p["bo"][0])
        h2 = _layernorm(x, p["ln2_g"][0], p["ln2_b"][0])
        ff = _gelu_tanh(h2 @ p["w_fc"] + p["b_fc"][0])
        x = x + (ff @ p["w_pr"] + p["b_pr"][0])
    return x


# ----------------------------------------------------------------------------
# deterministic parameter init
# ----------------------------------------------------------------------------
def init_params(key, cfg):
    D, F = cfg.n_embd, 4 * cfg.n_embd
    keys = iter(jax.random.split(key, 128))
    nrm = lambda shape: 0.02 * jax.random.normal(next(keys), shape, jnp.float32)
    params = {"wpe": nrm((cfg.block_size, D)), "blocks": []}
    for _ in range(cfg.n_layer):
        params["blocks"].append({
            "ln1_g": jnp.ones((1, D), jnp.float32), "ln1_b": jnp.zeros((1, D), jnp.float32),
            "wq": nrm((D, D)), "bq": jnp.zeros((1, D), jnp.float32),
            "wk": nrm((D, D)), "bk": jnp.zeros((1, D), jnp.float32),
            "wv": nrm((D, D)), "bv": jnp.zeros((1, D), jnp.float32),
            "wo": nrm((D, D)), "bo": jnp.zeros((1, D), jnp.float32),
            "ln2_g": jnp.ones((1, D), jnp.float32), "ln2_b": jnp.zeros((1, D), jnp.float32),
            "w_fc": nrm((D, F)), "b_fc": jnp.zeros((1, F), jnp.float32),
            "w_pr": nrm((F, D)), "b_pr": jnp.zeros((1, D), jnp.float32),
        })
    return params


# ----------------------------------------------------------------------------
if __name__ == "__main__":
    cfg = Cfg()
    B, T, D = 2, 8, cfg.n_embd

    key = jax.random.PRNGKey(0)
    k_x, k_p = jax.random.split(key)
    x = jax.random.normal(k_x, (B, T, D), jnp.float32)
    params = init_params(k_p, cfg)

    # one-time weight prep (stacking / QKV fuse / scale fold) outside the call path
    prepared = jax.tree_util.tree_map(jax.block_until_ready, prepare_params(params, cfg))

    fwd = jax.jit(lambda xx, pp: lpe_forward(xx, pp, cfg))
    out = jax.block_until_ready(fwd(x, prepared))
    ref = jax.block_until_ready(ref_forward(x, params, cfg))

    assert out.shape == (B, T, D)
    # tolerance covers the approx (EUP) reciprocal in the softmax denominator
    np.testing.assert_allclose(np.asarray(out), np.asarray(ref), rtol=1e-3, atol=1e-3)

    print("KERNEL_OK")
</pallas_src>

<mosaic_0001>
module attributes {stable_mosaic.version = 11 : i64} {
  func.func @lpe_kernel(%arg0: i32, %arg1: memref<2x8x32xf32, #tpu.memory_space<vmem>>, %arg2: memref<8x32xf32, #tpu.memory_space<vmem>>, %arg3: memref<2x1x32xf32, #tpu.memory_space<vmem>>, %arg4: memref<2x1x32xf32, #tpu.memory_space<vmem>>, %arg5: memref<2x32x96xf32, #tpu.memory_space<vmem>>, %arg6: memref<2x1x96xf32, #tpu.memory_space<vmem>>, %arg7: memref<2x32x32xf32, #tpu.memory_space<vmem>>, %arg8: memref<2x1x32xf32, #tpu.memory_space<vmem>>, %arg9: memref<2x1x32xf32, #tpu.memory_space<vmem>>, %arg10: memref<2x1x32xf32, #tpu.memory_space<vmem>>, %arg11: memref<2x32x128xf32, #tpu.memory_space<vmem>>, %arg12: memref<2x1x128xf32, #tpu.memory_space<vmem>>, %arg13: memref<2x128x32xf32, #tpu.memory_space<vmem>>, %arg14: memref<2x1x32xf32, #tpu.memory_space<vmem>>, %arg15: memref<2x8x32xf32, #tpu.memory_space<vmem>>) attributes {dimension_semantics = [#tpu.dimension_semantics<parallel>], iteration_bounds = array<i64: 1>, scalar_prefetch = 0 : i64, scratch_operands = 0 : i64, tpu.core_type = #tpu.core_type<tc>, window_params = [{transform_indices = @transform_0, window_bounds = array<i64: 2, 8, 32>}, {pipeline_mode = #tpu.pipeline_mode<synchronous>, transform_indices = @transform_1, window_bounds = array<i64: 8, 32>}, {pipeline_mode = #tpu.pipeline_mode<synchronous>, transform_indices = @transform_2, window_bounds = array<i64: 2, 1, 32>}, {pipeline_mode = #tpu.pipeline_mode<synchronous>, transform_indices = @transform_3, window_bounds = array<i64: 2, 1, 32>}, {pipeline_mode = #tpu.pipeline_mode<synchronous>, transform_indices = @transform_4, window_bounds = array<i64: 2, 32, 96>}, {pipeline_mode = #tpu.pipeline_mode<synchronous>, transform_indices = @transform_5, window_bounds = array<i64: 2, 1, 96>}, {pipeline_mode = #tpu.pipeline_mode<synchronous>, transform_indices = @transform_6, window_bounds = array<i64: 2, 32, 32>}, {pipeline_mode = #tpu.pipeline_mode<synchronous>, transform_indices = @transform_7, window_bounds = array<i64: 2, 1, 32>}, {pipeline_mode = #tpu.pipeline_mode<synchronous>, transform_indices = @transform_8, window_bounds = array<i64: 2, 1, 32>}, {pipeline_mode = #tpu.pipeline_mode<synchronous>, transform_indices = @transform_9, window_bounds = array<i64: 2, 1, 32>}, {pipeline_mode = #tpu.pipeline_mode<synchronous>, transform_indices = @transform_10, window_bounds = array<i64: 2, 32, 128>}, {pipeline_mode = #tpu.pipeline_mode<synchronous>, transform_indices = @transform_11, window_bounds = array<i64: 2, 1, 128>}, {pipeline_mode = #tpu.pipeline_mode<synchronous>, transform_indices = @transform_12, window_bounds = array<i64: 2, 128, 32>}, {pipeline_mode = #tpu.pipeline_mode<synchronous>, transform_indices = @transform_13, window_bounds = array<i64: 2, 1, 32>}, {transform_indices = @transform_14, window_bounds = array<i64: 2, 8, 32>}]} {
    %c0 = arith.constant 0 : index
    %c0_0 = arith.constant 0 : index
    %0 = vector.load %arg2[%c0, %c0_0] : memref<8x32xf32, #tpu.memory_space<vmem>>, vector<8x32xf32>
    %c0_1 = arith.constant 0 : index
    %c0_2 = arith.constant 0 : index
    %c0_3 = arith.constant 0 : index
    %1 = vector.load %arg1[%c0_1, %c0_2, %c0_3] : memref<2x8x32xf32, #tpu.memory_space<vmem>>, vector<1x8x32xf32>
    %2 = vector.shape_cast %1 : vector<1x8x32xf32> to vector<8x32xf32>
    %3 = arith.addf %2, %0 : vector<8x32xf32>
    %c1 = arith.constant 1 : index
    %c0_4 = arith.constant 0 : index
    %c0_5 = arith.constant 0 : index
    %4 = vector.load %arg1[%c1, %c0_4, %c0_5] : memref<2x8x32xf32, #tpu.memory_space<vmem>>, vector<1x8x32xf32>
    %5 = vector.shape_cast %4 : vector<1x8x32xf32> to vector<8x32xf32>
    %6 = arith.addf %5, %0 : vector<8x32xf32>
    %7 = tpu.concatenate %3, %6 in 0 : vector<8x32xf32>, vector<8x32xf32> -> vector<16x32xf32>
    %8 = tpu.iota {dimensions = array<i32: 0>} : vector<8x8xi32>
    %9 = tpu.iota {dimensions = array<i32: 1>} : vector<8x8xi32>
    %10 = arith.cmpi sge, %8, %9 : vector<8x8xi32>
    %c0_6 = arith.constant 0 : index
    %c0_7 = arith.constant 0 : index
    %c0_8 = arith.constant 0 : index
    %11 = vector.load %arg3[%c0_6, %c0_7, %c0_8] : memref<2x1x32xf32, #tpu.memory_space<vmem>>, vector<1x1x32xf32>
    %12 = vector.shape_cast %11 : vector<1x1x32xf32> to vector<1x32xf32>
    %c0_9 = arith.constant 0 : index
    %c0_10 = arith.constant 0 : index
    %c0_11 = arith.constant 0 : index
    %13 = vector.load %arg4[%c0_9, %c0_10, %c0_11] : memref<2x1x32xf32, #tpu.memory_space<vmem>>, vector<1x1x32xf32>
    %14 = vector.shape_cast %13 : vector<1x1x32xf32> to vector<1x32xf32>
    %c0_12 = arith.constant 0 : index
    %c0_13 = arith.constant 0 : index
    %c0_14 = arith.constant 0 : index
    %15 = vector.load %arg5[%c0_12, %c0_13, %c0_14] : memref<2x32x96xf32, #tpu.memory_space<vmem>>, vector<1x32x96xf32>
    %16 = vector.shape_cast %15 : vector<1x32x96xf32> to vector<32x96xf32>
    %c0_15 = arith.constant 0 : index
    %c0_16 = arith.constant 0 : index
    %c0_17 = arith.constant 0 : index
    %17 = vector.load %arg6[%c0_15, %c0_16, %c0_17] : memref<2x1x96xf32, #tpu.memory_space<vmem>>, vector<1x1x96xf32>
    %18 = vector.shape_cast %17 : vector<1x1x96xf32> to vector<1x96xf32>
    %c0_18 = arith.constant 0 : index
    %c0_19 = arith.constant 0 : index
    %c0_20 = arith.constant 0 : index
    %19 = vector.load %arg7[%c0_18, %c0_19, %c0_20] : memref<2x32x32xf32, #tpu.memory_space<vmem>>, vector<1x32x32xf32>
    %20 = vector.shape_cast %19 : vector<1x32x32xf32> to vector<32x32xf32>
    %c0_21 = arith.constant 0 : index
    %c0_22 = arith.constant 0 : index
    %c0_23 = arith.constant 0 : index
    %21 = vector.load %arg8[%c0_21, %c0_22, %c0_23] : memref<2x1x32xf32, #tpu.memory_space<vmem>>, vector<1x1x32xf32>
    %22 = vector.shape_cast %21 : vector<1x1x32xf32> to vector<1x32xf32>
    %c0_24 = arith.constant 0 : index
    %c0_25 = arith.constant 0 : index
    %c0_26 = arith.constant 0 : index
    %23 = vector.load %arg9[%c0_24, %c0_25, %c0_26] : memref<2x1x32xf32, #tpu.memory_space<vmem>>, vector<1x1x32xf32>
    %24 = vector.shape_cast %23 : vector<1x1x32xf32> to vector<1x32xf32>
    %c0_27 = arith.constant 0 : index
    %c0_28 = arith.constant 0 : index
    %c0_29 = arith.constant 0 : index
    %25 = vector.load %arg10[%c0_27, %c0_28, %c0_29] : memref<2x1x32xf32, #tpu.memory_space<vmem>>, vector<1x1x32xf32>
    %26 = vector.shape_cast %25 : vector<1x1x32xf32> to vector<1x32xf32>
    %c0_30 = arith.constant 0 : index
    %c0_31 = arith.constant 0 : index
    %c0_32 = arith.constant 0 : index
    %27 = vector.load %arg11[%c0_30, %c0_31, %c0_32] : memref<2x32x128xf32, #tpu.memory_space<vmem>>, vector<1x32x128xf32>
    %28 = vector.shape_cast %27 : vector<1x32x128xf32> to vector<32x128xf32>
    %c0_33 = arith.constant 0 : index
    %c0_34 = arith.constant 0 : index
    %c0_35 = arith.constant 0 : index
    %29 = vector.load %arg12[%c0_33, %c0_34, %c0_35] : memref<2x1x128xf32, #tpu.memory_space<vmem>>, vector<1x1x128xf32>
    %30 = vector.shape_cast %29 : vector<1x1x128xf32> to vector<1x128xf32>
    %c0_36 = arith.constant 0 : index
    %c0_37 = arith.constant 0 : index
    %c0_38 = arith.constant 0 : index
    %31 = vector.load %arg13[%c0_36, %c0_37, %c0_38] : memref<2x128x32xf32, #tpu.memory_space<vmem>>, vector<1x128x32xf32>
    %32 = vector.shape_cast %31 : vector<1x128x32xf32> to vector<128x32xf32>
    %c0_39 = arith.constant 0 : index
    %c0_40 = arith.constant 0 : index
    %c0_41 = arith.constant 0 : index
    %33 = vector.load %arg14[%c0_39, %c0_40, %c0_41] : memref<2x1x32xf32, #tpu.memory_space<vmem>>, vector<1x1x32xf32>
    %34 = vector.shape_cast %33 : vector<1x1x32xf32> to vector<1x32xf32>
    %cst = arith.constant dense<0.000000e+00> : vector<16xf32>
    %35 = vector.multi_reduction <add>, %7, %cst [1] : vector<16x32xf32> to vector<16xf32>
    %36 = vector.shape_cast %35 : vector<16xf32> to vector<16x1xf32>
    %cst_42 = arith.constant 3.200000e+01 : f32
    %37 = vector.broadcast %cst_42 : f32 to vector<16x1xf32>
    %38 = arith.divf %36, %37 : vector<16x1xf32>
    %39 = vector.broadcast %38 : vector<16x1xf32> to vector<16x32xf32>
    %40 = arith.subf %7, %39 : vector<16x32xf32>
    %41 = arith.mulf %40, %40 : vector<16x32xf32>
    %cst_43 = arith.constant dense<0.000000e+00> : vector<16xf32>
    %42 = vector.multi_reduction <add>, %41, %cst_43 [1] : vector<16x32xf32> to vector<16xf32>
    %43 = vector.shape_cast %42 : vector<16xf32> to vector<16x1xf32>
    %cst_44 = arith.constant 3.200000e+01 : f32
    %44 = vector.broadcast %cst_44 : f32 to vector<16x1xf32>
    %45 = arith.divf %43, %44 : vector<16x1xf32>
    %46 = vector.broadcast %38 : vector<16x1xf32> to vector<16x32xf32>
    %47 = arith.subf %7, %46 : vector<16x32xf32>
    %cst_45 = arith.constant 9.99999974E-6 : f32
    %48 = vector.broadcast %cst_45 : f32 to vector<16x1xf32>
    %49 = arith.addf %45, %48 : vector<16x1xf32>
    %50 = math.rsqrt %49 : vector<16x1xf32>
    %51 = vector.broadcast %50 : vector<16x1xf32> to vector<16x32xf32>
    %52 = arith.mulf %47, %51 : vector<16x32xf32>
    %53 = vector.broadcast %12 : vector<1x32xf32> to vector<16x32xf32>
    %54 = arith.mulf %52, %53 : vector<16x32xf32>
    %55 = vector.broadcast %14 : vector<1x32xf32> to vector<16x32xf32>
    %56 = arith.addf %54, %55 : vector<16x32xf32>
    %cst_46 = arith.constant dense<0.000000e+00> : vector<16x96xf32>
    %57 = tpu.matmul %56, %16, %cst_46 {dimension_numbers = #tpu.dot_dimension_numbers<[1], [0], [0], [1], [0, 0, 1, 1], [], []>} : vector<16x32xf32>, vector<32x96xf32>, vector<16x96xf32> -> vector<16x96xf32>
    %58 = vector.broadcast %18 : vector<1x96xf32> to vector<16x96xf32>
    %59 = arith.addf %57, %58 : vector<16x96xf32>
    %cst_47 = arith.constant 0.000000e+00 : f32
    %60 = vector.broadcast %cst_47 : f32 to vector<8x32xf32>
    %61 = vector.extract_strided_slice %59 {offsets = [0, 0], sizes = [8, 8], strides = [1, 1]} : vector<16x96xf32> to vector<8x8xf32>
    %62 = vector.extract_strided_slice %59 {offsets = [0, 32], sizes = [8, 8], strides = [1, 1]} : vector<16x96xf32> to vector<8x8xf32>
    %63 = vector.extract_strided_slice %59 {offsets = [0, 64], sizes = [8, 8], strides = [1, 1]} : vector<16x96xf32> to vector<8x8xf32>
    %cst_48 = arith.constant dense<0.000000e+00> : vector<8x8xf32>
    %64 = tpu.matmul %61, %62, %cst_48 {dimension_numbers = #tpu.dot_dimension_numbers<[1], [1], [0], [0], [0, 0, 1, 0], [], []>} : vector<8x8xf32>, vector<8x8xf32>, vector<8x8xf32> -> vector<8x8xf32>
    %cst_49 = arith.constant -1.000000e+30 : f32
    %65 = vector.broadcast %cst_49 : f32 to vector<8x8xf32>
    %66 = arith.select %10, %64, %65 : vector<8x8xi1>, vector<8x8xf32>
    %cst_50 = arith.constant dense<0xFF800000> : vector<8xf32>
    %67 = vector.multi_reduction <maximumf>, %66, %cst_50 [1] : vector<8x8xf32> to vector<8xf32>
    %68 = vector.shape_cast %67 : vector<8xf32> to vector<8x1xf32>
    %69 = vector.broadcast %68 : vector<8x1xf32> to vector<8x8xf32>
    %70 = arith.subf %66, %69 : vector<8x8xf32>
    %71 = math.exp %70 : vector<8x8xf32>
    %cst_51 = arith.constant dense<0.000000e+00> : vector<8xf32>
    %72 = vector.multi_reduction <add>, %71, %cst_51 [1] : vector<8x8xf32> to vector<8xf32>
    %73 = vector.shape_cast %72 : vector<8xf32> to vector<8x1xf32>
    %74 = tpu.reciprocal %73 {approx = true} : vector<8x1xf32> -> vector<8x1xf32>
    %cst_52 = arith.constant dense<0.000000e+00> : vector<8x8xf32>
    %75 = tpu.matmul %71, %63, %cst_52 {dimension_numbers = #tpu.dot_dimension_numbers<[1], [0], [0], [1], [0, 0, 1, 1], [], []>} : vector<8x8xf32>, vector<8x8xf32>, vector<8x8xf32> -> vector<8x8xf32>
    %76 = vector.broadcast %74 : vector<8x1xf32> to vector<8x8xf32>
    %77 = arith.mulf %75, %76 : vector<8x8xf32>
    %78 = vector.extract_strided_slice %20 {offsets = [0, 0], sizes = [8, 32], strides = [1, 1]} : vector<32x32xf32> to vector<8x32xf32>
    %cst_53 = arith.constant dense<0.000000e+00> : vector<8x32xf32>
    %79 = tpu.matmul %77, %78, %cst_53 {dimension_numbers = #tpu.dot_dimension_numbers<[1], [0], [0], [1], [0, 0, 1, 1], [], []>} : vector<8x8xf32>, vector<8x32xf32>, vector<8x32xf32> -> vector<8x32xf32>
    %80 = arith.addf %60, %79 : vector<8x32xf32>
    %81 = vector.extract_strided_slice %59 {offsets = [0, 8], sizes = [8, 8], strides = [1, 1]} : vector<16x96xf32> to vector<8x8xf32>
    %82 = vector.extract_strided_slice %59 {offsets = [0, 40], sizes = [8, 8], strides = [1, 1]} : vector<16x96xf32> to vector<8x8xf32>
    %83 = vector.extract_strided_slice %59 {offsets = [0, 72], sizes = [8, 8], strides = [1, 1]} : vector<16x96xf32> to vector<8x8xf32>
    %cst_54 = arith.constant dense<0.000000e+00> : vector<8x8xf32>
    %84 = tpu.matmul %81, %82, %cst_54 {dimension_numbers = #tpu.dot_dimension_numbers<[1], [1], [0], [0], [0, 0, 1, 0], [], []>} : vector<8x8xf32>, vector<8x8xf32>, vector<8x8xf32> -> vector<8x8xf32>
    %cst_55 = arith.constant -1.000000e+30 : f32
    %85 = vector.broadcast %cst_55 : f32 to vector<8x8xf32>
    %86 = arith.select %10, %84, %85 : vector<8x8xi1>, vector<8x8xf32>
    %cst_56 = arith.constant dense<0xFF800000> : vector<8xf32>
    %87 = vector.multi_reduction <maximumf>, %86, %cst_56 [1] : vector<8x8xf32> to vector<8xf32>
    %88 = vector.shape_cast %87 : vector<8xf32> to vector<8x1xf32>
    %89 = vector.broadcast %88 : vector<8x1xf32> to vector<8x8xf32>
    %90 = arith.subf %86, %89 : vector<8x8xf32>
    %91 = math.exp %90 : vector<8x8xf32>
    %cst_57 = arith.constant dense<0.000000e+00> : vector<8xf32>
    %92 = vector.multi_reduction <add>, %91, %cst_57 [1] : vector<8x8xf32> to vector<8xf32>
    %93 = vector.shape_cast %92 : vector<8xf32> to vector<8x1xf32>
    %94 = tpu.reciprocal %93 {approx = true} : vector<8x1xf32> -> vector<8x1xf32>
    %cst_58 = arith.constant dense<0.000000e+00> : vector<8x8xf32>
    %95 = tpu.matmul %91, %83, %cst_58 {dimension_numbers = #tpu.dot_dimension_numbers<[1], [0], [0], [1], [0, 0, 1, 1], [], []>} : vector<8x8xf32>, vector<8x8xf32>, vector<8x8xf32> -> vector<8x8xf32>
    %96 = vector.broadcast %94 : vector<8x1xf32> to vector<8x8xf32>
    %97 = arith.mulf %95, %96 : vector<8x8xf32>
    %98 = vector.extract_strided_slice %20 {offsets = [8, 0], sizes = [8, 32], strides = [1, 1]} : vector<32x32xf32> to vector<8x32xf32>
    %cst_59 = arith.constant dense<0.000000e+00> : vector<8x32xf32>
    %99 = tpu.matmul %97, %98, %cst_59 {dimension_numbers = #tpu.dot_dimension_numbers<[1], [0], [0], [1], [0, 0, 1, 1], [], []>} : vector<8x8xf32>, vector<8x32xf32>, vector<8x32xf32> -> vector<8x32xf32>
    %100 = arith.addf %80, %99 : vector<8x32xf32>
    %101 = vector.extract_strided_slice %59 {offsets = [0, 16], sizes = [8, 8], strides = [1, 1]} : vector<16x96xf32> to vector<8x8xf32>
    %102 = vector.extract_strided_slice %59 {offsets = [0, 48], sizes = [8, 8], strides = [1, 1]} : vector<16x96xf32> to vector<8x8xf32>
    %103 = vector.extract_strided_slice %59 {offsets = [0, 80], sizes = [8, 8], strides = [1, 1]} : vector<16x96xf32> to vector<8x8xf32>
    %cst_60 = arith.constant dense<0.000000e+00> : vector<8x8xf32>
    %104 = tpu.matmul %101, %102, %cst_60 {dimension_numbers = #tpu.dot_dimension_numbers<[1], [1], [0], [0], [0, 0, 1, 0], [], []>} : vector<8x8xf32>, vector<8x8xf32>, vector<8x8xf32> -> vector<8x8xf32>
    %cst_61 = arith.constant -1.000000e+30 : f32
    %105 = vector.broadcast %cst_61 : f32 to vector<8x8xf32>
    %106 = arith.select %10, %104, %105 : vector<8x8xi1>, vector<8x8xf32>
    %cst_62 = arith.constant dense<0xFF800000> : vector<8xf32>
    %107 = vector.multi_reduction <maximumf>, %106, %cst_62 [1] : vector<8x8xf32> to vector<8xf32>
    %108 = vector.shape_cast %107 : vector<8xf32> to vector<8x1xf32>
    %109 = vector.broadcast %108 : vector<8x1xf32> to vector<8x8xf32>
    %110 = arith.subf %106, %109 : vector<8x8xf32>
    %111 = math.exp %110 : vector<8x8xf32>
    %cst_63 = arith.constant dense<0.000000e+00> : vector<8xf32>
    %112 = vector.multi_reduction <add>, %111, %cst_63 [1] : vector<8x8xf32> to vector<8xf32>
    %113 = vector.shape_cast %112 : vector<8xf32> to vector<8x1xf32>
    %114 = tpu.reciprocal %113 {approx = true} : vector<8x1xf32> -> vector<8x1xf32>
    %cst_64 = arith.constant dense<0.000000e+00> : vector<8x8xf32>
    %115 = tpu.matmul %111, %103, %cst_64 {dimension_numbers = #tpu.dot_dimension_numbers<[1], [0], [0], [1], [0, 0, 1, 1], [], []>} : vector<8x8xf32>, vector<8x8xf32>, vector<8x8xf32> -> vector<8x8xf32>
    %116 = vector.broadcast %114 : vector<8x1xf32> to vector<8x8xf32>
    %117 = arith.mulf %115, %116 : vector<8x8xf32>
    %118 = vector.extract_strided_slice %20 {offsets = [16, 0], sizes = [8, 32], strides = [1, 1]} : vector<32x32xf32> to vector<8x32xf32>
    %cst_65 = arith.constant dense<0.000000e+00> : vector<8x32xf32>
    %119 = tpu.matmul %117, %118, %cst_65 {dimension_numbers = #tpu.dot_dimension_numbers<[1], [0], [0], [1], [0, 0, 1, 1], [], []>} : vector<8x8xf32>, vector<8x32xf32>, vector<8x32xf32> -> vector<8x32xf32>
    %120 = arith.addf %100, %119 : vector<8x32xf32>
    %121 = vector.extract_strided_slice %59 {offsets = [0, 24], sizes = [8, 8], strides = [1, 1]} : vector<16x96xf32> to vector<8x8xf32>
    %122 = vector.extract_strided_slice %59 {offsets = [0, 56], sizes = [8, 8], strides = [1, 1]} : vector<16x96xf32> to vector<8x8xf32>
    %123 = vector.extract_strided_slice %59 {offsets = [0, 88], sizes = [8, 8], strides = [1, 1]} : vector<16x96xf32> to vector<8x8xf32>
    %cst_66 = arith.constant dense<0.000000e+00> : vector<8x8xf32>
    %124 = tpu.matmul %121, %122, %cst_66 {dimension_numbers = #tpu.dot_dimension_numbers<[1], [1], [0], [0], [0, 0, 1, 0], [], []>} : vector<8x8xf32>, vector<8x8xf32>, vector<8x8xf32> -> vector<8x8xf32>
    %cst_67 = arith.constant -1.000000e+30 : f32
    %125 = vector.broadcast %cst_67 : f32 to vector<8x8xf32>
    %126 = arith.select %10, %124, %125 : vector<8x8xi1>, vector<8x8xf32>
    %cst_68 = arith.constant dense<0xFF800000> : vector<8xf32>
    %127 = vector.multi_reduction <maximumf>, %126, %cst_68 [1] : vector<8x8xf32> to vector<8xf32>
    %128 = vector.shape_cast %127 : vector<8xf32> to vector<8x1xf32>
    %129 = vector.broadcast %128 : vector<8x1xf32> to vector<8x8xf32>
    %130 = arith.subf %126, %129 : vector<8x8xf32>
    %131 = math.exp %130 : vector<8x8xf32>
    %cst_69 = arith.constant dense<0.000000e+00> : vector<8xf32>
    %132 = vector.multi_reduction <add>, %131, %cst_69 [1] : vector<8x8xf32> to vector<8xf32>
    %133 = vector.shape_cast %132 : vector<8xf32> to vector<8x1xf32>
    %134 = tpu.reciprocal %133 {approx = true} : vector<8x1xf32> -> vector<8x1xf32>
    %cst_70 = arith.constant dense<0.000000e+00> : vector<8x8xf32>
    %135 = tpu.matmul %131, %123, %cst_70 {dimension_numbers = #tpu.dot_dimension_numbers<[1], [0], [0], [1], [0, 0, 1, 1], [], []>} : vector<8x8xf32>, vector<8x8xf32>, vector<8x8xf32> -> vector<8x8xf32>
    %136 = vector.broadcast %134 : vector<8x1xf32> to vector<8x8xf32>
    %137 = arith.mulf %135, %136 : vector<8x8xf32>
    %138 = vector.extract_strided_slice %20 {offsets = [24, 0], sizes = [8, 32], strides = [1, 1]} : vector<32x32xf32> to vector<8x32xf32>
    %cst_71 = arith.constant dense<0.000000e+00> : vector<8x32xf32>
    %139 = tpu.matmul %137, %138, %cst_71 {dimension_numbers = #tpu.dot_dimension_numbers<[1], [0], [0], [1], [0, 0, 1, 1], [], []>} : vector<8x8xf32>, vector<8x32xf32>, vector<8x32xf32> -> vector<8x32xf32>
    %140 = arith.addf %120, %139 : vector<8x32xf32>
    %cst_72 = arith.constant 0.000000e+00 : f32
    %141 = vector.broadcast %cst_72 : f32 to vector<8x32xf32>
    %142 = vector.extract_strided_slice %59 {offsets = [8, 0], sizes = [8, 8], strides = [1, 1]} : vector<16x96xf32> to vector<8x8xf32>
    %143 = vector.extract_strided_slice %59 {offsets = [8, 32], sizes = [8, 8], strides = [1, 1]} : vector<16x96xf32> to vector<8x8xf32>
    %144 = vector.extract_strided_slice %59 {offsets = [8, 64], sizes = [8, 8], strides = [1, 1]} : vector<16x96xf32> to vector<8x8xf32>
    %cst_73 = arith.constant dense<0.000000e+00> : vector<8x8xf32>
    %145 = tpu.matmul %142, %143, %cst_73 {dimension_numbers = #tpu.dot_dimension_numbers<[1], [1], [0], [0], [0, 0, 1, 0], [], []>} : vector<8x8xf32>, vector<8x8xf32>, vector<8x8xf32> -> vector<8x8xf32>
    %cst_74 = arith.constant -1.000000e+30 : f32
    %146 = vector.broadcast %cst_74 : f32 to vector<8x8xf32>
    %147 = arith.select %10, %145, %146 : vector<8x8xi1>, vector<8x8xf32>
    %cst_75 = arith.constant dense<0xFF800000> : vector<8xf32>
    %148 = vector.multi_reduction <maximumf>, %147, %cst_75 [1] : vector<8x8xf32> to vector<8xf32>
    %149 = vector.shape_cast %148 : vector<8xf32> to vector<8x1xf32>
    %150 = vector.broadcast %149 : vector<8x1xf32> to vector<8x8xf32>
    %151 = arith.subf %147, %150 : vector<8x8xf32>
    %152 = math.exp %151 : vector<8x8xf32>
    %cst_76 = arith.constant dense<0.000000e+00> : vector<8xf32>
    %153 = vector.multi_reduction <add>, %152, %cst_76 [1] : vector<8x8xf32> to vector<8xf32>
    %154 = vector.shape_cast %153 : vector<8xf32> to vector<8x1xf32>
    %155 = tpu.reciprocal %154 {approx = true} : vector<8x1xf32> -> vector<8x1xf32>
    %cst_77 = arith.constant dense<0.000000e+00> : vector<8x8xf32>
    %156 = tpu.matmul %152, %144, %cst_77 {dimension_numbers = #tpu.dot_dimension_numbers<[1], [0], [0], [1], [0, 0, 1, 1], [], []>} : vector<8x8xf32>, vector<8x8xf32>, vector<8x8xf32> -> vector<8x8xf32>
    %157 = vector.broadcast %155 : vector<8x1xf32> to vector<8x8xf32>
    %158 = arith.mulf %156, %157 : vector<8x8xf32>
    %159 = vector.extract_strided_slice %20 {offsets = [0, 0], sizes = [8, 32], strides = [1, 1]} : vector<32x32xf32> to vector<8x32xf32>
    %cst_78 = arith.constant dense<0.000000e+00> : vector<8x32xf32>
    %160 = tpu.matmul %158, %159, %cst_78 {dimension_numbers = #tpu.dot_dimension_numbers<[1], [0], [0], [1], [0, 0, 1, 1], [], []>} : vector<8x8xf32>, vector<8x32xf32>, vector<8x32xf32> -> vector<8x32xf32>
    %161 = arith.addf %141, %160 : vector<8x32xf32>
    %162 = vector.extract_strided_slice %59 {offsets = [8, 8], sizes = [8, 8], strides = [1, 1]} : vector<16x96xf32> to vector<8x8xf32>
    %163 = vector.extract_strided_slice %59 {offsets = [8, 40], sizes = [8, 8], strides = [1, 1]} : vector<16x96xf32> to vector<8x8xf32>
    %164 = vector.extract_strided_slice %59 {offsets = [8, 72], sizes = [8, 8], strides = [1, 1]} : vector<16x96xf32> to vector<8x8xf32>
    %cst_79 = arith.constant dense<0.000000e+00> : vector<8x8xf32>
    %165 = tpu.matmul %162, %163, %cst_79 {dimension_numbers = #tpu.dot_dimension_numbers<[1], [1], [0], [0], [0, 0, 1, 0], [], []>} : vector<8x8xf32>, vector<8x8xf32>, vector<8x8xf32> -> vector<8x8xf32>
    %cst_80 = arith.constant -1.000000e+30 : f32
    %166 = vector.broadcast %cst_80 : f32 to vector<8x8xf32>
    %167 = arith.select %10, %165, %166 : vector<8x8xi1>, vector<8x8xf32>
    %cst_81 = arith.constant dense<0xFF800000> : vector<8xf32>
    %168 = vector.multi_reduction <maximumf>, %167, %cst_81 [1] : vector<8x8xf32> to vector<8xf32>
    %169 = vector.shape_cast %168 : vector<8xf32> to vector<8x1xf32>
    %170 = vector.broadcast %169 : vector<8x1xf32> to vector<8x8xf32>
    %171 = arith.subf %167, %170 : vector<8x8xf32>
    %172 = math.exp %171 : vector<8x8xf32>
    %cst_82 = arith.constant dense<0.000000e+00> : vector<8xf32>
    %173 = vector.multi_reduction <add>, %172, %cst_82 [1] : vector<8x8xf32> to vector<8xf32>
    %174 = vector.shape_cast %173 : vector<8xf32> to vector<8x1xf32>
    %175 = tpu.reciprocal %174 {approx = true} : vector<8x1xf32> -> vector<8x1xf32>
    %cst_83 = arith.constant dense<0.000000e+00> : vector<8x8xf32>
    %176 = tpu.matmul %172, %164, %cst_83 {dimension_numbers = #tpu.dot_dimension_numbers<[1], [0], [0], [1], [0, 0, 1, 1], [], []>} : vector<8x8xf32>, vector<8x8xf32>, vector<8x8xf32> -> vector<8x8xf32>
    %177 = vector.broadcast %175 : vector<8x1xf32> to vector<8x8xf32>
    %178 = arith.mulf %176, %177 : vector<8x8xf32>
    %179 = vector.extract_strided_slice %20 {offsets = [8, 0], sizes = [8, 32], strides = [1, 1]} : vector<32x32xf32> to vector<8x32xf32>
    %cst_84 = arith.constant dense<0.000000e+00> : vector<8x32xf32>
    %180 = tpu.matmul %178, %179, %cst_84 {dimension_numbers = #tpu.dot_dimension_numbers<[1], [0], [0], [1], [0, 0, 1, 1], [], []>} : vector<8x8xf32>, vector<8x32xf32>, vector<8x32xf32> -> vector<8x32xf32>
    %181 = arith.addf %161, %180 : vector<8x32xf32>
    %182 = vector.extract_strided_slice %59 {offsets = [8, 16], sizes = [8, 8], strides = [1, 1]} : vector<16x96xf32> to vector<8x8xf32>
    %183 = vector.extract_strided_slice %59 {offsets = [8, 48], sizes = [8, 8], strides = [1, 1]} : vector<16x96xf32> to vector<8x8xf32>
    %184 = vector.extract_strided_slice %59 {offsets = [8, 80], sizes = [8, 8], strides = [1, 1]} : vector<16x96xf32> to vector<8x8xf32>
    %cst_85 = arith.constant dense<0.000000e+00> : vector<8x8xf32>
    %185 = tpu.matmul %182, %183, %cst_85 {dimension_numbers = #tpu.dot_dimension_numbers<[1], [1], [0], [0], [0, 0, 1, 0], [], []>} : vector<8x8xf32>, vector<8x8xf32>, vector<8x8xf32> -> vector<8x8xf32>
    %cst_86 = arith.constant -1.000000e+30 : f32
    %186 = vector.broadcast %cst_86 : f32 to vector<8x8xf32>
    %187 = arith.select %10, %185, %186 : vector<8x8xi1>, vector<8x8xf32>
    %cst_87 = arith.constant dense<0xFF800000> : vector<8xf32>
    %188 = vector.multi_reduction <maximumf>, %187, %cst_87 [1] : vector<8x8xf32> to vector<8xf32>
    %189 = vector.shape_cast %188 : vector<8xf32> to vector<8x1xf32>
    %190 = vector.broadcast %189 : vector<8x1xf32> to vector<8x8xf32>
    %191 = arith.subf %187, %190 : vector<8x8xf32>
    %192 = math.exp %191 : vector<8x8xf32>
    %cst_88 = arith.constant dense<0.000000e+00> : vector<8xf32>
    %193 = vector.multi_reduction <add>, %192, %cst_88 [1] : vector<8x8xf32> to vector<8xf32>
    %194 = vector.shape_cast %193 : vector<8xf32> to vector<8x1xf32>
    %195 = tpu.reciprocal %194 {approx = true} : vector<8x1xf32> -> vector<8x1xf32>
    %cst_89 = arith.constant dense<0.000000e+00> : vector<8x8xf32>
    %196 = tpu.matmul %192, %184, %cst_89 {dimension_numbers = #tpu.dot_dimension_numbers<[1], [0], [0], [1], [0, 0, 1, 1], [], []>} : vector<8x8xf32>, vector<8x8xf32>, vector<8x8xf32> -> vector<8x8xf32>
    %197 = vector.broadcast %195 : vector<8x1xf32> to vector<8x8xf32>
    %198 = arith.mulf %196, %197 : vector<8x8xf32>
    %199 = vector.extract_strided_slice %20 {offsets = [16, 0], sizes = [8, 32], strides = [1, 1]} : vector<32x32xf32> to vector<8x32xf32>
    %cst_90 = arith.constant dense<0.000000e+00> : vector<8x32xf32>
    %200 = tpu.matmul %198, %199, %cst_90 {dimension_numbers = #tpu.dot_dimension_numbers<[1], [0], [0], [1], [0, 0, 1, 1], [], []>} : vector<8x8xf32>, vector<8x32xf32>, vector<8x32xf32> -> vector<8x32xf32>
    %201 = arith.addf %181, %200 : vector<8x32xf32>
    %202 = vector.extract_strided_slice %59 {offsets = [8, 24], sizes = [8, 8], strides = [1, 1]} : vector<16x96xf32> to vector<8x8xf32>
    %203 = vector.extract_strided_slice %59 {offsets = [8, 56], sizes = [8, 8], strides = [1, 1]} : vector<16x96xf32> to vector<8x8xf32>
    %204 = vector.extract_strided_slice %59 {offsets = [8, 88], sizes = [8, 8], strides = [1, 1]} : vector<16x96xf32> to vector<8x8xf32>
    %cst_91 = arith.constant dense<0.000000e+00> : vector<8x8xf32>
    %205 = tpu.matmul %202, %203, %cst_91 {dimension_numbers = #tpu.dot_dimension_numbers<[1], [1], [0], [0], [0, 0, 1, 0], [], []>} : vector<8x8xf32>, vector<8x8xf32>, vector<8x8xf32> -> vector<8x8xf32>
    %cst_92 = arith.constant -1.000000e+30 : f32
    %206 = vector.broadcast %cst_92 : f32 to vector<8x8xf32>
    %207 = arith.select %10, %205, %206 : vector<8x8xi1>, vector<8x8xf32>
    %cst_93 = arith.constant dense<0xFF800000> : vector<8xf32>
    %208 = vector.multi_reduction <maximumf>, %207, %cst_93 [1] : vector<8x8xf32> to vector<8xf32>
    %209 = vector.shape_cast %208 : vector<8xf32> to vector<8x1xf32>
    %210 = vector.broadcast %209 : vector<8x1xf32> to vector<8x8xf32>
    %211 = arith.subf %207, %210 : vector<8x8xf32>
    %212 = math.exp %211 : vector<8x8xf32>
    %cst_94 = arith.constant dense<0.000000e+00> : vector<8xf32>
    %213 = vector.multi_reduction <add>, %212, %cst_94 [1] : vector<8x8xf32> to vector<8xf32>
    %214 = vector.shape_cast %213 : vector<8xf32> to vector<8x1xf32>
    %215 = tpu.reciprocal %214 {approx = true} : vector<8x1xf32> -> vector<8x1xf32>
    %cst_95 = arith.constant dense<0.000000e+00> : vector<8x8xf32>
    %216 = tpu.matmul %212, %204, %cst_95 {dimension_numbers = #tpu.dot_dimension_numbers<[1], [0], [0], [1], [0, 0, 1, 1], [], []>} : vector<8x8xf32>, vector<8x8xf32>, vector<8x8xf32> -> vector<8x8xf32>
    %217 = vector.broadcast %215 : vector<8x1xf32> to vector<8x8xf32>
    %218 = arith.mulf %216, %217 : vector<8x8xf32>
    %219 = vector.extract_strided_slice %20 {offsets = [24, 0], sizes = [8, 32], strides = [1, 1]} : vector<32x32xf32> to vector<8x32xf32>
    %cst_96 = arith.constant dense<0.000000e+00> : vector<8x32xf32>
    %220 = tpu.matmul %218, %219, %cst_96 {dimension_numbers = #tpu.dot_dimension_numbers<[1], [0], [0], [1], [0, 0, 1, 1], [], []>} : vector<8x8xf32>, vector<8x32xf32>, vector<8x32xf32> -> vector<8x32xf32>
    %221 = arith.addf %201, %220 : vector<8x32xf32>
    %222 = tpu.concatenate %140, %221 in 0 : vector<8x32xf32>, vector<8x32xf32> -> vector<16x32xf32>
    %223 = arith.addf %7, %222 : vector<16x32xf32>
    %224 = vector.broadcast %22 : vector<1x32xf32> to vector<16x32xf32>
    %225 = arith.addf %223, %224 : vector<16x32xf32>
    %cst_97 = arith.constant dense<0.000000e+00> : vector<16xf32>
    %226 = vector.multi_reduction <add>, %225, %cst_97 [1] : vector<16x32xf32> to vector<16xf32>
    %227 = vector.shape_cast %226 : vector<16xf32> to vector<16x1xf32>
    %cst_98 = arith.constant 3.200000e+01 : f32
    %228 = vector.broadcast %cst_98 : f32 to vector<16x1xf32>
    %229 = arith.divf %227, %228 : vector<16x1xf32>
    %230 = vector.broadcast %229 : vector<16x1xf32> to vector<16x32xf32>
    %231 = arith.subf %225, %230 : vector<16x32xf32>
    %232 = arith.mulf %231, %231 : vector<16x32xf32>
    %cst_99 = arith.constant dense<0.000000e+00> : vector<16xf32>
    %233 = vector.multi_reduction <add>, %232, %cst_99 [1] : vector<16x32xf32> to vector<16xf32>
    %234 = vector.shape_cast %233 : vector<16xf32> to vector<16x1xf32>
    %cst_100 = arith.constant 3.200000e+01 : f32
    %235 = vector.broadcast %cst_100 : f32 to vector<16x1xf32>
    %236 = arith.divf %234, %235 : vector<16x1xf32>
    %237 = vector.broadcast %229 : vector<16x1xf32> to vector<16x32xf32>
    %238 = arith.subf %225, %237 : vector<16x32xf32>
    %cst_101 = arith.constant 9.99999974E-6 : f32
    %239 = vector.broadcast %cst_101 : f32 to vector<16x1xf32>
    %240 = arith.addf %236, %239 : vector<16x1xf32>
    %241 = math.rsqrt %240 : vector<16x1xf32>
    %242 = vector.broadcast %241 : vector<16x1xf32> to vector<16x32xf32>
    %243 = arith.mulf %238, %242 : vector<16x32xf32>
    %244 = vector.broadcast %24 : vector<1x32xf32> to vector<16x32xf32>
    %245 = arith.mulf %243, %244 : vector<16x32xf32>
    %246 = vector.broadcast %26 : vector<1x32xf32> to vector<16x32xf32>
    %247 = arith.addf %245, %246 : vector<16x32xf32>
    %cst_102 = arith.constant dense<0.000000e+00> : vector<16x128xf32>
    %248 = tpu.matmul %247, %28, %cst_102 {dimension_numbers = #tpu.dot_dimension_numbers<[1], [0], [0], [1], [0, 0, 1, 1], [], []>} : vector<16x32xf32>, vector<32x128xf32>, vector<16x128xf32> -> vector<16x128xf32>
    %249 = vector.broadcast %30 : vector<1x128xf32> to vector<16x128xf32>
    %250 = arith.addf %248, %249 : vector<16x128xf32>
    %cst_103 = arith.constant 5.000000e-01 : f32
    %251 = vector.broadcast %cst_103 : f32 to vector<16x128xf32>
    %252 = arith.mulf %251, %250 : vector<16x128xf32>
    %cst_104 = arith.constant 4.471500e-02 : f32
    %253 = vector.broadcast %cst_104 : f32 to vector<16x128xf32>
    %254 = arith.mulf %253, %250 : vector<16x128xf32>
    %255 = arith.mulf %254, %250 : vector<16x128xf32>
    %256 = arith.mulf %255, %250 : vector<16x128xf32>
    %257 = arith.addf %250, %256 : vector<16x128xf32>
    %cst_105 = arith.constant 0.797884583 : f32
    %258 = vector.broadcast %cst_105 : f32 to vector<16x128xf32>
    %259 = arith.mulf %258, %257 : vector<16x128xf32>
    %260 = math.tanh %259 : vector<16x128xf32>
    %cst_106 = arith.constant 1.000000e+00 : f32
    %261 = vector.broadcast %cst_106 : f32 to vector<16x128xf32>
    %262 = arith.addf %261, %260 : vector<16x128xf32>
    %263 = arith.mulf %252, %262 : vector<16x128xf32>
    %cst_107 = arith.constant dense<0.000000e+00> : vector<16x32xf32>
    %264 = tpu.matmul %263, %32, %cst_107 {dimension_numbers = #tpu.dot_dimension_numbers<[1], [0], [0], [1], [0, 0, 1, 1], [], []>} : vector<16x128xf32>, vector<128x32xf32>, vector<16x32xf32> -> vector<16x32xf32>
    %265 = arith.addf %225, %264 : vector<16x32xf32>
    %266 = vector.broadcast %34 : vector<1x32xf32> to vector<16x32xf32>
    %267 = arith.addf %265, %266 : vector<16x32xf32>
    %c1_108 = arith.constant 1 : index
    %c0_109 = arith.constant 0 : index
    %c0_110 = arith.constant 0 : index
    %268 = vector.load %arg3[%c1_108, %c0_109, %c0_110] : memref<2x1x32xf32, #tpu.memory_space<vmem>>, vector<1x1x32xf32>
    %269 = vector.shape_cast %268 : vector<1x1x32xf32> to vector<1x32xf32>
    %c1_111 = arith.constant 1 : index
    %c0_112 = arith.constant 0 : index
    %c0_113 = arith.constant 0 : index
    %270 = vector.load %arg4[%c1_111, %c0_112, %c0_113] : memref<2x1x32xf32, #tpu.memory_space<vmem>>, vector<1x1x32xf32>
    %271 = vector.shape_cast %270 : vector<1x1x32xf32> to vector<1x32xf32>
    %c1_114 = arith.constant 1 : index
    %c0_115 = arith.constant 0 : index
    %c0_116 = arith.constant 0 : index
    %272 = vector.load %arg5[%c1_114, %c0_115, %c0_116] : memref<2x32x96xf32, #tpu.memory_space<vmem>>, vector<1x32x96xf32>
    %273 = vector.shape_cast %272 : vector<1x32x96xf32> to vector<32x96xf32>
    %c1_117 = arith.constant 1 : index
    %c0_118 = arith.constant 0 : index
    %c0_119 = arith.constant 0 : index
    %274 = vector.load %arg6[%c1_117, %c0_118, %c0_119] : memref<2x1x96xf32, #tpu.memory_space<vmem>>, vector<1x1x96xf32>
    %275 = vector.shape_cast %274 : vector<1x1x96xf32> to vector<1x96xf32>
    %c1_120 = arith.constant 1 : index
    %c0_121 = arith.constant 0 : index
    %c0_122 = arith.constant 0 : index
    %276 = vector.load %arg7[%c1_120, %c0_121, %c0_122] : memref<2x32x32xf32, #tpu.memory_space<vmem>>, vector<1x32x32xf32>
    %277 = vector.shape_cast %276 : vector<1x32x32xf32> to vector<32x32xf32>
    %c1_123 = arith.constant 1 : index
    %c0_124 = arith.constant 0 : index
    %c0_125 = arith.constant 0 : index
    %278 = vector.load %arg8[%c1_123, %c0_124, %c0_125] : memref<2x1x32xf32, #tpu.memory_space<vmem>>, vector<1x1x32xf32>
    %279 = vector.shape_cast %278 : vector<1x1x32xf32> to vector<1x32xf32>
    %c1_126 = arith.constant 1 : index
    %c0_127 = arith.constant 0 : index
    %c0_128 = arith.constant 0 : index
    %280 = vector.load %arg9[%c1_126, %c0_127, %c0_128] : memref<2x1x32xf32, #tpu.memory_space<vmem>>, vector<1x1x32xf32>
    %281 = vector.shape_cast %280 : vector<1x1x32xf32> to vector<1x32xf32>
    %c1_129 = arith.constant 1 : index
    %c0_130 = arith.constant 0 : index
    %c0_131 = arith.constant 0 : index
    %282 = vector.load %arg10[%c1_129, %c0_130, %c0_131] : memref<2x1x32xf32, #tpu.memory_space<vmem>>, vector<1x1x32xf32>
    %283 = vector.shape_cast %282 : vector<1x1x32xf32> to vector<1x32xf32>
    %c1_132 = arith.constant 1 : index
    %c0_133 = arith.constant 0 : index
    %c0_134 = arith.constant 0 : index
    %284 = vector.load %arg11[%c1_132, %c0_133, %c0_134] : memref<2x32x128xf32, #tpu.memory_space<vmem>>, vector<1x32x128xf32>
    %285 = vector.shape_cast %284 : vector<1x32x128xf32> to vector<32x128xf32>
    %c1_135 = arith.constant 1 : index
    %c0_136 = arith.constant 0 : index
    %c0_137 = arith.constant 0 : index
    %286 = vector.load %arg12[%c1_135, %c0_136, %c0_137] : memref<2x1x128xf32, #tpu.memory_space<vmem>>, vector<1x1x128xf32>
    %287 = vector.shape_cast %286 : vector<1x1x128xf32> to vector<1x128xf32>
    %c1_138 = arith.constant 1 : index
    %c0_139 = arith.constant 0 : index
    %c0_140 = arith.constant 0 : index
    %288 = vector.load %arg13[%c1_138, %c0_139, %c0_140] : memref<2x128x32xf32, #tpu.memory_space<vmem>>, vector<1x128x32xf32>
    %289 = vector.shape_cast %288 : vector<1x128x32xf32> to vector<128x32xf32>
    %c1_141 = arith.constant 1 : index
    %c0_142 = arith.constant 0 : index
    %c0_143 = arith.constant 0 : index
    %290 = vector.load %arg14[%c1_141, %c0_142, %c0_143] : memref<2x1x32xf32, #tpu.memory_space<vmem>>, vector<1x1x32xf32>
    %291 = vector.shape_cast %290 : vector<1x1x32xf32> to vector<1x32xf32>
    %cst_144 = arith.constant dense<0.000000e+00> : vector<16xf32>
    %292 = vector.multi_reduction <add>, %267, %cst_144 [1] : vector<16x32xf32> to vector<16xf32>
    %293 = vector.shape_cast %292 : vector<16xf32> to vector<16x1xf32>
    %cst_145 = arith.constant 3.200000e+01 : f32
    %294 = vector.broadcast %cst_145 : f32 to vector<16x1xf32>
    %295 = arith.divf %293, %294 : vector<16x1xf32>
    %296 = vector.broadcast %295 : vector<16x1xf32> to vector<16x32xf32>
    %297 = arith.subf %267, %296 : vector<16x32xf32>
    %298 = arith.mulf %297, %297 : vector<16x32xf32>
    %cst_146 = arith.constant dense<0.000000e+00> : vector<16xf32>
    %299 = vector.multi_reduction <add>, %298, %cst_146 [1] : vector<16x32xf32> to vector<16xf32>
    %300 = vector.shape_cast %299 : vector<16xf32> to vector<16x1xf32>
    %cst_147 = arith.constant 3.200000e+01 : f32
    %301 = vector.broadcast %cst_147 : f32 to vector<16x1xf32>
    %302 = arith.divf %300, %301 : vector<16x1xf32>
    %303 = vector.broadcast %295 : vector<16x1xf32> to vector<16x32xf32>
    %304 = arith.subf %267, %303 : vector<16x32xf32>
    %cst_148 = arith.constant 9.99999974E-6 : f32
    %305 = vector.broadcast %cst_148 : f32 to vector<16x1xf32>
    %306 = arith.addf %302, %305 : vector<16x1xf32>
    %307 = math.rsqrt %306 : vector<16x1xf32>
    %308 = vector.broadcast %307 : vector<16x1xf32> to vector<16x32xf32>
    %309 = arith.mulf %304, %308 : vector<16x32xf32>
    %310 = vector.broadcast %269 : vector<1x32xf32> to vector<16x32xf32>
    %311 = arith.mulf %309, %310 : vector<16x32xf32>
    %312 = vector.broadcast %271 : vector<1x32xf32> to vector<16x32xf32>
    %313 = arith.addf %311, %312 : vector<16x32xf32>
    %cst_149 = arith.constant dense<0.000000e+00> : vector<16x96xf32>
    %314 = tpu.matmul %313, %273, %cst_149 {dimension_numbers = #tpu.dot_dimension_numbers<[1], [0], [0], [1], [0, 0, 1, 1], [], []>} : vector<16x32xf32>, vector<32x96xf32>, vector<16x96xf32> -> vector<16x96xf32>
    %315 = vector.broadcast %275 : vector<1x96xf32> to vector<16x96xf32>
    %316 = arith.addf %314, %315 : vector<16x96xf32>
    %cst_150 = arith.constant 0.000000e+00 : f32
    %317 = vector.broadcast %cst_150 : f32 to vector<8x32xf32>
    %318 = vector.extract_strided_slice %316 {offsets = [0, 0], sizes = [8, 8], strides = [1, 1]} : vector<16x96xf32> to vector<8x8xf32>
    %319 = vector.extract_strided_slice %316 {offsets = [0, 32], sizes = [8, 8], strides = [1, 1]} : vector<16x96xf32> to vector<8x8xf32>
    %320 = vector.extract_strided_slice %316 {offsets = [0, 64], sizes = [8, 8], strides = [1, 1]} : vector<16x96xf32> to vector<8x8xf32>
    %cst_151 = arith.constant dense<0.000000e+00> : vector<8x8xf32>
    %321 = tpu.matmul %318, %319, %cst_151 {dimension_numbers = #tpu.dot_dimension_numbers<[1], [1], [0], [0], [0, 0, 1, 0], [], []>} : vector<8x8xf32>, vector<8x8xf32>, vector<8x8xf32> -> vector<8x8xf32>
    %cst_152 = arith.constant -1.000000e+30 : f32
    %322 = vector.broadcast %cst_152 : f32 to vector<8x8xf32>
    %323 = arith.select %10, %321, %322 : vector<8x8xi1>, vector<8x8xf32>
    %cst_153 = arith.constant dense<0xFF800000> : vector<8xf32>
    %324 = vector.multi_reduction <maximumf>, %323, %cst_153 [1] : vector<8x8xf32> to vector<8xf32>
    %325 = vector.shape_cast %324 : vector<8xf32> to vector<8x1xf32>
    %326 = vector.broadcast %325 : vector<8x1xf32> to vector<8x8xf32>
    %327 = arith.subf %323, %326 : vector<8x8xf32>
    %328 = math.exp %327 : vector<8x8xf32>
    %cst_154 = arith.constant dense<0.000000e+00> : vector<8xf32>
    %329 = vector.multi_reduction <add>, %328, %cst_154 [1] : vector<8x8xf32> to vector<8xf32>
    %330 = vector.shape_cast %329 : vector<8xf32> to vector<8x1xf32>
    %331 = tpu.reciprocal %330 {approx = true} : vector<8x1xf32> -> vector<8x1xf32>
    %cst_155 = arith.constant dense<0.000000e+00> : vector<8x8xf32>
    %332 = tpu.matmul %328, %320, %cst_155 {dimension_numbers = #tpu.dot_dimension_numbers<[1], [0], [0], [1], [0, 0, 1, 1], [], []>} : vector<8x8xf32>, vector<8x8xf32>, vector<8x8xf32> -> vector<8x8xf32>
    %333 = vector.broadcast %331 : vector<8x1xf32> to vector<8x8xf32>
    %334 = arith.mulf %332, %333 : vector<8x8xf32>
    %335 = vector.extract_strided_slice %277 {offsets = [0, 0], sizes = [8, 32], strides = [1, 1]} : vector<32x32xf32> to vector<8x32xf32>
    %cst_156 = arith.constant dense<0.000000e+00> : vector<8x32xf32>
    %336 = tpu.matmul %334, %335, %cst_156 {dimension_numbers = #tpu.dot_dimension_numbers<[1], [0], [0], [1], [0, 0, 1, 1], [], []>} : vector<8x8xf32>, vector<8x32xf32>, vector<8x32xf32> -> vector<8x32xf32>
    %337 = arith.addf %317, %336 : vector<8x32xf32>
    %338 = vector.extract_strided_slice %316 {offsets = [0, 8], sizes = [8, 8], strides = [1, 1]} : vector<16x96xf32> to vector<8x8xf32>
    %339 = vector.extract_strided_slice %316 {offsets = [0, 40], sizes = [8, 8], strides = [1, 1]} : vector<16x96xf32> to vector<8x8xf32>
    %340 = vector.extract_strided_slice %316 {offsets = [0, 72], sizes = [8, 8], strides = [1, 1]} : vector<16x96xf32> to vector<8x8xf32>
    %cst_157 = arith.constant dense<0.000000e+00> : vector<8x8xf32>
    %341 = tpu.matmul %338, %339, %cst_157 {dimension_numbers = #tpu.dot_dimension_numbers<[1], [1], [0], [0], [0, 0, 1, 0], [], []>} : vector<8x8xf32>, vector<8x8xf32>, vector<8x8xf32> -> vector<8x8xf32>
    %cst_158 = arith.constant -1.000000e+30 : f32
    %342 = vector.broadcast %cst_158 : f32 to vector<8x8xf32>
    %343 = arith.select %10, %341, %342 : vector<8x8xi1>, vector<8x8xf32>
    %cst_159 = arith.constant dense<0xFF800000> : vector<8xf32>
    %344 = vector.multi_reduction <maximumf>, %343, %cst_159 [1] : vector<8x8xf32> to vector<8xf32>
    %345 = vector.shape_cast %344 : vector<8xf32> to vector<8x1xf32>
    %346 = vector.broadcast %345 : vector<8x1xf32> to vector<8x8xf32>
    %347 = arith.subf %343, %346 : vector<8x8xf32>
    %348 = math.exp %347 : vector<8x8xf32>
    %cst_160 = arith.constant dense<0.000000e+00> : vector<8xf32>
    %349 = vector.multi_reduction <add>, %348, %cst_160 [1] : vector<8x8xf32> to vector<8xf32>
    %350 = vector.shape_cast %349 : vector<8xf32> to vector<8x1xf32>
    %351 = tpu.reciprocal %350 {approx = true} : vector<8x1xf32> -> vector<8x1xf32>
    %cst_161 = arith.constant dense<0.000000e+00> : vector<8x8xf32>
    %352 = tpu.matmul %348, %340, %cst_161 {dimension_numbers = #tpu.dot_dimension_numbers<[1], [0], [0], [1], [0, 0, 1, 1], [], []>} : vector<8x8xf32>, vector<8x8xf32>, vector<8x8xf32> -> vector<8x8xf32>
    %353 = vector.broadcast %351 : vector<8x1xf32> to vector<8x8xf32>
    %354 = arith.mulf %352, %353 : vector<8x8xf32>
    %355 = vector.extract_strided_slice %277 {offsets = [8, 0], sizes = [8, 32], strides = [1, 1]} : vector<32x32xf32> to vector<8x32xf32>
    %cst_162 = arith.constant dense<0.000000e+00> : vector<8x32xf32>
    %356 = tpu.matmul %354, %355, %cst_162 {dimension_numbers = #tpu.dot_dimension_numbers<[1], [0], [0], [1], [0, 0, 1, 1], [], []>} : vector<8x8xf32>, vector<8x32xf32>, vector<8x32xf32> -> vector<8x32xf32>
    %357 = arith.addf %337, %356 : vector<8x32xf32>
    %358 = vector.extract_strided_slice %316 {offsets = [0, 16], sizes = [8, 8], strides = [1, 1]} : vector<16x96xf32> to vector<8x8xf32>
    %359 = vector.extract_strided_slice %316 {offsets = [0, 48], sizes = [8, 8], strides = [1, 1]} : vector<16x96xf32> to vector<8x8xf32>
    %360 = vector.extract_strided_slice %316 {offsets = [0, 80], sizes = [8, 8], strides = [1, 1]} : vector<16x96xf32> to vector<8x8xf32>
    %cst_163 = arith.constant dense<0.000000e+00> : vector<8x8xf32>
    %361 = tpu.matmul %358, %359, %cst_163 {dimension_numbers = #tpu.dot_dimension_numbers<[1], [1], [0], [0], [0, 0, 1, 0], [], []>} : vector<8x8xf32>, vector<8x8xf32>, vector<8x8xf32> -> vector<8x8xf32>
    %cst_164 = arith.constant -1.000000e+30 : f32
    %362 = vector.broadcast %cst_164 : f32 to vector<8x8xf32>
    %363 = arith.select %10, %361, %362 : vector<8x8xi1>, vector<8x8xf32>
    %cst_165 = arith.constant dense<0xFF800000> : vector<8xf32>
    %364 = vector.multi_reduction <maximumf>, %363, %cst_165 [1] : vector<8x8xf32> to vector<8xf32>
    %365 = vector.shape_cast %364 : vector<8xf32> to vector<8x1xf32>
    %366 = vector.broadcast %365 : vector<8x1xf32> to vector<8x8xf32>
    %367 = arith.subf %363, %366 : vector<8x8xf32>
    %368 = math.exp %367 : vector<8x8xf32>
    %cst_166 = arith.constant dense<0.000000e+00> : vector<8xf32>
    %369 = vector.multi_reduction <add>, %368, %cst_166 [1] : vector<8x8xf32> to vector<8xf32>
    %370 = vector.shape_cast %369 : vector<8xf32> to vector<8x1xf32>
    %371 = tpu.reciprocal %370 {approx = true} : vector<8x1xf32> -> vector<8x1xf32>
    %cst_167 = arith.constant dense<0.000000e+00> : vector<8x8xf32>
    %372 = tpu.matmul %368, %360, %cst_167 {dimension_numbers = #tpu.dot_dimension_numbers<[1], [0], [0], [1], [0, 0, 1, 1], [], []>} : vector<8x8xf32>, vector<8x8xf32>, vector<8x8xf32> -> vector<8x8xf32>
    %373 = vector.broadcast %371 : vector<8x1xf32> to vector<8x8xf32>
    %374 = arith.mulf %372, %373 : vector<8x8xf32>
    %375 = vector.extract_strided_slice %277 {offsets = [16, 0], sizes = [8, 32], strides = [1, 1]} : vector<32x32xf32> to vector<8x32xf32>
    %cst_168 = arith.constant dense<0.000000e+00> : vector<8x32xf32>
    %376 = tpu.matmul %374, %375, %cst_168 {dimension_numbers = #tpu.dot_dimension_numbers<[1], [0], [0], [1], [0, 0, 1, 1], [], []>} : vector<8x8xf32>, vector<8x32xf32>, vector<8x32xf32> -> vector<8x32xf32>
    %377 = arith.addf %357, %376 : vector<8x32xf32>
    %378 = vector.extract_strided_slice %316 {offsets = [0, 24], sizes = [8, 8], strides = [1, 1]} : vector<16x96xf32> to vector<8x8xf32>
    %379 = vector.extract_strided_slice %316 {offsets = [0, 56], sizes = [8, 8], strides = [1, 1]} : vector<16x96xf32> to vector<8x8xf32>
    %380 = vector.extract_strided_slice %316 {offsets = [0, 88], sizes = [8, 8], strides = [1, 1]} : vector<16x96xf32> to vector<8x8xf32>
    %cst_169 = arith.constant dense<0.000000e+00> : vector<8x8xf32>
    %381 = tpu.matmul %378, %379, %cst_169 {dimension_numbers = #tpu.dot_dimension_numbers<[1], [1], [0], [0], [0, 0, 1, 0], [], []>} : vector<8x8xf32>, vector<8x8xf32>, vector<8x8xf32> -> vector<8x8xf32>
    %cst_170 = arith.constant -1.000000e+30 : f32
    %382 = vector.broadcast %cst_170 : f32 to vector<8x8xf32>
    %383 = arith.select %10, %381, %382 : vector<8x8xi1>, vector<8x8xf32>
    %cst_171 = arith.constant dense<0xFF800000> : vector<8xf32>
    %384 = vector.multi_reduction <maximumf>, %383, %cst_171 [1] : vector<8x8xf32> to vector<8xf32>
    %385 = vector.shape_cast %384 : vector<8xf32> to vector<8x1xf32>
    %386 = vector.broadcast %385 : vector<8x1xf32> to vector<8x8xf32>
    %387 = arith.subf %383, %386 : vector<8x8xf32>
    %388 = math.exp %387 : vector<8x8xf32>
    %cst_172 = arith.constant dense<0.000000e+00> : vector<8xf32>
    %389 = vector.multi_reduction <add>, %388, %cst_172 [1] : vector<8x8xf32> to vector<8xf32>
    %390 = vector.shape_cast %389 : vector<8xf32> to vector<8x1xf32>
    %391 = tpu.reciprocal %390 {approx = true} : vector<8x1xf32> -> vector<8x1xf32>
    %cst_173 = arith.constant dense<0.000000e+00> : vector<8x8xf32>
    %392 = tpu.matmul %388, %380, %cst_173 {dimension_numbers = #tpu.dot_dimension_numbers<[1], [0], [0], [1], [0, 0, 1, 1], [], []>} : vector<8x8xf32>, vector<8x8xf32>, vector<8x8xf32> -> vector<8x8xf32>
    %393 = vector.broadcast %391 : vector<8x1xf32> to vector<8x8xf32>
    %394 = arith.mulf %392, %393 : vector<8x8xf32>
    %395 = vector.extract_strided_slice %277 {offsets = [24, 0], sizes = [8, 32], strides = [1, 1]} : vector<32x32xf32> to vector<8x32xf32>
    %cst_174 = arith.constant dense<0.000000e+00> : vector<8x32xf32>
    %396 = tpu.matmul %394, %395, %cst_174 {dimension_numbers = #tpu.dot_dimension_numbers<[1], [0], [0], [1], [0, 0, 1, 1], [], []>} : vector<8x8xf32>, vector<8x32xf32>, vector<8x32xf32> -> vector<8x32xf32>
    %397 = arith.addf %377, %396 : vector<8x32xf32>
    %cst_175 = arith.constant 0.000000e+00 : f32
    %398 = vector.broadcast %cst_175 : f32 to vector<8x32xf32>
    %399 = vector.extract_strided_slice %316 {offsets = [8, 0], sizes = [8, 8], strides = [1, 1]} : vector<16x96xf32> to vector<8x8xf32>
    %400 = vector.extract_strided_slice %316 {offsets = [8, 32], sizes = [8, 8], strides = [1, 1]} : vector<16x96xf32> to vector<8x8xf32>
    %401 = vector.extract_strided_slice %316 {offsets = [8, 64], sizes = [8, 8], strides = [1, 1]} : vector<16x96xf32> to vector<8x8xf32>
    %cst_176 = arith.constant dense<0.000000e+00> : vector<8x8xf32>
    %402 = tpu.matmul %399, %400, %cst_176 {dimension_numbers = #tpu.dot_dimension_numbers<[1], [1], [0], [0], [0, 0, 1, 0], [], []>} : vector<8x8xf32>, vector<8x8xf32>, vector<8x8xf32> -> vector<8x8xf32>
    %cst_177 = arith.constant -1.000000e+30 : f32
    %403 = vector.broadcast %cst_177 : f32 to vector<8x8xf32>
    %404 = arith.select %10, %402, %403 : vector<8x8xi1>, vector<8x8xf32>
    %cst_178 = arith.constant dense<0xFF800000> : vector<8xf32>
    %405 = vector.multi_reduction <maximumf>, %404, %cst_178 [1] : vector<8x8xf32> to vector<8xf32>
    %406 = vector.shape_cast %405 : vector<8xf32> to vector<8x1xf32>
    %407 = vector.broadcast %406 : vector<8x1xf32> to vector<8x8xf32>
    %408 = arith.subf %404, %407 : vector<8x8xf32>
    %409 = math.exp %408 : vector<8x8xf32>
    %cst_179 = arith.constant dense<0.000000e+00> : vector<8xf32>
    %410 = vector.multi_reduction <add>, %409, %cst_179 [1] : vector<8x8xf32> to vector<8xf32>
    %411 = vector.shape_cast %410 : vector<8xf32> to vector<8x1xf32>
    %412 = tpu.reciprocal %411 {approx = true} : vector<8x1xf32> -> vector<8x1xf32>
    %cst_180 = arith.constant dense<0.000000e+00> : vector<8x8xf32>
    %413 = tpu.matmul %409, %401, %cst_180 {dimension_numbers = #tpu.dot_dimension_numbers<[1], [0], [0], [1], [0, 0, 1, 1], [], []>} : vector<8x8xf32>, vector<8x8xf32>, vector<8x8xf32> -> vector<8x8xf32>
    %414 = vector.broadcast %412 : vector<8x1xf32> to vector<8x8xf32>
    %415 = arith.mulf %413, %414 : vector<8x8xf32>
    %416 = vector.extract_strided_slice %277 {offsets = [0, 0], sizes = [8, 32], strides = [1, 1]} : vector<32x32xf32> to vector<8x32xf32>
    %cst_181 = arith.constant dense<0.000000e+00> : vector<8x32xf32>
    %417 = tpu.matmul %415, %416, %cst_181 {dimension_numbers = #tpu.dot_dimension_numbers<[1], [0], [0], [1], [0, 0, 1, 1], [], []>} : vector<8x8xf32>, vector<8x32xf32>, vector<8x32xf32> -> vector<8x32xf32>
    %418 = arith.addf %398, %417 : vector<8x32xf32>
    %419 = vector.extract_strided_slice %316 {offsets = [8, 8], sizes = [8, 8], strides = [1, 1]} : vector<16x96xf32> to vector<8x8xf32>
    %420 = vector.extract_strided_slice %316 {offsets = [8, 40], sizes = [8, 8], strides = [1, 1]} : vector<16x96xf32> to vector<8x8xf32>
    %421 = vector.extract_strided_slice %316 {offsets = [8, 72], sizes = [8, 8], strides = [1, 1]} : vector<16x96xf32> to vector<8x8xf32>
    %cst_182 = arith.constant dense<0.000000e+00> : vector<8x8xf32>
    %422 = tpu.matmul %419, %420, %cst_182 {dimension_numbers = #tpu.dot_dimension_numbers<[1], [1], [0], [0], [0, 0, 1, 0], [], []>} : vector<8x8xf32>, vector<8x8xf32>, vector<8x8xf32> -> vector<8x8xf32>
    %cst_183 = arith.constant -1.000000e+30 : f32
    %423 = vector.broadcast %cst_183 : f32 to vector<8x8xf32>
    %424 = arith.select %10, %422, %423 : vector<8x8xi1>, vector<8x8xf32>
    %cst_184 = arith.constant dense<0xFF800000> : vector<8xf32>
    %425 = vector.multi_reduction <maximumf>, %424, %cst_184 [1] : vector<8x8xf32> to vector<8xf32>
    %426 = vector.shape_cast %425 : vector<8xf32> to vector<8x1xf32>
    %427 = vector.broadcast %426 : vector<8x1xf32> to vector<8x8xf32>
    %428 = arith.subf %424, %427 : vector<8x8xf32>
    %429 = math.exp %428 : vector<8x8xf32>
    %cst_185 = arith.constant dense<0.000000e+00> : vector<8xf32>
    %430 = vector.multi_reduction <add>, %429, %cst_185 [1] : vector<8x8xf32> to vector<8xf32>
    %431 = vector.shape_cast %430 : vector<8xf32> to vector<8x1xf32>
    %432 = tpu.reciprocal %431 {approx = true} : vector<8x1xf32> -> vector<8x1xf32>
    %cst_186 = arith.constant dense<0.000000e+00> : vector<8x8xf32>
    %433 = tpu.matmul %429, %421, %cst_186 {dimension_numbers = #tpu.dot_dimension_numbers<[1], [0], [0], [1], [0, 0, 1, 1], [], []>} : vector<8x8xf32>, vector<8x8xf32>, vector<8x8xf32> -> vector<8x8xf32>
    %434 = vector.broadcast %432 : vector<8x1xf32> to vector<8x8xf32>
    %435 = arith.mulf %433, %434 : vector<8x8xf32>
    %436 = vector.extract_strided_slice %277 {offsets = [8, 0], sizes = [8, 32], strides = [1, 1]} : vector<32x32xf32> to vector<8x32xf32>
    %cst_187 = arith.constant dense<0.000000e+00> : vector<8x32xf32>
    %437 = tpu.matmul %435, %436, %cst_187 {dimension_numbers = #tpu.dot_dimension_numbers<[1], [0], [0], [1], [0, 0, 1, 1], [], []>} : vector<8x8xf32>, vector<8x32xf32>, vector<8x32xf32> -> vector<8x32xf32>
    %438 = arith.addf %418, %437 : vector<8x32xf32>
    %439 = vector.extract_strided_slice %316 {offsets = [8, 16], sizes = [8, 8], strides = [1, 1]} : vector<16x96xf32> to vector<8x8xf32>
    %440 = vector.extract_strided_slice %316 {offsets = [8, 48], sizes = [8, 8], strides = [1, 1]} : vector<16x96xf32> to vector<8x8xf32>
    %441 = vector.extract_strided_slice %316 {offsets = [8, 80], sizes = [8, 8], strides = [1, 1]} : vector<16x96xf32> to vector<8x8xf32>
    %cst_188 = arith.constant dense<0.000000e+00> : vector<8x8xf32>
    %442 = tpu.matmul %439, %440, %cst_188 {dimension_numbers = #tpu.dot_dimension_numbers<[1], [1], [0], [0], [0, 0, 1, 0], [], []>} : vector<8x8xf32>, vector<8x8xf32>, vector<8x8xf32> -> vector<8x8xf32>
    %cst_189 = arith.constant -1.000000e+30 : f32
    %443 = vector.broadcast %cst_189 : f32 to vector<8x8xf32>
    %444 = arith.select %10, %442, %443 : vector<8x8xi1>, vector<8x8xf32>
    %cst_190 = arith.constant dense<0xFF800000> : vector<8xf32>
    %445 = vector.multi_reduction <maximumf>, %444, %cst_190 [1] : vector<8x8xf32> to vector<8xf32>
    %446 = vector.shape_cast %445 : vector<8xf32> to vector<8x1xf32>
    %447 = vector.broadcast %446 : vector<8x1xf32> to vector<8x8xf32>
    %448 = arith.subf %444, %447 : vector<8x8xf32>
    %449 = math.exp %448 : vector<8x8xf32>
    %cst_191 = arith.constant dense<0.000000e+00> : vector<8xf32>
    %450 = vector.multi_reduction <add>, %449, %cst_191 [1] : vector<8x8xf32> to vector<8xf32>
    %451 = vector.shape_cast %450 : vector<8xf32> to vector<8x1xf32>
    %452 = tpu.reciprocal %451 {approx = true} : vector<8x1xf32> -> vector<8x1xf32>
    %cst_192 = arith.constant dense<0.000000e+00> : vector<8x8xf32>
    %453 = tpu.matmul %449, %441, %cst_192 {dimension_numbers = #tpu.dot_dimension_numbers<[1], [0], [0], [1], [0, 0, 1, 1], [], []>} : vector<8x8xf32>, vector<8x8xf32>, vector<8x8xf32> -> vector<8x8xf32>
    %454 = vector.broadcast %452 : vector<8x1xf32> to vector<8x8xf32>
    %455 = arith.mulf %453, %454 : vector<8x8xf32>
    %456 = vector.extract_strided_slice %277 {offsets = [16, 0], sizes = [8, 32], strides = [1, 1]} : vector<32x32xf32> to vector<8x32xf32>
    %cst_193 = arith.constant dense<0.000000e+00> : vector<8x32xf32>
    %457 = tpu.matmul %455, %456, %cst_193 {dimension_numbers = #tpu.dot_dimension_numbers<[1], [0], [0], [1], [0, 0, 1, 1], [], []>} : vector<8x8xf32>, vector<8x32xf32>, vector<8x32xf32> -> vector<8x32xf32>
    %458 = arith.addf %438, %457 : vector<8x32xf32>
    %459 = vector.extract_strided_slice %316 {offsets = [8, 24], sizes = [8, 8], strides = [1, 1]} : vector<16x96xf32> to vector<8x8xf32>
    %460 = vector.extract_strided_slice %316 {offsets = [8, 56], sizes = [8, 8], strides = [1, 1]} : vector<16x96xf32> to vector<8x8xf32>
    %461 = vector.extract_strided_slice %316 {offsets = [8, 88], sizes = [8, 8], strides = [1, 1]} : vector<16x96xf32> to vector<8x8xf32>
    %cst_194 = arith.constant dense<0.000000e+00> : vector<8x8xf32>
    %462 = tpu.matmul %459, %460, %cst_194 {dimension_numbers = #tpu.dot_dimension_numbers<[1], [1], [0], [0], [0, 0, 1, 0], [], []>} : vector<8x8xf32>, vector<8x8xf32>, vector<8x8xf32> -> vector<8x8xf32>
    %cst_195 = arith.constant -1.000000e+30 : f32
    %463 = vector.broadcast %cst_195 : f32 to vector<8x8xf32>
    %464 = arith.select %10, %462, %463 : vector<8x8xi1>, vector<8x8xf32>
    %cst_196 = arith.constant dense<0xFF800000> : vector<8xf32>
    %465 = vector.multi_reduction <maximumf>, %464, %cst_196 [1] : vector<8x8xf32> to vector<8xf32>
    %466 = vector.shape_cast %465 : vector<8xf32> to vector<8x1xf32>
    %467 = vector.broadcast %466 : vector<8x1xf32> to vector<8x8xf32>
    %468 = arith.subf %464, %467 : vector<8x8xf32>
    %469 = math.exp %468 : vector<8x8xf32>
    %cst_197 = arith.constant dense<0.000000e+00> : vector<8xf32>
    %470 = vector.multi_reduction <add>, %469, %cst_197 [1] : vector<8x8xf32> to vector<8xf32>
    %471 = vector.shape_cast %470 : vector<8xf32> to vector<8x1xf32>
    %472 = tpu.reciprocal %471 {approx = true} : vector<8x1xf32> -> vector<8x1xf32>
    %cst_198 = arith.constant dense<0.000000e+00> : vector<8x8xf32>
    %473 = tpu.matmul %469, %461, %cst_198 {dimension_numbers = #tpu.dot_dimension_numbers<[1], [0], [0], [1], [0, 0, 1, 1], [], []>} : vector<8x8xf32>, vector<8x8xf32>, vector<8x8xf32> -> vector<8x8xf32>
    %474 = vector.broadcast %472 : vector<8x1xf32> to vector<8x8xf32>
    %475 = arith.mulf %473, %474 : vector<8x8xf32>
    %476 = vector.extract_strided_slice %277 {offsets = [24, 0], sizes = [8, 32], strides = [1, 1]} : vector<32x32xf32> to vector<8x32xf32>
    %cst_199 = arith.constant dense<0.000000e+00> : vector<8x32xf32>
    %477 = tpu.matmul %475, %476, %cst_199 {dimension_numbers = #tpu.dot_dimension_numbers<[1], [0], [0], [1], [0, 0, 1, 1], [], []>} : vector<8x8xf32>, vector<8x32xf32>, vector<8x32xf32> -> vector<8x32xf32>
    %478 = arith.addf %458, %477 : vector<8x32xf32>
    %479 = tpu.concatenate %397, %478 in 0 : vector<8x32xf32>, vector<8x32xf32> -> vector<16x32xf32>
    %480 = arith.addf %267, %479 : vector<16x32xf32>
    %481 = vector.broadcast %279 : vector<1x32xf32> to vector<16x32xf32>
    %482 = arith.addf %480, %481 : vector<16x32xf32>
    %cst_200 = arith.constant dense<0.000000e+00> : vector<16xf32>
    %483 = vector.multi_reduction <add>, %482, %cst_200 [1] : vector<16x32xf32> to vector<16xf32>
    %484 = vector.shape_cast %483 : vector<16xf32> to vector<16x1xf32>
    %cst_201 = arith.constant 3.200000e+01 : f32
    %485 = vector.broadcast %cst_201 : f32 to vector<16x1xf32>
    %486 = arith.divf %484, %485 : vector<16x1xf32>
    %487 = vector.broadcast %486 : vector<16x1xf32> to vector<16x32xf32>
    %488 = arith.subf %482, %487 : vector<16x32xf32>
    %489 = arith.mulf %488, %488 : vector<16x32xf32>
    %cst_202 = arith.constant dense<0.000000e+00> : vector<16xf32>
    %490 = vector.multi_reduction <add>, %489, %cst_202 [1] : vector<16x32xf32> to vector<16xf32>
    %491 = vector.shape_cast %490 : vector<16xf32> to vector<16x1xf32>
    %cst_203 = arith.constant 3.200000e+01 : f32
    %492 = vector.broadcast %cst_203 : f32 to vector<16x1xf32>
    %493 = arith.divf %491, %492 : vector<16x1xf32>
    %494 = vector.broadcast %486 : vector<16x1xf32> to vector<16x32xf32>
    %495 = arith.subf %482, %494 : vector<16x32xf32>
    %cst_204 = arith.constant 9.99999974E-6 : f32
    %496 = vector.broadcast %cst_204 : f32 to vector<16x1xf32>
    %497 = arith.addf %493, %496 : vector<16x1xf32>
    %498 = math.rsqrt %497 : vector<16x1xf32>
    %499 = vector.broadcast %498 : vector<16x1xf32> to vector<16x32xf32>
    %500 = arith.mulf %495, %499 : vector<16x32xf32>
    %501 = vector.broadcast %281 : vector<1x32xf32> to vector<16x32xf32>
    %502 = arith.mulf %500, %501 : vector<16x32xf32>
    %503 = vector.broadcast %283 : vector<1x32xf32> to vector<16x32xf32>
    %504 = arith.addf %502, %503 : vector<16x32xf32>
    %cst_205 = arith.constant dense<0.000000e+00> : vector<16x128xf32>
    %505 = tpu.matmul %504, %285, %cst_205 {dimension_numbers = #tpu.dot_dimension_numbers<[1], [0], [0], [1], [0, 0, 1, 1], [], []>} : vector<16x32xf32>, vector<32x128xf32>, vector<16x128xf32> -> vector<16x128xf32>
    %506 = vector.broadcast %287 : vector<1x128xf32> to vector<16x128xf32>
    %507 = arith.addf %505, %506 : vector<16x128xf32>
    %cst_206 = arith.constant 5.000000e-01 : f32
    %508 = vector.broadcast %cst_206 : f32 to vector<16x128xf32>
    %509 = arith.mulf %508, %507 : vector<16x128xf32>
    %cst_207 = arith.constant 4.471500e-02 : f32
    %510 = vector.broadcast %cst_207 : f32 to vector<16x128xf32>
    %511 = arith.mulf %510, %507 : vector<16x128xf32>
    %512 = arith.mulf %511, %507 : vector<16x128xf32>
    %513 = arith.mulf %512, %507 : vector<16x128xf32>
    %514 = arith.addf %507, %513 : vector<16x128xf32>
    %cst_208 = arith.constant 0.797884583 : f32
    %515 = vector.broadcast %cst_208 : f32 to vector<16x128xf32>
    %516 = arith.mulf %515, %514 : vector<16x128xf32>
    %517 = math.tanh %516 : vector<16x128xf32>
    %cst_209 = arith.constant 1.000000e+00 : f32
    %518 = vector.broadcast %cst_209 : f32 to vector<16x128xf32>
    %519 = arith.addf %518, %517 : vector<16x128xf32>
    %520 = arith.mulf %509, %519 : vector<16x128xf32>
    %cst_210 = arith.constant dense<0.000000e+00> : vector<16x32xf32>
    %521 = tpu.matmul %520, %289, %cst_210 {dimension_numbers = #tpu.dot_dimension_numbers<[1], [0], [0], [1], [0, 0, 1, 1], [], []>} : vector<16x128xf32>, vector<128x32xf32>, vector<16x32xf32> -> vector<16x32xf32>
    %522 = arith.addf %482, %521 : vector<16x32xf32>
    %523 = vector.broadcast %291 : vector<1x32xf32> to vector<16x32xf32>
    %524 = arith.addf %522, %523 : vector<16x32xf32>
    %525 = vector.extract_strided_slice %524 {offsets = [0, 0], sizes = [8, 32], strides = [1, 1]} : vector<16x32xf32> to vector<8x32xf32>
    %c0_211 = arith.constant 0 : index
    %c0_212 = arith.constant 0 : index
    %c0_213 = arith.constant 0 : index
    %526 = vector.load %arg15[%c0_211, %c0_212, %c0_213] : memref<2x8x32xf32, #tpu.memory_space<vmem>>, vector<1x8x32xf32>
    %527 = vector.shape_cast %526 : vector<1x8x32xf32> to vector<8x32xf32>
    %528 = vector.shape_cast %525 : vector<8x32xf32> to vector<1x8x32xf32>
    tpu.vector_store %arg15[%c0_211, %c0_212, %c0_213], %528 {strides = array<i32>} : memref<2x8x32xf32, #tpu.memory_space<vmem>>, vector<1x8x32xf32>,
    %529 = vector.extract_strided_slice %524 {offsets = [8, 0], sizes = [8, 32], strides = [1, 1]} : vector<16x32xf32> to vector<8x32xf32>
    %c1_214 = arith.constant 1 : index
    %c0_215 = arith.constant 0 : index
    %c0_216 = arith.constant 0 : index
    %530 = vector.load %arg15[%c1_214, %c0_215, %c0_216] : memref<2x8x32xf32, #tpu.memory_space<vmem>>, vector<1x8x32xf32>
    %531 = vector.shape_cast %530 : vector<1x8x32xf32> to vector<8x32xf32>
    %532 = vector.shape_cast %529 : vector<8x32xf32> to vector<1x8x32xf32>
    tpu.vector_store %arg15[%c1_214, %c0_215, %c0_216], %532 {strides = array<i32>} : memref<2x8x32xf32, #tpu.memory_space<vmem>>, vector<1x8x32xf32>,
    return
  }
  func.func @transform_0(%arg0: i32) -> (i32, i32, i32) {
    %c0_i32 = arith.constant 0 : i32
    %c0_i32_0 = arith.constant 0 : i32
    %c0_i32_1 = arith.constant 0 : i32
    return %arg0, %c0_i32, %c0_i32_0 : i32, i32, i32
  }
  func.func @transform_1(%arg0: i32) -> (i32, i32) {
    %c0_i32 = arith.constant 0 : i32
    %c0_i32_0 = arith.constant 0 : i32
    %c0_i32_1 = arith.constant 0 : i32
    return %c0_i32, %c0_i32_0 : i32, i32
  }
  func.func @transform_2(%arg0: i32) -> (i32, i32, i32) {
    %c0_i32 = arith.constant 0 : i32
    %c0_i32_0 = arith.constant 0 : i32
    %c0_i32_1 = arith.constant 0 : i32
    %c0_i32_2 = arith.constant 0 : i32
    return %c0_i32, %c0_i32_0, %c0_i32_1 : i32, i32, i32
  }
  func.func @transform_3(%arg0: i32) -> (i32, i32, i32) {
    %c0_i32 = arith.constant 0 : i32
    %c0_i32_0 = arith.constant 0 : i32
    %c0_i32_1 = arith.constant 0 : i32
    %c0_i32_2 = arith.constant 0 : i32
    return %c0_i32, %c0_i32_0, %c0_i32_1 : i32, i32, i32
  }
  func.func @transform_4(%arg0: i32) -> (i32, i32, i32) {
    %c0_i32 = arith.constant 0 : i32
    %c0_i32_0 = arith.constant 0 : i32
    %c0_i32_1 = arith.constant 0 : i32
    %c0_i32_2 = arith.constant 0 : i32
    return %c0_i32, %c0_i32_0, %c0_i32_1 : i32, i32, i32
  }
  func.func @transform_5(%arg0: i32) -> (i32, i32, i32) {
    %c0_i32 = arith.constant 0 : i32
    %c0_i32_0 = arith.constant 0 : i32
    %c0_i32_1 = arith.constant 0 : i32
    %c0_i32_2 = arith.constant 0 : i32
    return %c0_i32, %c0_i32_0, %c0_i32_1 : i32, i32, i32
  }
  func.func @transform_6(%arg0: i32) -> (i32, i32, i32) {
    %c0_i32 = arith.constant 0 : i32
    %c0_i32_0 = arith.constant 0 : i32
    %c0_i32_1 = arith.constant 0 : i32
    %c0_i32_2 = arith.constant 0 : i32
    return %c0_i32, %c0_i32_0, %c0_i32_1 : i32, i32, i32
  }
  func.func @transform_7(%arg0: i32) -> (i32, i32, i32) {
    %c0_i32 = arith.constant 0 : i32
    %c0_i32_0 = arith.constant 0 : i32
    %c0_i32_1 = arith.constant 0 : i32
    %c0_i32_2 = arith.constant 0 : i32
    return %c0_i32, %c0_i32_0, %c0_i32_1 : i32, i32, i32
  }
  func.func @transform_8(%arg0: i32) -> (i32, i32, i32) {
    %c0_i32 = arith.constant 0 : i32
    %c0_i32_0 = arith.constant 0 : i32
    %c0_i32_1 = arith.constant 0 : i32
    %c0_i32_2 = arith.constant 0 : i32
    return %c0_i32, %c0_i32_0, %c0_i32_1 : i32, i32, i32
  }
  func.func @transform_9(%arg0: i32) -> (i32, i32, i32) {
    %c0_i32 = arith.constant 0 : i32
    %c0_i32_0 = arith.constant 0 : i32
    %c0_i32_1 = arith.constant 0 : i32
    %c0_i32_2 = arith.constant 0 : i32
    return %c0_i32, %c0_i32_0, %c0_i32_1 : i32, i32, i32
  }
  func.func @transform_10(%arg0: i32) -> (i32, i32, i32) {
    %c0_i32 = arith.constant 0 : i32
    %c0_i32_0 = arith.constant 0 : i32
    %c0_i32_1 = arith.constant 0 : i32
    %c0_i32_2 = arith.constant 0 : i32
    return %c0_i32, %c0_i32_0, %c0_i32_1 : i32, i32, i32
  }
  func.func @transform_11(%arg0: i32) -> (i32, i32, i32) {
    %c0_i32 = arith.constant 0 : i32
    %c0_i32_0 = arith.constant 0 : i32
    %c0_i32_1 = arith.constant 0 : i32
    %c0_i32_2 = arith.constant 0 : i32
    return %c0_i32, %c0_i32_0, %c0_i32_1 : i32, i32, i32
  }
  func.func @transform_12(%arg0: i32) -> (i32, i32, i32) {
    %c0_i32 = arith.constant 0 : i32
    %c0_i32_0 = arith.constant 0 : i32
    %c0_i32_1 = arith.constant 0 : i32
    %c0_i32_2 = arith.constant 0 : i32
    return %c0_i32, %c0_i32_0, %c0_i32_1 : i32, i32, i32
  }
  func.func @transform_13(%arg0: i32) -> (i32, i32, i32) {
    %c0_i32 = arith.constant 0 : i32
    %c0_i32_0 = arith.constant 0 : i32
    %c0_i32_1 = arith.constant 0 : i32
    %c0_i32_2 = arith.constant 0 : i32
    return %c0_i32, %c0_i32_0, %c0_i32_1 : i32, i32, i32
  }
  func.func @transform_14(%arg0: i32) -> (i32, i32, i32) {
    %c0_i32 = arith.constant 0 : i32
    %c0_i32_0 = arith.constant 0 : i32
    %c0_i32_1 = arith.constant 0 : i32
    return %arg0, %c0_i32, %c0_i32_0 : i32, i32, i32
  }
}

</mosaic_0001>

<bundles_post_ra>
// kernel: _lambda_.1
= control target key start
LH: loop header
LB: loop body
LE: loop exit
PB: predicated region body
PF: predicated region fallthrough
CT: control target
= control target key end

     0   :  { %vm95_vm0 = vcmask 261120   ;;  %s6408_s0 = inlined_call_operand.vmem [shape: f32[2,8,32], index: 0, kind: input, shape index: {}]   ;;  %s6409_s1 = inlined_call_operand.vmem [shape: f32[8,32], index: 1, kind: input, shape index: {}]   ;;  %s6410_s2 = inlined_call_operand.vmem [shape: f32[2,1,32], index: 2, kind: input, shape index: {}]   ;;  %s6411_s3 = inlined_call_operand.vmem [shape: f32[2,1,32], index: 3, kind: input, shape index: {}]   ;;  %s6412_s4 = inlined_call_operand.vmem [shape: f32[2,32,96], index: 4, kind: input, shape index: {}]   ;;  %s6413_s5 = inlined_call_operand.vmem [shape: f32[2,1,96], index: 5, kind: input, shape index: {}]   ;;  %s6414_s6 = inlined_call_operand.vmem [shape: f32[2,32,32], index: 6, kind: input, shape index: {}]   ;;  %s6415_s7 = inlined_call_operand.vmem [shape: f32[2,1,32], index: 7, kind: input, shape index: {}]   ;;  %s6416_s8 = inlined_call_operand.vmem [shape: f32[2,1,32], index: 8, kind: input, shape index: {}]   ;;  %s6417_s9 = inlined_call_operand.vmem [shape: f32[2,1,32], index: 9, kind: input, shape index: {}]   ;;  %s6418_s10 = inlined_call_operand.vmem [shape: f32[2,32,128], index: 10, kind: input, shape index: {}]   ;;  %s6419_s11 = inlined_call_operand.vmem [shape: f32[2,1,128], index: 11, kind: input, shape index: {}]   ;;  %s6420_s12 = inlined_call_operand.vmem [shape: f32[2,128,32], index: 12, kind: input, shape index: {}]   ;;  %s6421_s13 = inlined_call_operand.vmem [shape: f32[2,1,32], index: 13, kind: input, shape index: {}]   ;;  %s6422_s14 = inlined_call_operand.hbm [shape: f32[2,8,32], index: 14, kind: output, shape index: {}]  }
   0x1   :  { %v48_v0 = vld [vmem:[%s6409_s1] sm:$0xff]  ;;  %v4735_v2 = vld [vmem:[%s6408_s0 + $0x8] sm:$0xff] }
   0x2   :  { %v49_v1 = vld [vmem:[%s6408_s0] sm:$0xff]  ;;  %v5696_v4 = vadd.f32 %v4735_v2, %v48_v0 }
   0x3   :  { %v5694_v3 = vadd.f32 %v49_v1, %v48_v0 }
   0x4   :  { %19 = vsyncpa [#allocation3], 0  ;;  %v99_v6 = vsel %vm95_vm0, %v5696_v4, 0.0  ;;  %v61_v17 = vld [vmem:[%s6412_s4] sm:$0xff]  ;;  %v62_v18 = vld [vmem:[%s6412_s4 + $0x8] sm:$0xff]  ;;  %v5594_v39 = vmov 0.0   ;;  %v54_v47 = vlaneseq }
   0x5   :  { %v96_v5 = vsel %vm95_vm0, %v5694_v3, 0.0  ;;  %v63_v19 = vld [vmem:[%s6412_s4 + $0x10] sm:$0xff]  ;;  %v5370_v20 = vpack.c.bf16 %v62_v18, %v61_v17  ;;  %v64_v21 = vld [vmem:[%s6412_s4 + $0x18] sm:$0xff]  ;;  %v4736_v30 = vld [vmem:[%s6410_s2] ss:$0 sm:$0xff]  ;;  %5052 = vmatprep.subr.mxu1 %v5594_v39  ;;  %vm5595_vm1 = vmmov 0  }
   0x6   :  { %97 = vadd.xlane.f32.xlu0 %v96_v5  ;;  %v5374_v22 = vpack.c.bf16 %v64_v21, %v63_v19  ;;  %v4737_v32 = vld [vmem:[%s6411_s3] ss:$0 sm:$0xff]  ;;  %5054 = vmatprep.mubr.msk.f32.mxu1 %vm5595_vm1, %v5594_v39  ;;  %s5596_s15 = smov 64   ;;  %s5597_s16 = smov 96   ;;  %vm229_vm2 = vcmask 64512   ;;  %v55_v48 = vshrl.u32 %v54_v47, 7 }
   0x7   :  { %5371 = vmatprep.subr.bf16.mxu0 %v5370_v20  ;;  %v4738_v40 = vld [vmem:[%s6413_s5] ss:$0 sm:$0xff]  ;;  %s5598_s17 = smov 120   ;;  %s5599_s18 = smov 56   ;;  %v57_v49 = vand.u32 127, %v54_v47 }
   0x8   :  { %5373 = vmatpush3.bf16.msra.mxu0 %v5370_v20  ;;  %s5600_s0 = smov 88   ;;  %s5601_s1 = smov 112  }
   0x9   :  { %5375 = vmatprep.subr.bf16.mxu0 %v5374_v22  ;;  %vm5754_vm3 = vcmp.ge.s32.totalorder %v55_v48, %v57_v49  ;;  %s6427_s19 = smov 72   ;;  %s6425_s20 = smov 104  }
   0xa   :  { %100 = vadd.xlane.f32.xlu0 %v99_v6  ;;  %s5604_s25 = smov 80   ;;  %s5605_s26 = smov 48  }
   0xb   :  { %s6423_s29 = smov 40   ;;  %s6433_s24 = smov 40  }
   0xc   :  { %5377 = vmatpush3.bf16.msra.mxu0 %v5374_v22  ;;  %s5607_s23 = smov [#allocation2]  }
   0xd   :  { %5027 = vmatprep.subr.mxu0 %v5594_v39 }
  0x93   :  { %v98_v7 = vpop.xlane.xlu0 %97 }
  0x94   :  { %v103_v8 = vmul.f32 0.03125, %v98_v7  ;;  %v5785_v7 = vld [vmem:[%s6414_s6] sm:$0xff] }
  0x95   :  { %5053 = vmatpush3.msra.mxu1 %v5785_v7 }
  0x96   :  { %v105_v9 = vsub.f32 %v5694_v3, %v103_v8  ;;  %5062 = vmatprep.subr.mxu1 %v5594_v39 }
  0x97   :  { %v101_v10 = vpop.xlane.xlu0 %100 }
  0x98   :  { %v104_v11 = vmul.f32 0.03125, %v101_v10  ;;  %v107_v12 = vmul.f32 %v105_v9, %v105_v9 }
  0x9a   :  { %v106_v13 = vsub.f32 %v5696_v4, %v104_v11  ;;  %v109_v14 = vsel %vm95_vm0, %v107_v12, 0.0 }
  0x9b   :  { %110 = vadd.xlane.f32.xlu1 %v109_v14 }
  0x9c   :  { %v108_v15 = vmul.f32 %v106_v13, %v106_v13 }
  0x9e   :  { %v112_v16 = vsel %vm95_vm0, %v108_v15, 0.0 }
  0x9f   :  { %113 = vadd.xlane.f32.xlu1 %v112_v16 }
 0x128   :  { %v111_v23 = vpop.xlane.xlu1 %110 }
 0x129   :  { %v115_v24 = vmul.f32 0.03125, %v111_v23 }
 0x12b   :  { %v117_v25 = vadd.f32 1e-05, %v115_v24 }
 0x12c   :  { %v114_v26 = vpop.xlane.xlu1 %113 }
 0x12d   :  { %5482 = vrsqrt.f32 %v117_v25  ;;  %v116_v27 = vmul.f32 0.03125, %v114_v26 }
 0x12f   :  { %v118_v28 = vadd.f32 1e-05, %v116_v27 }
 0x131   :  { %5484 = vrsqrt.f32 %v118_v28 }
 0x137   :  { %v5483_v29 = vpop.eup %5482 }
 0x138   :  { %v121_v31 = vmul.f32 %v5483_v29, %v105_v9 }
 0x13a   :  { %v129_v33 = vmul.f32 %v4736_v30, %v121_v31 }
 0x13b   :  { %v5485_v34 = vpop.eup %5484 }
 0x13c   :  { %v122_v35 = vmul.f32 %v5485_v34, %v106_v13  ;;  %v137_v36 = vadd.f32 %v4737_v32, %v129_v33  ;;  %v5796_v13 = vld [vmem:[%s6414_s6 + $0x8] sm:$0xff] }
 0x13e   :  { %v130_v37 = vmul.f32 %v4736_v30, %v122_v35  ;;  %5024 = vmatprep.mubr.msk.f32.mxu0 %vm95_vm0, %v137_v36 }
 0x140   :  { %v138_v38 = vadd.f32 %v4737_v32, %v130_v37 }
 0x142   :  { %5025 = vmatmul.mubr.msk.f32.vlgmr.msra.gmra.mrb[0].mxu0 %vm95_vm0, %v138_v38 }
 0x143   :  { %5029 = vmatprep.mubr.msk.f32.mxu0 %vm5595_vm1, %v5594_v39 }
 0x215   :  { %v5026_v41 = vpop.f32.mrb[0].mxu0 }
 0x216   :  { %v5735_v42 = vadd.f32 %v5026_v41, %v4738_v40  ;;  %v217_v43 = vpop.f32.mrb[1].mxu0 }
 0x217   :  { %v5737_v44 = vadd.f32 %v4738_v40, %v217_v43  ;;  %v5837_v43 = vld [vmem:[%s6414_s6 + $0x10] sm:$0xff] }
 0x219   :  { %315 = vrot.lane.b32.xlu1 %v5737_v44, %s5596_s15  ;;  %227 = vrot.lane.b32.xlu0 %v5737_v44, %s5597_s16 }
 0x21d   :  { %392 = vrot.lane.b32.xlu0 %v5737_v44, %s5598_s17 }
 0x221   :  { %481 = vrot.lane.b32.xlu0 %v5737_v44, %s5599_s18 }
 0x28b   :  { %v228_v45 = vpop.permute.xlu0 %227  ;;  %v316_v46 = vpop.permute.xlu1 %315 }
 0x28c   :  { %5028 = vmatpush3.xpose.msk.msra.mxu0 %vm229_vm2, %v228_v45 }
 0x28d   :  { %5032 = vmatprep.subr.mxu0 %v5594_v39 }
 0x28f   :  { %5030 = vmatmul.mubr.msk.f32.vlgmr.msra.gmra.mrb[2].mxu0 %vm229_vm2, %v5737_v44  ;;  %v393_v58 = vpop.permute.xlu0 %392 }
 0x290   :  { %5033 = vmatpush3.msra.mxu0 %v316_v46  ;;  %5034 = vmatprep.mubr.msk.f32.mxu0 %vm5595_vm1, %v5594_v39 }
 0x291   :  { %5037 = vmatprep.subr.mxu0 %v5594_v39 }
 0x293   :  { %v482_v61 = vpop.permute.xlu0 %481 }
 0x362   :  { %v300_v51 = vpop.f32.mrb[2].mxu0 }
 0x363   :  { %v304_v52 = vsel %vm5754_vm3, %v300_v51, -1e+30  ;;  %v5031_v53 = vpop.f32.mrb[3].mxu0 }
 0x364   :  { %v305_v54 = vsel %vm229_vm2, %v304_v52, -inf }
 0x365   :  { %306 = vmax.xlane.f32.xlu1 %v305_v54 }
 0x376   :  { %394 = vrot.lane.b32.xlu1 %v5737_v44, %s5600_s0 }
 0x3f2   :  { %v307_v55 = vpop.xlane.xlu1 %306 }
 0x3f3   :  { %v308_v56 = vsub.f32 %v304_v52, %v307_v55 }
 0x3f5   :  { %v309_v57 = vmul.f32 1.442695, %v308_v56 }
 0x3f6   :  { %v395_v60 = vpop.permute.xlu1 %394 }
 0x3f7   :  { %5486 = vpow2.f32 %v309_v57 }
 0x401   :  { %v5487_v59 = vpop.eup %5486 }
 0x402   :  { %5035 = vmatmul.mubr.msk.f32.vlgmr.msra.gmra.mrb[4].mxu0 %vm229_vm2, %v5487_v59  ;;  %v311_v6 = vsel %vm229_vm2, %v5487_v59, 0.0 }
 0x403   :  { %5038 = vmatpush3.xpose.msk.msra.mxu0 %vm229_vm2, %v395_v60  ;;  %5039 = vmatprep.mubr.msk.f32.mxu0 %vm5595_vm1, %v5594_v39 }
 0x404   :  { %5042 = vmatprep.subr.mxu0 %v5594_v39 }
 0x406   :  { %5040 = vmatmul.mubr.msk.f32.vlgmr.msra.gmra.mrb[6].mxu0 %vm229_vm2, %v393_v58 }
 0x407   :  { %5043 = vmatpush3.msra.mxu0 %v482_v61  ;;  %5044 = vmatprep.mubr.msk.f32.mxu0 %vm5595_vm1, %v5594_v39 }
 0x408   :  { %5047 = vmatprep.subr.mxu0 %v5594_v39 }
 0x4d5   :  { %v387_v62 = vpop.f32.mrb[4].mxu0 }
 0x4d6   :  { %v5036_v63 = vpop.f32.mrb[5].mxu0 }
 0x4d9   :  { %v466_v0 = vpop.f32.mrb[6].mxu0 }
 0x4da   :  { %v470_v1 = vsel %vm5754_vm3, %v466_v0, -1e+30  ;;  %v5041_v2 = vpop.f32.mrb[7].mxu0 }
 0x4db   :  { %v471_v5 = vsel %vm229_vm2, %v470_v1, -inf  ;;  %v5875_v2 = vld [vmem:[%s6414_s6 + $0x18] sm:$0xff] }
 0x4dc   :  { %472 = vmax.xlane.f32.xlu1 %v471_v5 }
 0x4ed   :  { %704 = vrot.lane.b32.xlu1 %v5737_v44, %s5601_s1 }
 0x511   :  { %312 = vadd.xlane.f32.xlu1 %v311_v6 }
 0x522   :  { %946 = vrot.lane.b32.xlu1 %v5737_v44, %s6427_s19 }
 0x526   :  { %944 = vrot.lane.b32.xlu1 %v5737_v44, %s6425_s20 }
 0x569   :  { %v473_v8 = vpop.xlane.xlu1 %472 }
 0x56a   :  { %v474_v9 = vsub.f32 %v470_v1, %v473_v8 }
 0x56c   :  { %v475_v10 = vmul.f32 1.442695, %v474_v9 }
 0x56d   :  { %v705_v14 = vpop.permute.xlu1 %704 }
 0x56e   :  { %5488 = vpow2.f32 %v475_v10 }
 0x578   :  { %v5489_v11 = vpop.eup %5488 }
 0x579   :  { %5045 = vmatmul.mubr.msk.f32.vlgmr.msra.gmra.mrb[8].mxu0 %vm229_vm2, %v5489_v11  ;;  %v477_v12 = vsel %vm229_vm2, %v5489_v11, 0.0 }
 0x57a   :  { %478 = vadd.xlane.f32.xlu0 %v477_v12  ;;  %5049 = vmatprep.mubr.msk.f32.mxu0 %vm5595_vm1, %v5594_v39 }
 0x57b   :  { %5048 = vmatpush3.msra.mxu0 %v5796_v13 }
 0x57c   :  { %5057 = vmatprep.subr.mxu0 %v5594_v39 }
 0x590   :  { %706 = vrot.lane.b32.xlu0 %v5737_v44, %s5604_s25 }
 0x59e   :  { %v313_v15 = vpop.xlane.xlu1 %312 }
 0x59f   :  { %5490 = vrcp.f32 %v313_v15 }
 0x5a2   :  { %v947_v37 = vpop.permute.xlu1 %946 }
 0x5a6   :  { %v945_v41 = vpop.permute.xlu1 %944 }
 0x5a9   :  { %v5491_v16 = vpop.eup %5490 }
 0x5aa   :  { %v391_v17 = vmul.f32 %v5491_v16, %v387_v62 }
 0x5ac   :  { %5055 = vmatmul.mubr.msk.f32.vlgmr.msra.gmra.mrb[0].mxu1 %vm229_vm2, %v391_v17 }
 0x5ad   :  { %5064 = vmatprep.mubr.msk.f32.mxu1 %vm5595_vm1, %v5594_v39 }
 0x607   :  { %v479_v18 = vpop.xlane.xlu0 %478 }
 0x608   :  { %5492 = vrcp.f32 %v479_v18 }
 0x60b   :  { %v707_v23 = vpop.permute.xlu0 %706 }
 0x612   :  { %v5493_v19 = vpop.eup %5492 }
 0x64c   :  { %v553_v20 = vpop.f32.mrb[8].mxu0 }
 0x64d   :  { %v557_v21 = vmul.f32 %v5493_v19, %v553_v20  ;;  %v5046_v22 = vpop.f32.mrb[9].mxu0 }
 0x64f   :  { %5050 = vmatmul.mubr.msk.f32.vlgmr.msra.gmra.mrb[10].mxu0 %vm229_vm2, %v557_v21 }
 0x650   :  { %5058 = vmatpush3.xpose.msk.msra.mxu0 %vm229_vm2, %v707_v23  ;;  %5059 = vmatprep.mubr.msk.f32.mxu0 %vm5595_vm1, %v5594_v39 }
 0x651   :  { %5067 = vmatprep.subr.mxu0 %v5594_v39 }
 0x653   :  { %5060 = vmatmul.mubr.msk.f32.vlgmr.msra.gmra.mrb[12].mxu0 %vm229_vm2, %v705_v14 }
 0x654   :  { %5069 = vmatprep.mubr.msk.f32.mxu0 %vm5595_vm1, %v5594_v39  ;;  %5068 = vmatpush3.msra.mxu0 %v5837_v43 }
 0x655   :  { %5077 = vmatprep.subr.mxu0 %v5594_v39 }
 0x67f   :  { %v700_v24 = vpop.f32.mrb[0].mxu1 }
 0x680   :  { %v5056_v25 = vpop.f32.mrb[1].mxu1 }
 0x722   :  { %v627_v26 = vpop.f32.mrb[10].mxu0 }
 0x723   :  { %v5813_v27 = vadd.f32 %v700_v24, %v627_v26  ;;  %v5051_v28 = vpop.f32.mrb[11].mxu0 }
 0x726   :  { %v778_v29 = vpop.f32.mrb[12].mxu0 }
 0x727   :  { %v782_v30 = vsel %vm5754_vm3, %v778_v29, -1e+30  ;;  %v5061_v31 = vpop.f32.mrb[13].mxu0 }
 0x728   :  { %v783_v32 = vsel %vm229_vm2, %v782_v30, -inf }
 0x729   :  { %784 = vmax.xlane.f32.xlu0 %v783_v32 }
 0x73f   :  { %793 = vrot.lane.b32.xlu0 %v5737_v44, %s5605_s26 }
 0x7b6   :  { %v785_v33 = vpop.xlane.xlu0 %784 }
 0x7b7   :  { %v786_v34 = vsub.f32 %v782_v30, %v785_v33 }
 0x7b9   :  { %v787_v35 = vmul.f32 1.442695, %v786_v34 }
 0x7ba   :  { %v794_v36 = vpop.permute.xlu0 %793 }
 0x7bb   :  { %5494 = vpow2.f32 %v787_v35  ;;  %5063 = vmatpush3.msra.mxu1 %v794_v36 }
 0x7bc   :  { %5072 = vmatprep.subr.mxu1 %v5594_v39 }
 0x7c5   :  { %v5495_v38 = vpop.eup %5494 }
 0x7c6   :  { %5065 = vmatmul.mubr.msk.f32.vlgmr.msra.gmra.mrb[2].mxu1 %vm229_vm2, %v5495_v38  ;;  %v789_v40 = vsel %vm229_vm2, %v5495_v38, 0.0 }
 0x7c7   :  { %5073 = vmatpush3.xpose.msk.msra.mxu1 %vm229_vm2, %v947_v37  ;;  %790 = vadd.xlane.f32.xlu1 %v789_v40 }
 0x7c8   :  { %5074 = vmatprep.mubr.msk.f32.mxu1 %vm5595_vm1, %v5594_v39  ;;  %5082 = vmatprep.subr.mxu1 %v5594_v39 }
 0x7ca   :  { %5075 = vmatmul.mubr.msk.f32.vlgmr.msra.gmra.mrb[4].mxu1 %vm229_vm2, %v945_v41 }
 0x7cb   :  { %5084 = vmatprep.mubr.msk.f32.mxu1 %vm5595_vm1, %v5594_v39  ;;  %5083 = vmatpush3.msra.mxu1 %v5875_v2 }
 0x7cc   :  { %5092 = vmatprep.subr.mxu1 %v5594_v39 }
 0x7d8   :  { %1185 = vrot.lane.b32.xlu1 %v5735_v42, %s5597_s16 }
 0x7dc   :  { %1351 = vrot.lane.b32.xlu1 %v5735_v42, %s5600_s0 }
 0x854   :  { %v791_v45 = vpop.xlane.xlu1 %790 }
 0x855   :  { %5496 = vrcp.f32 %v791_v45 }
 0x858   :  { %v1186_v59 = vpop.permute.xlu1 %1185 }
 0x85f   :  { %v5497_v46 = vpop.eup %5496 }
 0x899   :  { %v865_v47 = vpop.f32.mrb[2].mxu1 }
 0x89a   :  { %v869_v48 = vmul.f32 %v5497_v46, %v865_v47  ;;  %v5066_v49 = vpop.f32.mrb[3].mxu1 }
 0x89c   :  { %5070 = vmatmul.mubr.msk.f32.vlgmr.msra.gmra.mrb[14].mxu0 %vm229_vm2, %v869_v48 }
 0x89d   :  { %v1018_v51 = vpop.f32.mrb[4].mxu1  ;;  %5079 = vmatprep.mubr.msk.f32.mxu0 %vm5595_vm1, %v5594_v39 }
 0x89e   :  { %v1022_v52 = vsel %vm5754_vm3, %v1018_v51, -1e+30  ;;  %v5076_v53 = vpop.f32.mrb[5].mxu1 }
 0x89f   :  { %v1023_v54 = vsel %vm229_vm2, %v1022_v52, -inf }
 0x8a0   :  { %1024 = vmax.xlane.f32.xlu0 %v1023_v54 }
 0x8b6   :  { %1033 = vrot.lane.b32.xlu0 %v5737_v44, %s6423_s29  ;;  %v1352_v44 = vpop.permute.xlu1 %1351 }
 0x8ba   :  { %1349 = vrot.lane.b32.xlu0 %v5735_v42, %s5598_s17 }
 0x92d   :  { %v1025_v55 = vpop.xlane.xlu0 %1024 }
 0x92e   :  { %v1026_v56 = vsub.f32 %v1022_v52, %v1025_v55 }
 0x930   :  { %v1027_v57 = vmul.f32 1.442695, %v1026_v56 }
 0x931   :  { %v1034_v58 = vpop.permute.xlu0 %1033 }
 0x932   :  { %5498 = vpow2.f32 %v1027_v57  ;;  %5078 = vmatpush3.msra.mxu0 %v1034_v58 }
 0x933   :  { %5087 = vmatprep.subr.mxu0 %v5594_v39 }
 0x935   :  { %v1350_v62 = vpop.permute.xlu0 %1349 }
 0x93c   :  { %v5499_v60 = vpop.eup %5498 }
 0x93d   :  { %5080 = vmatmul.mubr.msk.f32.vlgmr.msra.gmra.mrb[16].mxu0 %vm229_vm2, %v5499_v60  ;;  %v1029_v61 = vsel %vm229_vm2, %v5499_v60, 0.0 }
 0x93e   :  { %5088 = vmatpush3.xpose.msk.msra.mxu0 %vm229_vm2, %v1186_v59  ;;  %1030 = vadd.xlane.f32.xlu1 %v1029_v61 }
 0x93f   :  { %5089 = vmatprep.mubr.msk.f32.mxu0 %vm5595_vm1, %v5594_v39  ;;  %5097 = vmatprep.subr.mxu0 %v5594_v39 }
 0x941   :  { %5090 = vmatmul.mubr.msk.f32.vlgmr.msra.gmra.mrb[18].mxu0 %vm229_vm2, %v5735_v42 }
 0x942   :  { %5098 = vmatpush3.xpose.msk.msra.mxu0 %vm229_vm2, %v1352_v44  ;;  %5099 = vmatprep.mubr.msk.f32.mxu0 %vm5595_vm1, %v5594_v39 }
 0x943   :  { %5107 = vmatprep.subr.mxu0 %v5594_v39 }
 0x945   :  { %5100 = vmatmul.mubr.msk.f32.vlgmr.msra.gmra.mrb[20].mxu0 %vm229_vm2, %v1350_v62 }
 0x946   :  { %5108 = vmatpush3.msra.mxu0 %v5796_v13  ;;  %5109 = vmatprep.mubr.msk.f32.mxu0 %vm5595_vm1, %v5594_v39 }
 0x947   :  { %5117 = vmatprep.subr.mxu0 %v5594_v39 }
 0x94f   :  { %1438 = vrot.lane.b32.xlu1 %v5735_v42, %s5599_s18 }
 0x96f   :  { %v939_v63 = vpop.f32.mrb[14].mxu0 }
 0x970   :  { %v943_v0 = vadd.f32 %v939_v63, %v5813_v27  ;;  %v5071_v1 = vpop.f32.mrb[15].mxu0 }
 0x9cb   :  { %v1031_v5 = vpop.xlane.xlu1 %1030 }
 0x9cc   :  { %5500 = vrcp.f32 %v1031_v5 }
 0x9cf   :  { %v1439_v27 = vpop.permute.xlu1 %1438 }
 0x9d6   :  { %v5501_v6 = vpop.eup %5500 }
 0xa10   :  { %v1105_v8 = vpop.f32.mrb[16].mxu0 }
 0xa11   :  { %v1109_v9 = vmul.f32 %v5501_v6, %v1105_v8  ;;  %v5081_v10 = vpop.f32.mrb[17].mxu0 }
 0xa13   :  { %5085 = vmatmul.mubr.msk.f32.vlgmr.msra.gmra.mrb[6].mxu1 %vm229_vm2, %v1109_v9 }
 0xa14   :  { %v1257_v11 = vpop.f32.mrb[18].mxu0  ;;  %5094 = vmatprep.mubr.msk.f32.mxu1 %vm5595_vm1, %v5594_v39 }
 0xa15   :  { %v1261_v12 = vsel %vm5754_vm3, %v1257_v11, -1e+30  ;;  %v5091_v13 = vpop.f32.mrb[19].mxu0 }
 0xa16   :  { %v1262_v14 = vsel %vm229_vm2, %v1261_v12, -inf }
 0xa17   :  { %1263 = vmax.xlane.f32.xlu0 %v1262_v14 }
 0xa18   :  { %v1423_v15 = vpop.f32.mrb[20].mxu0 }
 0xa19   :  { %v1427_v16 = vsel %vm5754_vm3, %v1423_v15, -1e+30  ;;  %v5101_v17 = vpop.f32.mrb[21].mxu0 }
 0xa1a   :  { %v1428_v18 = vsel %vm229_vm2, %v1427_v16, -inf }
 0xa1b   :  { %1429 = vmax.xlane.f32.xlu0 %v1428_v18  ;;  %v4773_v18 = vld [vmem:[%s6415_s7] ss:$0 sm:$0xff] }
 0xa31   :  { %1272 = vrot.lane.b32.xlu0 %v5735_v42, %s5596_s15 }
 0xa35   :  { %1663 = vrot.lane.b32.xlu0 %v5735_v42, %s5604_s25 }
 0xa39   :  { %1661 = vrot.lane.b32.xlu0 %v5735_v42, %s5601_s1 }
 0xaa4   :  { %v1264_v19 = vpop.xlane.xlu0 %1263 }
 0xaa5   :  { %v1265_v20 = vsub.f32 %v1261_v12, %v1264_v19 }
 0xaa7   :  { %v1266_v21 = vmul.f32 1.442695, %v1265_v20 }
 0xaa8   :  { %v1430_v22 = vpop.xlane.xlu0 %1429 }
 0xaa9   :  { %5502 = vpow2.f32 %v1266_v21  ;;  %v1431_v23 = vsub.f32 %v1427_v16, %v1430_v22 }
 0xaab   :  { %v1432_v24 = vmul.f32 1.442695, %v1431_v23 }
 0xaac   :  { %v1273_v25 = vpop.permute.xlu0 %1272 }
 0xaad   :  { %5504 = vpow2.f32 %v1432_v24  ;;  %5093 = vmatpush3.msra.mxu1 %v1273_v25 }
 0xaae   :  { %5102 = vmatprep.subr.mxu1 %v5594_v39 }
 0xab0   :  { %v1664_v34 = vpop.permute.xlu0 %1663 }
 0xab3   :  { %v5503_v26 = vpop.eup %5502 }
 0xab4   :  { %5095 = vmatmul.mubr.msk.f32.vlgmr.msra.gmra.mrb[8].mxu1 %vm229_vm2, %v5503_v26  ;;  %v1268_v28 = vsel %vm229_vm2, %v5503_v26, 0.0  ;;  %v1662_v35 = vpop.permute.xlu0 %1661 }
 0xab5   :  { %5103 = vmatpush3.msra.mxu1 %v1439_v27  ;;  %1269 = vadd.xlane.f32.xlu0 %v1268_v28 }
 0xab6   :  { %5104 = vmatprep.mubr.msk.f32.mxu1 %vm5595_vm1, %v5594_v39  ;;  %5112 = vmatprep.subr.mxu1 %v5594_v39 }
 0xab7   :  { %v5505_v29 = vpop.eup %5504 }
 0xab8   :  { %5105 = vmatmul.mubr.msk.f32.vlgmr.msra.gmra.mrb[10].mxu1 %vm229_vm2, %v5505_v29  ;;  %v1434_v30 = vsel %vm229_vm2, %v5505_v29, 0.0 }
 0xab9   :  { %1435 = vadd.xlane.f32.xlu1 %v1434_v30  ;;  %5113 = vmatpush3.msra.mxu1 %v5785_v7 }
 0xaba   :  { %5114 = vmatprep.mubr.msk.f32.mxu1 %vm5595_vm1, %v5594_v39  ;;  %5122 = vmatprep.subr.mxu1 %v5594_v39 }
 0xaca   :  { %1750 = vrot.lane.b32.xlu1 %v5735_v42, %s5605_s26 }
 0xacb   :  { %1903 = vrot.lane.b32.xlu0 %v5735_v42, %s6427_s19 }
 0xae6   :  { %v1179_v31 = vpop.f32.mrb[6].mxu1 }
 0xae7   :  { %v5910_v32 = vadd.f32 %v1179_v31, %v943_v0  ;;  %v5086_v33 = vpop.f32.mrb[7].mxu1 }
 0xae9   :  { %v2141_v17 = vadd.f32 %v5910_v32, %v5694_v3 }
 0xaeb   :  { %v5954_v20 = vadd.f32 %v4773_v18, %v2141_v17  ;;  %v85_v17 = vld [vmem:[%s6420_s12 + $0x38] sm:$0xff] }
 0xaed   :  { %v2151_v21 = vsel %vm95_vm0, %v5954_v20, 0.0 }
 0xb42   :  { %v1270_v36 = vpop.xlane.xlu0 %1269 }
 0xb43   :  { %5506 = vrcp.f32 %v1270_v36 }
 0xb46   :  { %v1436_v7 = vpop.xlane.xlu1 %1435  ;;  %v1904_v62 = vpop.permute.xlu0 %1903 }
 0xb47   :  { %5508 = vrcp.f32 %v1436_v7 }
 0xb4a   :  { %v1751_v45 = vpop.permute.xlu1 %1750 }
 0xb4d   :  { %v5507_v37 = vpop.eup %5506 }
 0xb51   :  { %v5509_v46 = vpop.eup %5508 }
 0xb87   :  { %v1344_v38 = vpop.f32.mrb[8].mxu1 }
 0xb88   :  { %v1348_v40 = vmul.f32 %v5507_v37, %v1344_v38  ;;  %v5096_v41 = vpop.f32.mrb[9].mxu1 }
 0xb8a   :  { %5115 = vmatmul.mubr.msk.f32.vlgmr.msra.gmra.mrb[12].mxu1 %vm229_vm2, %v1348_v40 }
 0xb8b   :  { %5123 = vmatpush3.msra.mxu1 %v1751_v45  ;;  %v1510_v47 = vpop.f32.mrb[10].mxu1  ;;  %5124 = vmatprep.mubr.msk.f32.mxu1 %vm5595_vm1, %v5594_v39 }
 0xb8c   :  { %v1514_v48 = vmul.f32 %v5509_v46, %v1510_v47  ;;  %v5106_v49 = vpop.f32.mrb[11].mxu1  ;;  %5132 = vmatprep.subr.mxu1 %v5594_v39 }
 0xb8e   :  { %5110 = vmatmul.mubr.msk.f32.vlgmr.msra.gmra.mrb[22].mxu0 %vm229_vm2, %v1514_v48 }
 0xb8f   :  { %5118 = vmatpush3.xpose.msk.msra.mxu0 %vm229_vm2, %v1664_v34  ;;  %5119 = vmatprep.mubr.msk.f32.mxu0 %vm5595_vm1, %v5594_v39 }
 0xb90   :  { %5127 = vmatprep.subr.mxu0 %v5594_v39 }
 0xb92   :  { %5120 = vmatmul.mubr.msk.f32.vlgmr.msra.gmra.mrb[24].mxu0 %vm229_vm2, %v1662_v35 }
 0xb93   :  { %5128 = vmatpush3.msra.mxu0 %v5837_v43  ;;  %5129 = vmatprep.mubr.msk.f32.mxu0 %vm5595_vm1, %v5594_v39 }
 0xb94   :  { %5137 = vmatprep.subr.mxu0 %v5594_v39 }
 0xc5d   :  { %v1657_v51 = vpop.f32.mrb[12].mxu1 }
 0xc5e   :  { %v5116_v52 = vpop.f32.mrb[13].mxu1 }
 0xc5f   :  { %v4774_v52 = vld [vmem:[%s6416_s8] ss:$0 sm:$0xff] }
 0xc61   :  { %v1584_v53 = vpop.f32.mrb[22].mxu0 }
 0xc62   :  { %v1658_v54 = vadd.f32 %v1657_v51, %v1584_v53  ;;  %v5111_v55 = vpop.f32.mrb[23].mxu0 }
 0xc65   :  { %v1735_v56 = vpop.f32.mrb[24].mxu0 }
 0xc66   :  { %v1739_v57 = vsel %vm5754_vm3, %v1735_v56, -1e+30  ;;  %v5121_v58 = vpop.f32.mrb[25].mxu0 }
 0xc67   :  { %v1740_v59 = vsel %vm229_vm2, %v1739_v57, -inf  ;;  %v74_v58 = vld [vmem:[%s6418_s10 + $0x8] sm:$0xff] }
 0xc68   :  { %1741 = vmax.xlane.f32.xlu1 %v1740_v59 }
 0xc79   :  { %1901 = vrot.lane.b32.xlu1 %v5735_v42, %s6425_s20 }
 0xcf5   :  { %v1742_v43 = vpop.xlane.xlu1 %1741 }
 0xcf6   :  { %v1743_v60 = vsub.f32 %v1739_v57, %v1742_v43  ;;  %v73_v57 = vld [vmem:[%s6418_s10] sm:$0xff]  ;;  %v75_v43 = vld [vmem:[%s6418_s10 + $0x10] sm:$0xff] }
 0xcf7   :  { %v5378_v59 = vpack.c.bf16 %v74_v58, %v73_v57  ;;  %v4779_v57 = vld [vmem:[%s6421_s13] ss:$0 sm:$0xff] }
 0xcf8   :  { %v1744_v61 = vmul.f32 1.442695, %v1743_v60  ;;  %v76_v60 = vld [vmem:[%s6418_s10 + $0x18] sm:$0xff] }
 0xcf9   :  { %v1902_v0 = vpop.permute.xlu1 %1901 }
 0xcfa   :  { %5510 = vpow2.f32 %v1744_v61  ;;  %v5382_v61 = vpack.c.bf16 %v76_v60, %v75_v43 }
 0xd04   :  { %v5511_v44 = vpop.eup %5510 }
 0xd05   :  { %5125 = vmatmul.mubr.msk.f32.vlgmr.msra.gmra.mrb[14].mxu1 %vm229_vm2, %v5511_v44  ;;  %v1746_v63 = vsel %vm229_vm2, %v5511_v44, 0.0  ;;  %v78_v44 = vld [vmem:[%s6420_s12] sm:$0xff] }
 0xd06   :  { %5133 = vmatpush3.xpose.msk.msra.mxu1 %vm229_vm2, %v1904_v62  ;;  %1747 = vadd.xlane.f32.xlu1 %v1746_v63  ;;  %v79_v62 = vld [vmem:[%s6420_s12 + $0x8] sm:$0xff] }
 0xd07   :  { %5134 = vmatprep.mubr.msk.f32.mxu1 %vm5595_vm1, %v5594_v39  ;;  %5142 = vmatprep.subr.mxu1 %v5594_v39  ;;  %v5386_v63 = vpack.c.bf16 %v79_v62, %v78_v44 }
 0xd09   :  { %5135 = vmatmul.mubr.msk.f32.vlgmr.msra.gmra.mrb[16].mxu1 %vm229_vm2, %v1902_v0 }
 0xd0a   :  { %5143 = vmatpush3.msra.mxu1 %v5875_v2  ;;  %5144 = vmatprep.mubr.msk.f32.mxu1 %vm5595_vm1, %v5594_v39 }
 0xd0b   :  { %5387 = vmatprep.subr.bf16.mxu1 %v5386_v63 }
 0xd93   :  { %v1748_v1 = vpop.xlane.xlu1 %1747 }
 0xd94   :  { %5512 = vrcp.f32 %v1748_v1 }
 0xd9e   :  { %v5513_v5 = vpop.eup %5512 }
 0xdd8   :  { %v1822_v6 = vpop.f32.mrb[14].mxu1 }
 0xdd9   :  { %v1826_v8 = vmul.f32 %v5513_v5, %v1822_v6  ;;  %v5126_v9 = vpop.f32.mrb[15].mxu1 }
 0xddb   :  { %5130 = vmatmul.mubr.msk.f32.vlgmr.msra.gmra.mrb[26].mxu0 %vm229_vm2, %v1826_v8 }
 0xddc   :  { %v1975_v10 = vpop.f32.mrb[16].mxu1  ;;  %5139 = vmatprep.mubr.msk.f32.mxu0 %vm5595_vm1, %v5594_v39 }
 0xddd   :  { %v1979_v11 = vsel %vm5754_vm3, %v1975_v10, -1e+30  ;;  %v5136_v12 = vpop.f32.mrb[17].mxu1 }
 0xdde   :  { %v1980_v2 = vsel %vm229_vm2, %v1979_v11, -inf  ;;  %v81_v12 = vld [vmem:[%s6420_s12 + $0x18] sm:$0xff] }
 0xddf   :  { %1981 = vmax.xlane.f32.xlu0 %v1980_v2 }
 0xdf5   :  { %1990 = vrot.lane.b32.xlu0 %v5735_v42, %s6423_s29 }
 0xe6c   :  { %v1982_v13 = vpop.xlane.xlu0 %1981 }
 0xe6d   :  { %v1983_v14 = vsub.f32 %v1979_v11, %v1982_v13  ;;  %v80_v11 = vld [vmem:[%s6420_s12 + $0x10] sm:$0xff]  ;;  %v82_v13 = vld [vmem:[%s6420_s12 + $0x20] sm:$0xff] }
 0xe6e   :  { %v5390_v2 = vpack.c.bf16 %v81_v12, %v80_v11  ;;  %v4782_v12 = vld [vmem:[%s6412_s4 + $0x20] sm:$0xff] }
 0xe6f   :  { %v1984_v15 = vmul.f32 1.442695, %v1983_v14  ;;  %v83_v14 = vld [vmem:[%s6420_s12 + $0x28] sm:$0xff] }
 0xe70   :  { %v1991_v16 = vpop.permute.xlu0 %1990 }
 0xe71   :  { %5514 = vpow2.f32 %v1984_v15  ;;  %5138 = vmatpush3.msra.mxu0 %v1991_v16  ;;  %v5394_v15 = vpack.c.bf16 %v83_v14, %v82_v13  ;;  %v84_v16 = vld [vmem:[%s6420_s12 + $0x30] sm:$0xff] }
 0xe72   :  { %5379 = vmatprep.subr.bf16.mxu0 %v5378_v59  ;;  %v4784_v14 = vld [vmem:[%s6412_s4 + $0x30] sm:$0xff] }
 0xe7b   :  { %v5515_v19 = vpop.eup %5514 }
 0xe7c   :  { %5140 = vmatmul.mubr.msk.f32.vlgmr.msra.gmra.mrb[28].mxu0 %vm229_vm2, %v5515_v19  ;;  %v1986_v42 = vsel %vm229_vm2, %v5515_v19, 0.0  ;;  %v86_v19 = vld [vmem:[%s6420_s12 + $0x40] sm:$0xff] }
 0xe7d   :  { %1987 = vadd.xlane.f32.xlu1 %v1986_v42  ;;  %5381 = vmatpush3.bf16.msra.mxu0 %v5378_v59  ;;  %v87_v42 = vld [vmem:[%s6420_s12 + $0x48] sm:$0xff] }
 0xe7e   :  { %5383 = vmatprep.subr.bf16.mxu0 %v5382_v61 }
 0xe81   :  { %2152 = vadd.xlane.f32.xlu1 %v2151_v21  ;;  %5385 = vmatpush3.bf16.msra.mxu0 %v5382_v61  ;;  %v5402_v21 = vpack.c.bf16 %v87_v42, %v86_v19 }
 0xeae   :  { %v1896_v22 = vpop.f32.mrb[26].mxu0 }
 0xeaf   :  { %v1900_v23 = vadd.f32 %v1896_v22, %v1658_v54  ;;  %v5131_v24 = vpop.f32.mrb[27].mxu0  ;;  %v4775_v54 = vld [vmem:[%s6417_s9] ss:$0 sm:$0xff]  ;;  %v88_v22 = vld [vmem:[%s6420_s12 + $0x50] sm:$0xff] }
 0xf0a   :  { %v1988_v3 = vpop.xlane.xlu1 %1987 }
 0xf0b   :  { %5516 = vrcp.f32 %v1988_v3  ;;  %v90_v3 = vld [vmem:[%s6420_s12 + $0x60] sm:$0xff] }
 0xf0e   :  { %v2153_v29 = vpop.xlane.xlu1 %2152 }
 0xf0f   :  { %v2157_v30 = vmul.f32 0.03125, %v2153_v29 }
 0xf11   :  { %v2159_v34 = vsub.f32 %v5954_v20, %v2157_v30  ;;  %v4776_v30 = vld [vmem:[%s6419_s11] ss:$0 sm:$0xff] }
 0xf13   :  { %v2161_v37 = vmul.f32 %v2159_v34, %v2159_v34 }
 0xf15   :  { %v5517_v25 = vpop.eup %5516  ;;  %v2163_v38 = vsel %vm95_vm0, %v2161_v37, 0.0 }
 0xf4f   :  { %v2062_v26 = vpop.f32.mrb[28].mxu0 }
 0xf50   :  { %v2066_v27 = vmul.f32 %v5517_v25, %v2062_v26  ;;  %v5141_v28 = vpop.f32.mrb[29].mxu0  ;;  %v91_v25 = vld [vmem:[%s6420_s12 + $0x68] sm:$0xff] }
 0xf51   :  { %v5410_v26 = vpack.c.bf16 %v91_v25, %v90_v3  ;;  %v93_v28 = vld [vmem:[%s6420_s12 + $0x78] sm:$0xff]  ;;  %v4817_v25 = vld [vmem:[%s6411_s3 + $0x1] ss:$0 sm:$0xff]  ;;  %s6431_s3 = smov 72  }
 0xf52   :  { %5145 = vmatmul.mubr.msk.f32.vlgmr.msra.gmra.mrb[18].mxu1 %vm229_vm2, %v2066_v27  ;;  %v92_v27 = vld [vmem:[%s6420_s12 + $0x70] sm:$0xff] }
 0xf53   :  { %5389 = vmatpush3.bf16.msra.mxu1 %v5386_v63  ;;  %v5414_v29 = vpack.c.bf16 %v93_v28, %v92_v27 }
 0xf54   :  { %5391 = vmatprep.subr.bf16.mxu1 %v5390_v2 }
 0xf57   :  { %5393 = vmatpush3.bf16.msra.mxu1 %v5390_v2  ;;  %v4783_v2 = vld [vmem:[%s6412_s4 + $0x28] sm:$0xff] }
 0xf58   :  { %5395 = vmatprep.subr.bf16.mxu1 %v5394_v15  ;;  %v5418_v13 = vpack.c.bf16 %v4783_v2, %v4782_v12 }
 0xf5a   :  { %5419 = vmatprep.subr.bf16.mxu0 %v5418_v13 }
 0xf5b   :  { %5397 = vmatpush3.bf16.msra.mxu1 %v5394_v15  ;;  %v4785_v15 = vld [vmem:[%s6412_s4 + $0x38] sm:$0xff] }
0x1025   :  { %v2136_v31 = vpop.f32.mrb[18].mxu1 }
0x1026   :  { %v2140_v32 = vadd.f32 %v2136_v31, %v1900_v23  ;;  %v5146_v33 = vpop.f32.mrb[19].mxu1  ;;  %v89_v23 = vld [vmem:[%s6420_s12 + $0x58] sm:$0xff] }
0x1027   :  { %v5406_v24 = vpack.c.bf16 %v89_v23, %v88_v22 }
0x1028   :  { %v2142_v35 = vadd.f32 %v2140_v32, %v5696_v4 }
0x102a   :  { %v5963_v36 = vadd.f32 %v4773_v18, %v2142_v35  ;;  %v5398_v18 = vpack.c.bf16 %v85_v17, %v84_v16  ;;  %v5422_v16 = vpack.c.bf16 %v4785_v15, %v4784_v14 }
0x102c   :  { %v2154_v7 = vsel %vm95_vm0, %v5963_v36, 0.0  ;;  %5399 = vmatprep.subr.bf16.mxu1 %v5398_v18 }
0x102d   :  { %2155 = vadd.xlane.f32.xlu1 %v2154_v7  ;;  %5401 = vmatpush3.bf16.msra.mxu1 %v5398_v18 }
0x102e   :  { %5403 = vmatprep.subr.bf16.mxu1 %v5402_v21 }
0x1031   :  { %2164 = vadd.xlane.f32.xlu1 %v2163_v38  ;;  %5405 = vmatpush3.bf16.msra.mxu1 %v5402_v21 }
0x1032   :  { %5407 = vmatprep.subr.bf16.mxu1 %v5406_v24 }
0x1035   :  { %5409 = vmatpush3.bf16.msra.mxu1 %v5406_v24  ;;  %v4816_v24 = vld [vmem:[%s6410_s2 + $0x1] ss:$0 sm:$0xff] }
0x1036   :  { %5411 = vmatprep.subr.bf16.mxu1 %v5410_v26 }
0x1039   :  { %5413 = vmatpush3.bf16.msra.mxu1 %v5410_v26 }
0x103a   :  { %5415 = vmatprep.subr.bf16.mxu1 %v5414_v29 }
0x103d   :  { %5417 = vmatpush3.bf16.msra.mxu1 %v5414_v29 }
0x103e   :  { %5229 = vmatprep.subr.mxu1 %v5594_v39 }
0x10ba   :  { %v2156_v40 = vpop.xlane.xlu1 %2155 }
0x10bb   :  { %v2158_v41 = vmul.f32 0.03125, %v2156_v40 }
0x10bd   :  { %v2160_v45 = vsub.f32 %v5963_v36, %v2158_v41 }
0x10be   :  { %v2165_v46 = vpop.xlane.xlu1 %2164 }
0x10bf   :  { %v2169_v47 = vmul.f32 0.03125, %v2165_v46  ;;  %v2162_v48 = vmul.f32 %v2160_v45, %v2160_v45 }
0x10c1   :  { %v2171_v49 = vadd.f32 1e-05, %v2169_v47  ;;  %v2166_v4 = vsel %vm95_vm0, %v2162_v48, 0.0 }
0x10c2   :  { %2167 = vadd.xlane.f32.xlu1 %v2166_v4 }
0x10c3   :  { %5518 = vrsqrt.f32 %v2171_v49 }
0x10cd   :  { %v5519_v51 = vpop.eup %5518 }
0x10ce   :  { %v2175_v53 = vmul.f32 %v5519_v51, %v2159_v34 }
0x10d0   :  { %v2183_v55 = vmul.f32 %v4774_v52, %v2175_v53 }
0x10d2   :  { %v2191_v56 = vadd.f32 %v4775_v54, %v2183_v55 }
0x10d4   :  { %5155 = vmatprep.mubr.msk.f32.mxu0 %vm95_vm0, %v2191_v56 }
0x114f   :  { %v2168_v0 = vpop.xlane.xlu1 %2167 }
0x1150   :  { %v2170_v1 = vmul.f32 0.03125, %v2168_v0 }
0x1152   :  { %v2172_v5 = vadd.f32 1e-05, %v2170_v1 }
0x1154   :  { %5520 = vrsqrt.f32 %v2172_v5 }
0x115e   :  { %v5521_v6 = vpop.eup %5520 }
0x115f   :  { %v2176_v8 = vmul.f32 %v5521_v6, %v2160_v45 }
0x1161   :  { %v2184_v9 = vmul.f32 %v4774_v52, %v2176_v8 }
0x1163   :  { %v2192_v10 = vadd.f32 %v4775_v54, %v2184_v9 }
0x1165   :  { %5156 = vmatmul.mubr.msk.f32.vlgmr.msra.gmra.mrb[30].mxu0 %vm95_vm0, %v2192_v10 }
0x1166   :  { %5421 = vmatpush3.bf16.msra.mxu0 %v5418_v13 }
0x1167   :  { %5423 = vmatprep.subr.bf16.mxu0 %v5422_v16 }
0x116a   :  { %5425 = vmatpush3.bf16.msra.mxu0 %v5422_v16 }
0x116b   :  { %5204 = vmatprep.subr.mxu0 %v5594_v39 }
0x1238   :  { %v5157_v31 = vpop.f32.mrb[30].mxu0 }
0x1239   :  { %v2277_v32 = vadd.f32 %v5157_v31, %v4776_v30  ;;  %v2271_v33 = vpop.f32.mrb[31].mxu0 }
0x123a   :  { %v2272_v34 = vadd.f32 %v4776_v30, %v2271_v33 }
0x123b   :  { %v2283_v35 = vmul.f32 0.044715, %v2277_v32  ;;  %v2281_v54 = vmul.f32 0.5, %v2277_v32 }
0x123c   :  { %v2282_v7 = vmul.f32 0.044715, %v2272_v34  ;;  %v2280_v52 = vmul.f32 0.5, %v2272_v34 }
0x123d   :  { %v2285_v37 = vmul.f32 %v2283_v35, %v2277_v32 }
0x123e   :  { %v2284_v38 = vmul.f32 %v2282_v7, %v2272_v34 }
0x123f   :  { %v2287_v40 = vmul.f32 %v2285_v37, %v2277_v32 }
0x1240   :  { %v2286_v41 = vmul.f32 %v2284_v38, %v2272_v34 }
0x1241   :  { %v2289_v45 = vadd.f32 %v2287_v40, %v2277_v32  ;;  %v4818_v32 = vld [vmem:[%s6413_s5 + $0x1] ss:$0 sm:$0xff]  ;;  %s6432_s5 = smov 104  }
0x1242   :  { %v2288_v46 = vadd.f32 %v2286_v41, %v2272_v34 }
0x1243   :  { %v2291_v47 = vmul.f32 0.7978846, %v2289_v45 }
0x1244   :  { %v2290_v48 = vmul.f32 0.7978846, %v2288_v46 }
0x1245   :  { %5522 = vtanh.f32 %v2291_v47 }
0x1246   :  { %5524 = vtanh.f32 %v2290_v48 }
0x124f   :  { %v5523_v49 = vpop.eup %5522 }
0x1250   :  { %v5525_v4 = vpop.eup %5524  ;;  %v2295_v51 = vadd.f32 1.0, %v5523_v49 }
0x1251   :  { %v2294_v53 = vadd.f32 1.0, %v5525_v4 }
0x1252   :  { %v2297_v56 = vmul.f32 %v2295_v51, %v2281_v54 }
0x1253   :  { %v2296_v55 = vmul.f32 %v2294_v53, %v2280_v52 }
0x1255   :  { %5190 = vmatprep.mubr.f32.mxu1 %v2296_v55 }
0x1256   :  { %5191 = vmatmul.mubr.f32.vlgmr.msra.gmra.mrb[20].mxu1 %v2297_v56 }
0x1257   :  { %5231 = vmatprep.mubr.msk.f32.mxu1 %vm5595_vm1, %v5594_v39 }
0x1329   :  { %v5192_v58 = vpop.f32.mrb[20].mxu1 }
0x132a   :  { %v2374_v59 = vadd.f32 %v5192_v58, %v5963_v36  ;;  %v2364_v43 = vpop.f32.mrb[21].mxu1 }
0x132b   :  { %v2373_v60 = vadd.f32 %v2364_v43, %v5954_v20 }
0x132c   :  { %v6049_v61 = vadd.f32 %v4779_v57, %v2374_v59 }
0x132d   :  { %v6051_v44 = vadd.f32 %v4779_v57, %v2373_v60 }
0x132e   :  { %v2434_v62 = vsel %vm95_vm0, %v6049_v61, 0.0 }
0x132f   :  { %2435 = vadd.xlane.f32.xlu0 %v2434_v62  ;;  %v2431_v63 = vsel %vm95_vm0, %v6051_v44, 0.0 }
0x1330   :  { %2432 = vadd.xlane.f32.xlu1 %v2431_v63 }
0x13bc   :  { %v2436_v0 = vpop.xlane.xlu0 %2435 }
0x13bd   :  { %v2438_v1 = vmul.f32 0.03125, %v2436_v0  ;;  %v2433_v5 = vpop.xlane.xlu1 %2432 }
0x13be   :  { %v2437_v6 = vmul.f32 0.03125, %v2433_v5  ;;  %v6141_v5 = vld [vmem:[%s6414_s6 + $0x20] sm:$0xff] }
0x13bf   :  { %v2440_v36 = vsub.f32 %v6049_v61, %v2438_v1  ;;  %5230 = vmatpush3.msra.mxu1 %v6141_v5 }
0x13c0   :  { %v2439_v20 = vsub.f32 %v6051_v44, %v2437_v6  ;;  %5239 = vmatprep.subr.mxu1 %v5594_v39  ;;  %v6148_v6 = vld [vmem:[%s6414_s6 + $0x28] sm:$0xff] }
0x13c1   :  { %v2442_v10 = vmul.f32 %v2440_v36, %v2440_v36 }
0x13c2   :  { %v2441_v8 = vmul.f32 %v2439_v20, %v2439_v20 }
0x13c3   :  { %v2446_v11 = vsel %vm95_vm0, %v2442_v10, 0.0 }
0x13c4   :  { %v2443_v9 = vsel %vm95_vm0, %v2441_v8, 0.0 }
0x13c5   :  { %2444 = vadd.xlane.f32.xlu1 %v2443_v9 }
0x13c9   :  { %2447 = vadd.xlane.f32.xlu1 %v2446_v11 }
0x1452   :  { %v2445_v17 = vpop.xlane.xlu1 %2444 }
0x1453   :  { %v2449_v18 = vmul.f32 0.03125, %v2445_v17 }
0x1455   :  { %v2451_v19 = vadd.f32 1e-05, %v2449_v18 }
0x1456   :  { %v2448_v42 = vpop.xlane.xlu1 %2447 }
0x1457   :  { %5526 = vrsqrt.f32 %v2451_v19  ;;  %v2450_v21 = vmul.f32 0.03125, %v2448_v42 }
0x1459   :  { %v2452_v22 = vadd.f32 1e-05, %v2450_v21 }
0x145b   :  { %5528 = vrsqrt.f32 %v2452_v22 }
0x1461   :  { %v5527_v23 = vpop.eup %5526 }
0x1462   :  { %v2455_v3 = vmul.f32 %v5527_v23, %v2439_v20 }
0x1464   :  { %v2463_v26 = vmul.f32 %v4816_v24, %v2455_v3 }
0x1465   :  { %v5529_v27 = vpop.eup %5528 }
0x1466   :  { %v2456_v28 = vmul.f32 %v5529_v27, %v2440_v36  ;;  %v2471_v29 = vadd.f32 %v4817_v25, %v2463_v26 }
0x1468   :  { %v2464_v30 = vmul.f32 %v4816_v24, %v2456_v28  ;;  %5201 = vmatprep.mubr.msk.f32.mxu0 %vm95_vm0, %v2471_v29 }
0x146a   :  { %v2472_v31 = vadd.f32 %v4817_v25, %v2464_v30 }
0x146c   :  { %5202 = vmatmul.mubr.msk.f32.vlgmr.msra.gmra.mrb[32].mxu0 %vm95_vm0, %v2472_v31  ;;  %v6185_v31 = vld [vmem:[%s6414_s6 + $0x30] sm:$0xff] }
0x146d   :  { %5206 = vmatprep.mubr.msk.f32.mxu0 %vm5595_vm1, %v5594_v39 }
0x153f   :  { %v5203_v33 = vpop.f32.mrb[32].mxu0 }
0x1540   :  { %v6087_v34 = vadd.f32 %v5203_v33, %v4818_v32  ;;  %v2551_v35 = vpop.f32.mrb[33].mxu0 }
0x1541   :  { %v6089_v7 = vadd.f32 %v4818_v32, %v2551_v35 }
0x1543   :  { %2648 = vrot.lane.b32.xlu0 %v6089_v7, %s5596_s15  ;;  %2561 = vrot.lane.b32.xlu1 %v6089_v7, %s5597_s16 }
0x1547   :  { %2727 = vrot.lane.b32.xlu0 %v6089_v7, %s5600_s0 }
0x154b   :  { %2725 = vrot.lane.b32.xlu0 %v6089_v7, %s5598_s17 }
0x15b5   :  { %v2562_v37 = vpop.permute.xlu1 %2561  ;;  %v2649_v38 = vpop.permute.xlu0 %2648 }
0x15b6   :  { %5205 = vmatpush3.xpose.msk.msra.mxu0 %vm229_vm2, %v2562_v37 }
0x15b7   :  { %5209 = vmatprep.subr.mxu0 %v5594_v39 }
0x15b9   :  { %5207 = vmatmul.mubr.msk.f32.vlgmr.msra.gmra.mrb[34].mxu0 %vm229_vm2, %v6089_v7  ;;  %v2728_v4 = vpop.permute.xlu0 %2727 }
0x15ba   :  { %5210 = vmatpush3.msra.mxu0 %v2649_v38  ;;  %5211 = vmatprep.mubr.msk.f32.mxu0 %vm5595_vm1, %v5594_v39 }
0x15bb   :  { %5214 = vmatprep.subr.mxu0 %v5594_v39 }
0x15bd   :  { %v2726_v52 = vpop.permute.xlu0 %2725 }
0x168c   :  { %v2633_v40 = vpop.f32.mrb[34].mxu0 }
0x168d   :  { %v2637_v41 = vsel %vm5754_vm3, %v2633_v40, -1e+30  ;;  %v5208_v45 = vpop.f32.mrb[35].mxu0 }
0x168e   :  { %v2638_v46 = vsel %vm229_vm2, %v2637_v41, -inf }
0x168f   :  { %2639 = vmax.xlane.f32.xlu1 %v2638_v46 }
0x16a0   :  { %2814 = vrot.lane.b32.xlu1 %v6089_v7, %s5599_s18 }
0x171c   :  { %v2640_v47 = vpop.xlane.xlu1 %2639 }
0x171d   :  { %v2641_v48 = vsub.f32 %v2637_v41, %v2640_v47 }
0x171f   :  { %v2642_v49 = vmul.f32 1.442695, %v2641_v48 }
0x1720   :  { %v2815_v53 = vpop.permute.xlu1 %2814 }
0x1721   :  { %5530 = vpow2.f32 %v2642_v49 }
0x172b   :  { %v5531_v51 = vpop.eup %5530 }
0x172c   :  { %5212 = vmatmul.mubr.msk.f32.vlgmr.msra.gmra.mrb[36].mxu0 %vm229_vm2, %v5531_v51  ;;  %v2644_v1 = vsel %vm229_vm2, %v5531_v51, 0.0 }
0x172d   :  { %5215 = vmatpush3.xpose.msk.msra.mxu0 %vm229_vm2, %v2728_v4  ;;  %5216 = vmatprep.mubr.msk.f32.mxu0 %vm5595_vm1, %v5594_v39 }
0x172e   :  { %5219 = vmatprep.subr.mxu0 %v5594_v39 }
0x1730   :  { %5217 = vmatmul.mubr.msk.f32.vlgmr.msra.gmra.mrb[38].mxu0 %vm229_vm2, %v2726_v52 }
0x1731   :  { %5220 = vmatpush3.msra.mxu0 %v2815_v53  ;;  %5221 = vmatprep.mubr.msk.f32.mxu0 %vm5595_vm1, %v5594_v39 }
0x1732   :  { %5224 = vmatprep.subr.mxu0 %v5594_v39 }
0x17ff   :  { %v2720_v54 = vpop.f32.mrb[36].mxu0 }
0x1800   :  { %v5213_v55 = vpop.f32.mrb[37].mxu0 }
0x1803   :  { %v2799_v56 = vpop.f32.mrb[38].mxu0 }
0x1804   :  { %v2803_v57 = vsel %vm5754_vm3, %v2799_v56, -1e+30  ;;  %v5218_v58 = vpop.f32.mrb[39].mxu0 }
0x1805   :  { %v2804_v59 = vsel %vm229_vm2, %v2803_v57, -inf  ;;  %v6221_v58 = vld [vmem:[%s6414_s6 + $0x38] sm:$0xff] }
0x1806   :  { %2805 = vmax.xlane.f32.xlu0 %v2804_v59 }
0x181c   :  { %3039 = vrot.lane.b32.xlu0 %v6089_v7, %s5604_s25 }
0x1820   :  { %3037 = vrot.lane.b32.xlu0 %v6089_v7, %s5601_s1 }
0x1893   :  { %v2806_v43 = vpop.xlane.xlu0 %2805 }
0x1894   :  { %v2807_v60 = vsub.f32 %v2803_v57, %v2806_v43 }
0x1896   :  { %v2808_v62 = vmul.f32 1.442695, %v2807_v60 }
0x1897   :  { %v3040_v12 = vpop.permute.xlu0 %3039 }
0x1898   :  { %5532 = vpow2.f32 %v2808_v62 }
0x189b   :  { %v3038_v15 = vpop.permute.xlu0 %3037 }
0x18a2   :  { %v5533_v63 = vpop.eup %5532 }
0x18a3   :  { %5222 = vmatmul.mubr.msk.f32.vlgmr.msra.gmra.mrb[40].mxu0 %vm229_vm2, %v5533_v63  ;;  %v2810_v0 = vsel %vm229_vm2, %v5533_v63, 0.0 }
0x18a4   :  { %2811 = vadd.xlane.f32.xlu1 %v2810_v0  ;;  %5226 = vmatprep.mubr.msk.f32.mxu0 %vm5595_vm1, %v5594_v39 }
0x18a5   :  { %5225 = vmatpush3.msra.mxu0 %v6148_v6 }
0x18a6   :  { %5234 = vmatprep.subr.mxu0 %v5594_v39 }
0x18a8   :  { %2645 = vadd.xlane.f32.xlu1 %v2644_v1 }
0x18b9   :  { %3126 = vrot.lane.b32.xlu1 %v6089_v7, %s5605_s26 }
0x18bd   :  { %3279 = vrot.lane.b32.xlu1 %v6089_v7, %s6431_s3 }
0x18c1   :  { %3277 = vrot.lane.b32.xlu1 %v6089_v7, %s6432_s5 }
0x1931   :  { %v2812_v36 = vpop.xlane.xlu1 %2811 }
0x1935   :  { %v2646_v20 = vpop.xlane.xlu1 %2645 }
0x1936   :  { %5534 = vrcp.f32 %v2646_v20 }
0x1937   :  { %5536 = vrcp.f32 %v2812_v36 }
0x1939   :  { %v3127_v10 = vpop.permute.xlu1 %3126 }
0x193d   :  { %v3280_v27 = vpop.permute.xlu1 %3279 }
0x1940   :  { %v5535_v8 = vpop.eup %5534 }
0x1941   :  { %v2724_v9 = vmul.f32 %v5535_v8, %v2720_v54  ;;  %v5537_v11 = vpop.eup %5536  ;;  %v3278_v30 = vpop.permute.xlu1 %3277 }
0x1943   :  { %5232 = vmatmul.mubr.msk.f32.vlgmr.msra.gmra.mrb[22].mxu1 %vm229_vm2, %v2724_v9 }
0x1944   :  { %5240 = vmatpush3.msra.mxu1 %v3127_v10  ;;  %5241 = vmatprep.mubr.msk.f32.mxu1 %vm5595_vm1, %v5594_v39 }
0x1945   :  { %5249 = vmatprep.subr.mxu1 %v5594_v39 }
0x1976   :  { %v2886_v2 = vpop.f32.mrb[40].mxu0 }
0x1977   :  { %v2890_v13 = vmul.f32 %v5537_v11, %v2886_v2  ;;  %v5223_v14 = vpop.f32.mrb[41].mxu0 }
0x1979   :  { %5227 = vmatmul.mubr.msk.f32.vlgmr.msra.gmra.mrb[42].mxu0 %vm229_vm2, %v2890_v13 }
0x197a   :  { %5235 = vmatpush3.xpose.msk.msra.mxu0 %vm229_vm2, %v3040_v12  ;;  %5236 = vmatprep.mubr.msk.f32.mxu0 %vm5595_vm1, %v5594_v39 }
0x197b   :  { %5244 = vmatprep.subr.mxu0 %v5594_v39 }
0x197d   :  { %5237 = vmatmul.mubr.msk.f32.vlgmr.msra.gmra.mrb[44].mxu0 %vm229_vm2, %v3038_v15 }
0x197e   :  { %5246 = vmatprep.mubr.msk.f32.mxu0 %vm5595_vm1, %v5594_v39  ;;  %5245 = vmatpush3.msra.mxu0 %v6185_v31 }
0x197f   :  { %5254 = vmatprep.subr.mxu0 %v5594_v39 }
0x1a16   :  { %v3033_v16 = vpop.f32.mrb[22].mxu1 }
0x1a17   :  { %v5233_v17 = vpop.f32.mrb[23].mxu1 }
0x1a4c   :  { %v2960_v18 = vpop.f32.mrb[42].mxu0 }
0x1a4d   :  { %v6164_v19 = vadd.f32 %v3033_v16, %v2960_v18  ;;  %v5228_v42 = vpop.f32.mrb[43].mxu0 }
0x1a50   :  { %v3111_v21 = vpop.f32.mrb[44].mxu0 }
0x1a51   :  { %v3115_v22 = vsel %vm5754_vm3, %v3111_v21, -1e+30  ;;  %v5238_v23 = vpop.f32.mrb[45].mxu0 }
0x1a52   :  { %v3116_v24 = vsel %vm229_vm2, %v3115_v22, -inf }
0x1a53   :  { %3117 = vmax.xlane.f32.xlu0 %v3116_v24 }
0x1a69   :  { %3366 = vrot.lane.b32.xlu0 %v6089_v7, %s6433_s24 }
0x1ae0   :  { %v3118_v3 = vpop.xlane.xlu0 %3117 }
0x1ae1   :  { %v3119_v25 = vsub.f32 %v3115_v22, %v3118_v3 }
0x1ae3   :  { %v3120_v26 = vmul.f32 1.442695, %v3119_v25 }
0x1ae4   :  { %v3367_v38 = vpop.permute.xlu0 %3366 }
0x1ae5   :  { %5538 = vpow2.f32 %v3120_v26 }
0x1aef   :  { %v5539_v28 = vpop.eup %5538 }
0x1af0   :  { %5242 = vmatmul.mubr.msk.f32.vlgmr.msra.gmra.mrb[24].mxu1 %vm229_vm2, %v5539_v28  ;;  %v3122_v29 = vsel %vm229_vm2, %v5539_v28, 0.0 }
0x1af1   :  { %5250 = vmatpush3.xpose.msk.msra.mxu1 %vm229_vm2, %v3280_v27  ;;  %3123 = vadd.xlane.f32.xlu1 %v3122_v29 }
0x1af2   :  { %5251 = vmatprep.mubr.msk.f32.mxu1 %vm5595_vm1, %v5594_v39  ;;  %5259 = vmatprep.subr.mxu1 %v5594_v39 }
0x1af4   :  { %5252 = vmatmul.mubr.msk.f32.vlgmr.msra.gmra.mrb[26].mxu1 %vm229_vm2, %v3278_v30 }
0x1af5   :  { %5261 = vmatprep.mubr.msk.f32.mxu1 %vm5595_vm1, %v5594_v39  ;;  %5260 = vmatpush3.msra.mxu1 %v6221_v58 }
0x1af6   :  { %5269 = vmatprep.subr.mxu1 %v5594_v39 }
0x1b02   :  { %3682 = vrot.lane.b32.xlu1 %v6087_v34, %s5598_s17 }
0x1b7e   :  { %v3124_v32 = vpop.xlane.xlu1 %3123 }
0x1b7f   :  { %5540 = vrcp.f32 %v3124_v32 }
0x1b82   :  { %v3683_v54 = vpop.permute.xlu1 %3682 }
0x1b89   :  { %v5541_v33 = vpop.eup %5540 }
0x1bc3   :  { %v3198_v35 = vpop.f32.mrb[24].mxu1 }
0x1bc4   :  { %v3202_v7 = vmul.f32 %v5541_v33, %v3198_v35  ;;  %v5243_v37 = vpop.f32.mrb[25].mxu1 }
0x1bc6   :  { %5247 = vmatmul.mubr.msk.f32.vlgmr.msra.gmra.mrb[46].mxu0 %vm229_vm2, %v3202_v7 }
0x1bc7   :  { %5255 = vmatpush3.msra.mxu0 %v3367_v38  ;;  %v3351_v40 = vpop.f32.mrb[26].mxu1  ;;  %5256 = vmatprep.mubr.msk.f32.mxu0 %vm5595_vm1, %v5594_v39 }
0x1bc8   :  { %v3355_v41 = vsel %vm5754_vm3, %v3351_v40, -1e+30  ;;  %v5253_v45 = vpop.f32.mrb[27].mxu1  ;;  %5264 = vmatprep.subr.mxu0 %v5594_v39 }
0x1bc9   :  { %v3356_v46 = vsel %vm229_vm2, %v3355_v41, -inf }
0x1bca   :  { %3357 = vmax.xlane.f32.xlu0 %v3356_v46 }
0x1be0   :  { %3518 = vrot.lane.b32.xlu0 %v6087_v34, %s5597_s16 }
0x1be4   :  { %3684 = vrot.lane.b32.xlu0 %v6087_v34, %s5600_s0 }
0x1c57   :  { %v3358_v47 = vpop.xlane.xlu0 %3357 }
0x1c58   :  { %v3359_v48 = vsub.f32 %v3355_v41, %v3358_v47 }
0x1c5a   :  { %v3360_v49 = vmul.f32 1.442695, %v3359_v48 }
0x1c5b   :  { %v3519_v4 = vpop.permute.xlu0 %3518 }
0x1c5c   :  { %5542 = vpow2.f32 %v3360_v49 }
0x1c5f   :  { %v3685_v53 = vpop.permute.xlu0 %3684 }
0x1c66   :  { %v5543_v51 = vpop.eup %5542 }
0x1c67   :  { %5257 = vmatmul.mubr.msk.f32.vlgmr.msra.gmra.mrb[48].mxu0 %vm229_vm2, %v5543_v51  ;;  %v3362_v52 = vsel %vm229_vm2, %v5543_v51, 0.0 }
0x1c68   :  { %5265 = vmatpush3.xpose.msk.msra.mxu0 %vm229_vm2, %v3519_v4  ;;  %3363 = vadd.xlane.f32.xlu0 %v3362_v52 }
0x1c69   :  { %5266 = vmatprep.mubr.msk.f32.mxu0 %vm5595_vm1, %v5594_v39  ;;  %5274 = vmatprep.subr.mxu0 %v5594_v39 }
0x1c6b   :  { %5267 = vmatmul.mubr.msk.f32.vlgmr.msra.gmra.mrb[50].mxu0 %vm229_vm2, %v6087_v34 }
0x1c6c   :  { %5275 = vmatpush3.xpose.msk.msra.mxu0 %vm229_vm2, %v3685_v53  ;;  %5276 = vmatprep.mubr.msk.f32.mxu0 %vm5595_vm1, %v5594_v39 }
0x1c6d   :  { %5284 = vmatprep.subr.mxu0 %v5594_v39 }
0x1c6f   :  { %5277 = vmatmul.mubr.msk.f32.vlgmr.msra.gmra.mrb[52].mxu0 %vm229_vm2, %v3683_v54 }
0x1c70   :  { %5285 = vmatpush3.msra.mxu0 %v6148_v6  ;;  %5286 = vmatprep.mubr.msk.f32.mxu0 %vm5595_vm1, %v5594_v39 }
0x1c71   :  { %5294 = vmatprep.subr.mxu0 %v5594_v39 }
0x1c99   :  { %v3272_v55 = vpop.f32.mrb[46].mxu0 }
0x1c9a   :  { %v3276_v56 = vadd.f32 %v3272_v55, %v6164_v19  ;;  %v5248_v57 = vpop.f32.mrb[47].mxu0 }
0x1cf5   :  { %v3364_v59 = vpop.xlane.xlu0 %3363 }
0x1cf6   :  { %5544 = vrcp.f32 %v3364_v59 }
0x1d00   :  { %v5545_v43 = vpop.eup %5544 }
0x1d3a   :  { %v3438_v60 = vpop.f32.mrb[48].mxu0 }
0x1d3b   :  { %v3442_v62 = vmul.f32 %v5545_v43, %v3438_v60  ;;  %v5258_v63 = vpop.f32.mrb[49].mxu0 }
0x1d3d   :  { %5262 = vmatmul.mubr.msk.f32.vlgmr.msra.gmra.mrb[28].mxu1 %vm229_vm2, %v3442_v62 }
0x1d3e   :  { %v3590_v0 = vpop.f32.mrb[50].mxu0  ;;  %5271 = vmatprep.mubr.msk.f32.mxu1 %vm5595_vm1, %v5594_v39 }
0x1d3f   :  { %v3594_v1 = vsel %vm5754_vm3, %v3590_v0, -1e+30  ;;  %v5268_v6 = vpop.f32.mrb[51].mxu0 }
0x1d40   :  { %v3595_v36 = vsel %vm229_vm2, %v3594_v1, -inf }
0x1d41   :  { %3596 = vmax.xlane.f32.xlu1 %v3595_v36 }
0x1d42   :  { %v3756_v20 = vpop.f32.mrb[52].mxu0 }
0x1d43   :  { %v3760_v8 = vsel %vm5754_vm3, %v3756_v20, -1e+30  ;;  %v5278_v9 = vpop.f32.mrb[53].mxu0 }
0x1d44   :  { %v3761_v10 = vsel %vm229_vm2, %v3760_v8, -inf  ;;  %v4853_v9 = vld [vmem:[%s6415_s7 + $0x1] ss:$0 sm:$0xff] }
0x1d45   :  { %3762 = vmax.xlane.f32.xlu0 %v3761_v10 }
0x1d52   :  { %3771 = vrot.lane.b32.xlu1 %v6087_v34, %s5599_s18 }
0x1d56   :  { %3996 = vrot.lane.b32.xlu1 %v6087_v34, %s5604_s25 }
0x1d5a   :  { %3994 = vrot.lane.b32.xlu1 %v6087_v34, %s5601_s1 }
0x1d5b   :  { %3605 = vrot.lane.b32.xlu0 %v6087_v34, %s5596_s15 }
0x1dce   :  { %v3597_v11 = vpop.xlane.xlu1 %3596 }
0x1dcf   :  { %v3598_v12 = vsub.f32 %v3594_v1, %v3597_v11 }
0x1dd1   :  { %v3599_v2 = vmul.f32 1.442695, %v3598_v12 }
0x1dd2   :  { %v3763_v13 = vpop.xlane.xlu0 %3762  ;;  %v3772_v18 = vpop.permute.xlu1 %3771 }
0x1dd3   :  { %5546 = vpow2.f32 %v3599_v2  ;;  %v3764_v14 = vsub.f32 %v3760_v8, %v3763_v13 }
0x1dd5   :  { %v3765_v15 = vmul.f32 1.442695, %v3764_v14 }
0x1dd6   :  { %v3606_v16 = vpop.permute.xlu0 %3605  ;;  %v3997_v3 = vpop.permute.xlu1 %3996 }
0x1dd7   :  { %5548 = vpow2.f32 %v3765_v15  ;;  %5270 = vmatpush3.msra.mxu1 %v3606_v16 }
0x1dd8   :  { %5279 = vmatprep.subr.mxu1 %v5594_v39 }
0x1dda   :  { %v3995_v25 = vpop.permute.xlu1 %3994 }
0x1ddd   :  { %v5547_v17 = vpop.eup %5546 }
0x1dde   :  { %5272 = vmatmul.mubr.msk.f32.vlgmr.msra.gmra.mrb[30].mxu1 %vm229_vm2, %v5547_v17  ;;  %v3601_v19 = vsel %vm229_vm2, %v5547_v17, 0.0 }
0x1ddf   :  { %5280 = vmatpush3.msra.mxu1 %v3772_v18  ;;  %3602 = vadd.xlane.f32.xlu1 %v3601_v19 }
0x1de0   :  { %5281 = vmatprep.mubr.msk.f32.mxu1 %vm5595_vm1, %v5594_v39  ;;  %5289 = vmatprep.subr.mxu1 %v5594_v39 }
0x1de1   :  { %v5549_v42 = vpop.eup %5548 }
0x1de2   :  { %5282 = vmatmul.mubr.msk.f32.vlgmr.msra.gmra.mrb[32].mxu1 %vm229_vm2, %v5549_v42  ;;  %v3767_v21 = vsel %vm229_vm2, %v5549_v42, 0.0 }
0x1de3   :  { %3768 = vadd.xlane.f32.xlu0 %v3767_v21  ;;  %5290 = vmatpush3.msra.mxu1 %v6141_v5 }
0x1de4   :  { %5291 = vmatprep.mubr.msk.f32.mxu1 %vm5595_vm1, %v5594_v39  ;;  %5299 = vmatprep.subr.mxu1 %v5594_v39 }
0x1df0   :  { %4236 = vrot.lane.b32.xlu1 %v6087_v34, %s6431_s3 }
0x1e10   :  { %v3512_v22 = vpop.f32.mrb[28].mxu1 }
0x1e11   :  { %v6256_v23 = vadd.f32 %v3512_v22, %v3276_v56  ;;  %v5263_v24 = vpop.f32.mrb[29].mxu1 }
0x1e13   :  { %v4474_v8 = vadd.f32 %v6256_v23, %v6051_v44 }
0x1e6c   :  { %v3603_v26 = vpop.xlane.xlu1 %3602 }
0x1e6d   :  { %5550 = vrcp.f32 %v3603_v26  ;;  %v4854_v26 = vld [vmem:[%s6416_s8 + $0x1] ss:$0 sm:$0xff] }
0x1e70   :  { %v3769_v27 = vpop.xlane.xlu0 %3768  ;;  %v4237_v54 = vpop.permute.xlu1 %4236 }
0x1e71   :  { %5552 = vrcp.f32 %v3769_v27 }
0x1e77   :  { %v5551_v28 = vpop.eup %5550 }
0x1e7b   :  { %v5553_v32 = vpop.eup %5552 }
0x1eb1   :  { %v3677_v5 = vpop.f32.mrb[30].mxu1 }
0x1eb2   :  { %v3681_v29 = vmul.f32 %v5551_v28, %v3677_v5  ;;  %v5273_v30 = vpop.f32.mrb[31].mxu1  ;;  %v4855_v28 = vld [vmem:[%s6417_s9 + $0x1] ss:$0 sm:$0xff] }
0x1eb4   :  { %5292 = vmatmul.mubr.msk.f32.vlgmr.msra.gmra.mrb[34].mxu1 %vm229_vm2, %v3681_v29 }
0x1eb5   :  { %v3843_v33 = vpop.f32.mrb[32].mxu1  ;;  %5301 = vmatprep.mubr.msk.f32.mxu1 %vm5595_vm1, %v5594_v39 }
0x1eb6   :  { %v3847_v35 = vmul.f32 %v5553_v32, %v3843_v33  ;;  %v5283_v7 = vpop.f32.mrb[33].mxu1 }
0x1eb8   :  { %5287 = vmatmul.mubr.msk.f32.vlgmr.msra.gmra.mrb[54].mxu0 %vm229_vm2, %v3847_v35 }
0x1eb9   :  { %5295 = vmatpush3.xpose.msk.msra.mxu0 %vm229_vm2, %v3997_v3  ;;  %5296 = vmatprep.mubr.msk.f32.mxu0 %vm5595_vm1, %v5594_v39 }
0x1eba   :  { %5304 = vmatprep.subr.mxu0 %v5594_v39 }
0x1ebc   :  { %5297 = vmatmul.mubr.msk.f32.vlgmr.msra.gmra.mrb[56].mxu0 %vm229_vm2, %v3995_v25 }
0x1ebd   :  { %5305 = vmatpush3.msra.mxu0 %v6185_v31  ;;  %5306 = vmatprep.mubr.msk.f32.mxu0 %vm5595_vm1, %v5594_v39 }
0x1ebe   :  { %5314 = vmatprep.subr.mxu0 %v5594_v39 }
0x1f87   :  { %v3990_v37 = vpop.f32.mrb[34].mxu1 }
0x1f88   :  { %v5293_v38 = vpop.f32.mrb[35].mxu1 }
0x1f8b   :  { %v3917_v40 = vpop.f32.mrb[54].mxu0 }
0x1f8c   :  { %v3991_v41 = vadd.f32 %v3990_v37, %v3917_v40  ;;  %v5288_v45 = vpop.f32.mrb[55].mxu0 }
0x1f8f   :  { %v4068_v46 = vpop.f32.mrb[56].mxu0 }
0x1f90   :  { %v4072_v47 = vsel %vm5754_vm3, %v4068_v46, -1e+30  ;;  %v5298_v48 = vpop.f32.mrb[57].mxu0 }
0x1f91   :  { %v4073_v49 = vsel %vm229_vm2, %v4072_v47, -inf }
0x1f92   :  { %4074 = vmax.xlane.f32.xlu0 %v4073_v49  ;;  %v4796_v49 = vld [vmem:[%s6418_s10 + $0x30] sm:$0xff] }
0x1fa8   :  { %4083 = vrot.lane.b32.xlu0 %v6087_v34, %s5605_s26 }
0x1fac   :  { %4234 = vrot.lane.b32.xlu0 %v6087_v34, %s6432_s5 }
0x201f   :  { %v4075_v31 = vpop.xlane.xlu0 %4074 }
0x2020   :  { %v4076_v4 = vsub.f32 %v4072_v47, %v4075_v31  ;;  %v4794_v47 = vld [vmem:[%s6418_s10 + $0x20] sm:$0xff]  ;;  %v4797_v31 = vld [vmem:[%s6418_s10 + $0x38] sm:$0xff] }
0x2022   :  { %v4077_v51 = vmul.f32 1.442695, %v4076_v4  ;;  %v5430_v4 = vpack.c.bf16 %v4797_v31, %v4796_v49 }
0x2023   :  { %v4084_v52 = vpop.permute.xlu0 %4083 }
0x2024   :  { %5554 = vpow2.f32 %v4077_v51  ;;  %5300 = vmatpush3.msra.mxu1 %v4084_v52  ;;  %v4799_v51 = vld [vmem:[%s6420_s12 + $0x80] sm:$0xff]  ;;  %v4800_v52 = vld [vmem:[%s6420_s12 + $0x88] sm:$0xff] }
0x2025   :  { %5309 = vmatprep.subr.mxu1 %v5594_v39 }
0x2027   :  { %v4235_v56 = vpop.permute.xlu0 %4234 }
0x202e   :  { %v5555_v53 = vpop.eup %5554 }
0x202f   :  { %5302 = vmatmul.mubr.msk.f32.vlgmr.msra.gmra.mrb[36].mxu1 %vm229_vm2, %v5555_v53  ;;  %v4079_v55 = vsel %vm229_vm2, %v5555_v53, 0.0  ;;  %v5434_v53 = vpack.c.bf16 %v4800_v52, %v4799_v51 }
0x2030   :  { %5310 = vmatpush3.xpose.msk.msra.mxu1 %vm229_vm2, %v4237_v54  ;;  %4080 = vadd.xlane.f32.xlu0 %v4079_v55 }
0x2031   :  { %5311 = vmatprep.mubr.msk.f32.mxu1 %vm5595_vm1, %v5594_v39  ;;  %5319 = vmatprep.subr.mxu1 %v5594_v39 }
0x2033   :  { %5312 = vmatmul.mubr.msk.f32.vlgmr.msra.gmra.mrb[38].mxu1 %vm229_vm2, %v4235_v56 }
0x2034   :  { %5320 = vmatpush3.msra.mxu1 %v6221_v58  ;;  %5321 = vmatprep.mubr.msk.f32.mxu1 %vm5595_vm1, %v5594_v39 }
0x2035   :  { %5435 = vmatprep.subr.bf16.mxu1 %v5434_v53 }
0x2046   :  { %4323 = vrot.lane.b32.xlu0 %v6087_v34, %s6433_s24  ;;  %s4724_s24 = sshll.u32 %s5607_s23, 4  ;;  %s4725_s24 = int_to_ptr.vmem [resolvable:$true] %s4724_s24 }
0x2047   :  { %s5570_s27 = scalar_lea.vmem %s4725_s24, 256  ;;  %p5575_p1 = scmp.lt.s32.totalorder %s4725_s24, %s4725_s24 }
0x2048   :  { %p5571_p0 = scmp.ne.s32.totalorder %s4725_s24, %s5570_s27  ;;  %p5576_p2 = scmp.lt.s32.totalorder %s5570_s27, %s5570_s27 }
0x204a   :  { %p5577_p3 = por %p5576_p2, %p5575_p1 }
0x204c   :  { %p5578_p4 = pnand %p5577_p3, %p5571_p0 }
0x20bd   :  { %v4081_v57 = vpop.xlane.xlu0 %4080 }
0x20be   :  { %5556 = vrcp.f32 %v4081_v57 }
0x20c1   :  { %v4324_v63 = vpop.permute.xlu0 %4323 }
0x20c8   :  { %v5557_v59 = vpop.eup %5556 }
0x2102   :  { %v4155_v43 = vpop.f32.mrb[36].mxu1 }
0x2103   :  { %v4159_v60 = vmul.f32 %v5557_v59, %v4155_v43  ;;  %v5303_v62 = vpop.f32.mrb[37].mxu1 }
0x2104   :  { %v4801_v62 = vld [vmem:[%s6420_s12 + $0x90] sm:$0xff] }
0x2105   :  { %5307 = vmatmul.mubr.msk.f32.vlgmr.msra.gmra.mrb[58].mxu0 %vm229_vm2, %v4159_v60 }
0x2106   :  { %5315 = vmatpush3.msra.mxu0 %v4324_v63  ;;  %v4308_v0 = vpop.f32.mrb[38].mxu1  ;;  %5316 = vmatprep.mubr.msk.f32.mxu0 %vm5595_vm1, %v5594_v39  ;;  %v6302_v39 = vadd.f32 %v4853_v9, %v4474_v8  ;;  %v4802_v63 = vld [vmem:[%s6420_s12 + $0x98] sm:$0xff]  ;;  %v4807_v8 = vld [vmem:[%s6420_s12 + $0xc0] sm:$0xff] }
0x2107   :  { %v4312_v58 = vsel %vm5754_vm3, %v4308_v0, -1e+30  ;;  %v5313_v1 = vpop.f32.mrb[39].mxu1  ;;  %v5438_v0 = vpack.c.bf16 %v4802_v63, %v4801_v62 }
0x2108   :  { %v4313_v34 = vsel %vm229_vm2, %v4312_v58, -inf  ;;  %v4484_v11 = vsel %vm95_vm0, %v6302_v39, 0.0  ;;  %v4804_v1 = vld [vmem:[%s6420_s12 + $0xa8] sm:$0xff] }
0x2109   :  { %4314 = vmax.xlane.f32.xlu1 %v4313_v34 }
0x2196   :  { %v4315_v6 = vpop.xlane.xlu1 %4314 }
0x2197   :  { %v4316_v36 = vsub.f32 %v4312_v58, %v4315_v6  ;;  %v4803_v58 = vld [vmem:[%s6420_s12 + $0xa0] sm:$0xff]  ;;  %v4805_v6 = vld [vmem:[%s6420_s12 + $0xb0] sm:$0xff] }
0x2198   :  { %v5442_v34 = vpack.c.bf16 %v4804_v1, %v4803_v58 }
0x2199   :  { %v4317_v20 = vmul.f32 1.442695, %v4316_v36  ;;  %v4806_v36 = vld [vmem:[%s6420_s12 + $0xb8] sm:$0xff] }
0x219b   :  { %5558 = vpow2.f32 %v4317_v20  ;;  %v5446_v20 = vpack.c.bf16 %v4806_v36, %v4805_v6 }
0x21a5   :  { %v5559_v10 = vpop.eup %5558 }
0x21a6   :  { %5317 = vmatmul.mubr.msk.f32.vlgmr.msra.gmra.mrb[60].mxu0 %vm229_vm2, %v5559_v10  ;;  %v4319_v50 = vsel %vm229_vm2, %v5559_v10, 0.0 }
0x21a7   :  { %4320 = vadd.xlane.f32.xlu1 %v4319_v50  ;;  %v4809_v50 = vld [vmem:[%s6420_s12 + $0xd0] sm:$0xff] }
0x21ab   :  { %4485 = vadd.xlane.f32.xlu1 %v4484_v11  ;;  %v4810_v11 = vld [vmem:[%s6420_s12 + $0xd8] sm:$0xff] }
0x21d8   :  { %v4229_v12 = vpop.f32.mrb[58].mxu0 }
0x21d9   :  { %v4233_v2 = vadd.f32 %v4229_v12, %v3991_v41  ;;  %v5308_v13 = vpop.f32.mrb[59].mxu0  ;;  %v5454_v12 = vpack.c.bf16 %v4810_v11, %v4809_v50 }
0x21da   :  { %v4812_v13 = vld [vmem:[%s6420_s12 + $0xe8] sm:$0xff] }
0x2234   :  { %v4321_v44 = vpop.xlane.xlu1 %4320 }
0x2235   :  { %5560 = vrcp.f32 %v4321_v44 }
0x2238   :  { %v4486_v14 = vpop.xlane.xlu1 %4485 }
0x2239   :  { %v4490_v15 = vmul.f32 0.03125, %v4486_v14  ;;  %v4813_v14 = vld [vmem:[%s6420_s12 + $0xf0] sm:$0xff] }
0x223b   :  { %v4492_v16 = vsub.f32 %v6302_v39, %v4490_v15  ;;  %v4814_v15 = vld [vmem:[%s6420_s12 + $0xf8] sm:$0xff] }
0x223d   :  { %v4494_v17 = vmul.f32 %v4492_v16, %v4492_v16 }
0x223f   :  { %v4496_v18 = vsel %vm95_vm0, %v4494_v17, 0.0  ;;  %v5561_v19 = vpop.eup %5560  ;;  %v4856_v17 = vld [vmem:[%s6419_s11 + $0x1] ss:$0 sm:$0xff] }
0x2240   :  { %4497 = vadd.xlane.f32.xlu1 %v4496_v18 }
0x2279   :  { %v4395_v42 = vpop.f32.mrb[60].mxu0 }
0x227a   :  { %v4399_v21 = vmul.f32 %v5561_v19, %v4395_v42  ;;  %v5318_v22 = vpop.f32.mrb[61].mxu0 }
0x227c   :  { %5322 = vmatmul.mubr.msk.f32.vlgmr.msra.gmra.mrb[40].mxu1 %vm229_vm2, %v4399_v21 }
0x227d   :  { %5437 = vmatpush3.bf16.msra.mxu1 %v5434_v53 }
0x227e   :  { %5439 = vmatprep.subr.bf16.mxu1 %v5438_v0 }
0x2281   :  { %5441 = vmatpush3.bf16.msra.mxu1 %v5438_v0 }
0x2282   :  { %5443 = vmatprep.subr.bf16.mxu1 %v5442_v34 }
0x2285   :  { %5445 = vmatpush3.bf16.msra.mxu1 %v5442_v34 }
0x2286   :  { %5447 = vmatprep.subr.bf16.mxu1 %v5446_v20 }
0x2289   :  { %5449 = vmatpush3.bf16.msra.mxu1 %v5446_v20 }
0x22cd   :  { %v4498_v23 = vpop.xlane.xlu1 %4497 }
0x22ce   :  { %v4502_v24 = vmul.f32 0.03125, %v4498_v23 }
0x22d0   :  { %v4504_v3 = vadd.f32 1e-05, %v4502_v24 }
0x22d2   :  { %5562 = vrsqrt.f32 %v4504_v3 }
0x22dc   :  { %v5563_v25 = vpop.eup %5562 }
0x22dd   :  { %v4508_v27 = vmul.f32 %v5563_v25, %v4492_v16  ;;  %v5462_v16 = vpack.c.bf16 %v4814_v15, %v4813_v14 }
0x22df   :  { %v4516_v5 = vmul.f32 %v4854_v26, %v4508_v27 }
0x22e1   :  { %v4524_v29 = vadd.f32 %v4855_v28, %v4516_v5 }
0x22e3   :  { %5332 = vmatprep.mubr.msk.f32.mxu0 %vm95_vm0, %v4524_v29 }
0x234f   :  { %v4469_v30 = vpop.f32.mrb[40].mxu1 }
0x2350   :  { %v4473_v32 = vadd.f32 %v4469_v30, %v4233_v2  ;;  %v5323_v33 = vpop.f32.mrb[41].mxu1  ;;  %v4811_v2 = vld [vmem:[%s6420_s12 + $0xe0] sm:$0xff] }
0x2351   :  { %v5458_v44 = vpack.c.bf16 %v4812_v13, %v4811_v2 }
0x2352   :  { %v4475_v35 = vadd.f32 %v4473_v32, %v6049_v61  ;;  %v4795_v61 = vld [vmem:[%s6418_s10 + $0x28] sm:$0xff] }
0x2353   :  { %v5426_v48 = vpack.c.bf16 %v4795_v61, %v4794_v47 }
0x2354   :  { %v6319_v7 = vadd.f32 %v4853_v9, %v4475_v35  ;;  %v4808_v9 = vld [vmem:[%s6420_s12 + $0xc8] sm:$0xff] }
0x2355   :  { %5427 = vmatprep.subr.bf16.mxu0 %v5426_v48  ;;  %v5450_v10 = vpack.c.bf16 %v4808_v9, %v4807_v8 }
0x2356   :  { %v4487_v37 = vsel %vm95_vm0, %v6319_v7, 0.0  ;;  %5429 = vmatpush3.bf16.msra.mxu0 %v5426_v48 }
0x2357   :  { %4488 = vadd.xlane.f32.xlu0 %v4487_v37  ;;  %5431 = vmatprep.subr.bf16.mxu0 %v5430_v4 }
0x2358   :  { %5451 = vmatprep.subr.bf16.mxu1 %v5450_v10 }
0x2359   :  { %5453 = vmatpush3.bf16.msra.mxu1 %v5450_v10 }
0x235a   :  { %5433 = vmatpush3.bf16.msra.mxu0 %v5430_v4  ;;  %5455 = vmatprep.subr.bf16.mxu1 %v5454_v12 }
0x235d   :  { %5457 = vmatpush3.bf16.msra.mxu1 %v5454_v12 }
0x235e   :  { %5459 = vmatprep.subr.bf16.mxu1 %v5458_v44 }
0x2361   :  { %5461 = vmatpush3.bf16.msra.mxu1 %v5458_v44 }
0x2362   :  { %5463 = vmatprep.subr.bf16.mxu1 %v5462_v16 }
0x2365   :  { %5465 = vmatpush3.bf16.msra.mxu1 %v5462_v16 }
0x23e4   :  { %v4489_v38 = vpop.xlane.xlu0 %4488 }
0x23e5   :  { %v4491_v40 = vmul.f32 0.03125, %v4489_v38 }
0x23e7   :  { %v4493_v41 = vsub.f32 %v6319_v7, %v4491_v40 }
0x23e9   :  { %v4495_v45 = vmul.f32 %v4493_v41, %v4493_v41 }
0x23eb   :  { %v4499_v46 = vsel %vm95_vm0, %v4495_v45, 0.0  ;;  %v4859_v45 = vld [vmem:[%s6421_s13 + $0x1] ss:$0 sm:$0xff] }
0x23ec   :  { %4500 = vadd.xlane.f32.xlu1 %v4499_v46 }
0x2479   :  { %v4501_v54 = vpop.xlane.xlu1 %4500 }
0x247a   :  { %v4503_v55 = vmul.f32 0.03125, %v4501_v54 }
0x247c   :  { %v4505_v56 = vadd.f32 1e-05, %v4503_v55 }
0x247e   :  { %5564 = vrsqrt.f32 %v4505_v56 }
0x2488   :  { %v5565_v57 = vpop.eup %5564 }
0x2489   :  { %v4509_v59 = vmul.f32 %v5565_v57, %v4493_v41 }
0x248b   :  { %v4517_v43 = vmul.f32 %v4854_v26, %v4509_v59 }
0x248d   :  { %v4525_v60 = vadd.f32 %v4855_v28, %v4517_v43 }
0x248f   :  { %5333 = vmatmul.mubr.msk.f32.vlgmr.msra.gmra.mrb[62].mxu0 %vm95_vm0, %v4525_v60 }
0x2562   :  { %v5334_v18 = vpop.f32.mrb[62].mxu0 }
0x2563   :  { %v4610_v19 = vadd.f32 %v5334_v18, %v4856_v17  ;;  %v4604_v42 = vpop.f32.mrb[63].mxu0 }
0x2564   :  { %v4605_v21 = vadd.f32 %v4856_v17, %v4604_v42 }
0x2565   :  { %v4616_v22 = vmul.f32 0.044715, %v4610_v19  ;;  %v4614_v38 = vmul.f32 0.5, %v4610_v19 }
0x2566   :  { %v4615_v23 = vmul.f32 0.044715, %v4605_v21  ;;  %v4613_v35 = vmul.f32 0.5, %v4605_v21 }
0x2567   :  { %v4618_v24 = vmul.f32 %v4616_v22, %v4610_v19 }
0x2568   :  { %v4617_v3 = vmul.f32 %v4615_v23, %v4605_v21 }
0x2569   :  { %v4620_v25 = vmul.f32 %v4618_v24, %v4610_v19 }
0x256a   :  { %v4619_v26 = vmul.f32 %v4617_v3, %v4605_v21 }
0x256b   :  { %v4622_v27 = vadd.f32 %v4620_v25, %v4610_v19 }
0x256c   :  { %v4621_v28 = vadd.f32 %v4619_v26, %v4605_v21 }
0x256d   :  { %v4624_v5 = vmul.f32 0.7978846, %v4622_v27 }
0x256e   :  { %v4623_v29 = vmul.f32 0.7978846, %v4621_v28 }
0x256f   :  { %5566 = vtanh.f32 %v4624_v5 }
0x2570   :  { %5568 = vtanh.f32 %v4623_v29 }
0x2579   :  { %v5567_v30 = vpop.eup %5566 }
0x257a   :  { %v5569_v32 = vpop.eup %5568  ;;  %v4628_v33 = vadd.f32 1.0, %v5567_v30 }
0x257b   :  { %v4627_v37 = vadd.f32 1.0, %v5569_v32 }
0x257c   :  { %v4630_v41 = vmul.f32 %v4628_v33, %v4614_v38 }
0x257d   :  { %v4629_v40 = vmul.f32 %v4627_v37, %v4613_v35 }
0x257f   :  { %5367 = vmatprep.mubr.f32.mxu1 %v4629_v40 }
0x2580   :  { %5368 = vmatmul.mubr.f32.vlgmr.msra.gmra.mrb[42].mxu1 %v4630_v41 }
0x2653   :  { %v5369_v46 = vpop.f32.mrb[42].mxu1 }
0x2654   :  { %v4707_v47 = vadd.f32 %v5369_v46, %v6319_v7  ;;  %v4697_v61 = vpop.f32.mrb[43].mxu1 }
0x2655   :  { %v4706_v48 = vadd.f32 %v4697_v61, %v6302_v39 }
0x2656   :  { %v4715_v49 = vadd.f32 %v4859_v45, %v4707_v47 }
0x2657   :  { %v4714_v31 = vadd.f32 %v4859_v45, %v4706_v48 }
0x2658   :  { %4718 = vst.msk [vmem:[#allocation2 + $0x8] sm:$0xff] %vm95_vm0, %v4715_v49 }
0x2659   :  { %4716 = vst.msk [vmem:[#allocation2] sm:$0xff] %vm95_vm0, %v4714_v31 }
0x265a   :  { %5581 = shalt.err (!%p5578_p4)
}
0x265b   :  { %s5582_s16 = scalar_lea.hbm %s6422_s14, 256 }
0x265c   :  { %p5583_p5 = scmp.ne.s32.totalorder %s6422_s14, %s5582_s16  ;;  %p5586_p6 = scmp.lt.u32.totalorder %s5582_s16, %s6422_s14 }
0x265e   :  { %p5588_p7 = pnand %p5586_p6, %p5583_p5 }
0x2660   :  { %5591 = shalt.err (!%p5588_p7)
}
0x2661   :  { %s5608_s18 = smov 128   ;;  %s5609_s0 = smov 8  }
0x2662   :  { %4730 = dma.vmem_to_hbm [thread:$0]  %s4725_s24, 256, %s6422_s14, [#allocation3], %s5608_s18, %s5608_s18, %s5609_s0  }
0x2663   :  { %5592 = dma.done.wait [#allocation3], 256  }
0x2664   :  { %5593 = vsyncadd [#allocation3], 4294967040 }
0x2665   :  { %4734 = vsyncpa [#allocation3], 1 }

</bundles_post_ra>
